<compile_context>
chip_gen: v7x
topology: tpu7x:2x2x1
jax: 0.10.0
libtpu: 0.0.40
codegen_flags: <defaults>
</compile_context>

<pallas_src>
import functools

import jax
import jax.numpy as jnp
from jax import lax
from jax.experimental import pallas as pl
from jax.experimental.pallas import tpu as pltpu

# ----------------------------- config (small synthetic shapes) ---------------
HEAD_SIZE = 16          # RWKV_HEAD_SIZE_A
N_EMBD = 32             # C
N_LAYER = 4
LAYER_ID = 1            # != 0 -> no ln0, v-lora branch active
HEAD_SIZE_DIVISOR = 8
DIM_ATT = N_EMBD
N_HEAD = DIM_ATT // HEAD_SIZE
B, T = 2, 8

# f32 to match the fp32 PyTorch reference; set to jnp.bfloat16 on v6e/v7x for MXU peak.
MATMUL_IN_DTYPE = jnp.float32


def _round_up(x, m):
    return (x + m - 1) // m * m


# ----------------------------- generic tiled matmul ---------------------------
def _matmul_kernel(x_ref, w_ref, o_ref, acc_ref):
    @pl.when(pl.program_id(2) == 0)
    def _():
        acc_ref[...] = jnp.zeros_like(acc_ref)

    acc_ref[...] += jnp.dot(x_ref[...], w_ref[...],
                            preferred_element_type=jnp.float32)

    @pl.when(pl.program_id(2) == pl.num_programs(2) - 1)
    def _():
        o_ref[...] = acc_ref[...].astype(o_ref.dtype)


def pallas_matmul(x, w, tm=256, tn=256, tk=512):
    M, K = x.shape
    K2, N = w.shape
    assert K == K2
    tm = M if M < tm else tm
    tn = N if N < tn else tn
    tk = K if K < tk else tk
    Mp, Kp, Np = _round_up(M, tm), _round_up(K, tk), _round_up(N, tn)
    xp = x if (Mp == M and Kp == K) else jnp.pad(x, ((0, Mp - M), (0, Kp - K)))
    wp = w if (Kp == K and Np == N) else jnp.pad(w, ((0, Kp - K), (0, Np - N)))

    out = pl.pallas_call(
        _matmul_kernel,
        out_shape=jax.ShapeDtypeStruct((Mp, Np), jnp.float32),
        grid_spec=pltpu.PrefetchScalarGridSpec(
            num_scalar_prefetch=0,
            grid=(Mp // tm, Np // tn, Kp // tk),
            in_specs=[pl.BlockSpec((tm, tk), lambda i, j, k: (i, k)),
                      pl.BlockSpec((tk, tn), lambda i, j, k: (k, j))],
            out_specs=pl.BlockSpec((tm, tn), lambda i, j, k: (i, j)),
            scratch_shapes=[pltpu.VMEM((tm, tn), jnp.float32)]),
        compiler_params=pltpu.CompilerParams(
            dimension_semantics=("parallel", "parallel", "arbitrary")),
    )(xp.astype(MATMUL_IN_DTYPE), wp.astype(MATMUL_IN_DTYPE))
    if Mp != M or Np != N:
        out = out[:M, :N]
    return out


def linear(x, w):
    lead = x.shape[:-1]
    y = pallas_matmul(x.reshape(-1, x.shape[-1]), w)
    return y.reshape(*lead, w.shape[-1])


# ------------------ fused token-shift mix + r/k/v projections -----------------
def _rkv_kernel(x_ref, dx_ref, mr_ref, mk_ref, mv_ref,
                wr_ref, wk_ref, wv_ref, r_ref, k_ref, v_ref):
    x = x_ref[...]
    dx = dx_ref[...]
    r_ref[...] = jnp.dot(x + dx * mr_ref[...], wr_ref[...],
                         preferred_element_type=jnp.float32)
    k_ref[...] = jnp.dot(x + dx * mk_ref[...], wk_ref[...],
                         preferred_element_type=jnp.float32)
    v_ref[...] = jnp.dot(x + dx * mv_ref[...], wv_ref[...],
                         preferred_element_type=jnp.float32)


def rkv_projections(x1f, xxf, m_r, m_k, m_v, Wr, Wk, Wv, tm=256):
    M, C = x1f.shape
    tm = M if M < tm else tm
    Mp = _round_up(M, tm)
    if Mp != M:
        x1f = jnp.pad(x1f, ((0, Mp - M), (0, 0)))
        xxf = jnp.pad(xxf, ((0, Mp - M), (0, 0)))
    row_spec = pl.BlockSpec((tm, C), lambda i: (i, 0))
    vec_spec = pl.BlockSpec((1, C), lambda i: (0, 0))
    wt_spec = pl.BlockSpec((C, C), lambda i: (0, 0))
    outs = pl.pallas_call(
        _rkv_kernel,
        out_shape=tuple(jax.ShapeDtypeStruct((Mp, C), jnp.float32) for _ in range(3)),
        grid_spec=pltpu.PrefetchScalarGridSpec(
            num_scalar_prefetch=0,
            grid=(Mp // tm,),
            in_specs=[row_spec, row_spec, vec_spec, vec_spec, vec_spec,
                      wt_spec, wt_spec, wt_spec],
            out_specs=(row_spec, row_spec, row_spec)),
        compiler_params=pltpu.CompilerParams(dimension_semantics=("parallel",)),
    )(x1f, xxf, m_r.reshape(1, C), m_k.reshape(1, C), m_v.reshape(1, C), Wr, Wk, Wv)
    if Mp != M:
        outs = tuple(o[:M] for o in outs)
    return outs


# ------------------ fused LoRA branches (mix + W1 + act + W2 + epilogue) ------
def _lora_kernel(mid_act, epilogue, x_ref, dx_ref, mix_ref, bias_ref,
                 w1_ref, w2_ref, o_ref):
    xm = x_ref[...] + dx_ref[...] * mix_ref[...]
    h = jnp.dot(xm, w1_ref[...], preferred_element_type=jnp.float32)
    if mid_act == "tanh":
        h = jnp.tanh(h)
    elif mid_act == "sigmoid":
        h = 1.0 / (1.0 + jnp.exp(-h))
    y = bias_ref[...] + jnp.dot(h, w2_ref[...], preferred_element_type=jnp.float32)
    if epilogue == "sigmoid":
        y = 1.0 / (1.0 + jnp.exp(-y))
    elif epilogue == "w_decay":
        # w = -softplus(-y) - 0.5 ; return the log-decay  w_log = -exp(w)
        sp = jnp.maximum(-y, 0.0) + jnp.log(1.0 + jnp.exp(-jnp.abs(y)))
        y = -jnp.exp(-sp - 0.5)
    o_ref[...] = y


def lora_branch(x1f, xxf, mix, bias, w1, w2, *, mid_act, epilogue, tm=256):
    M, C = x1f.shape
    L = w1.shape[1]
    tm = M if M < tm else tm
    Mp = _round_up(M, tm)
    if Mp != M:
        x1f = jnp.pad(x1f, ((0, Mp - M), (0, 0)))
        xxf = jnp.pad(xxf, ((0, Mp - M), (0, 0)))
    row_spec = pl.BlockSpec((tm, C), lambda i: (i, 0))
    out = pl.pallas_call(
        functools.partial(_lora_kernel, mid_act, epilogue),
        out_shape=jax.ShapeDtypeStruct((Mp, C), jnp.float32),
        grid_spec=pltpu.PrefetchScalarGridSpec(
            num_scalar_prefetch=0,
            grid=(Mp // tm,),
            in_specs=[row_spec, row_spec,
                      pl.BlockSpec((1, C), lambda i: (0, 0)),
                      pl.BlockSpec((1, C), lambda i: (0, 0)),
                      pl.BlockSpec((C, L), lambda i: (0, 0)),
                      pl.BlockSpec((L, C), lambda i: (0, 0))],
            out_specs=row_spec),
        compiler_params=pltpu.CompilerParams(dimension_semantics=("parallel",)),
    )(x1f, xxf, mix.reshape(1, C), bias.reshape(1, C), w1, w2)
    return out[:M] if Mp != M else out


# ------------------ fused CMix (mix + key matmul + relu^2 + value matmul) ------
def _cmix_kernel(x_ref, dx_ref, mix_ref, wkey_ref, wval_ref, o_ref):
    xk = x_ref[...] + dx_ref[...] * mix_ref[...]
    h = jnp.dot(xk, wkey_ref[...], preferred_element_type=jnp.float32)
    h = jnp.square(jnp.maximum(h, 0.0))          # relu(k)**2, 4C stays in VMEM
    o_ref[...] = jnp.dot(h, wval_ref[...], preferred_element_type=jnp.float32)


def cmix_ffn(x2f, dx2f, mix, Wkey, Wval, tm=256):
    M, C = x2f.shape
    C4 = Wkey.shape[1]
    tm = M if M < tm else tm
    Mp = _round_up(M, tm)
    if Mp != M:
        x2f = jnp.pad(x2f, ((0, Mp - M), (0, 0)))
        dx2f = jnp.pad(dx2f, ((0, Mp - M), (0, 0)))
    row_spec = pl.BlockSpec((tm, C), lambda i: (i, 0))
    out = pl.pallas_call(
        _cmix_kernel,
        out_shape=jax.ShapeDtypeStruct((Mp, C), jnp.float32),
        grid_spec=pltpu.PrefetchScalarGridSpec(
            num_scalar_prefetch=0,
            grid=(Mp // tm,),
            in_specs=[row_spec, row_spec,
                      pl.BlockSpec((1, C), lambda i: (0, 0)),
                      pl.BlockSpec((C, C4), lambda i: (0, 0)),
                      pl.BlockSpec((C4, C), lambda i: (0, 0))],
            out_specs=row_spec),
        compiler_params=pltpu.CompilerParams(dimension_semantics=("parallel",)),
    )(x2f, dx2f, mix.reshape(1, C), Wkey, Wval)
    return out[:M] if Mp != M else out


# ----------------------------- Pallas WKV7 recurrence kernel ------------------
def _pick_heads_per_block(H, N):
    # Group G heads per grid step so the state tile is (N, G*N) lanes-wide.
    # The C-dim block (G*N) must equal C or be a multiple of 128.
    if H * N <= 128:
        return H
    cands = [g for g in range(1, H) if H % g == 0 and g * N == 128]
    return max(cands) if cands else H


def _pick_time_chunk(T, cap=64):
    cands = [ct for ct in range(1, min(T, cap) + 1)
             if T % ct == 0 and (ct % 8 == 0 or ct == T)]
    return max(cands) if cands else T


def _wkv7_kernel(r_ref, w_ref, k_ref, v_ref, a_ref, b_ref, s0_ref,
                 o_ref, sT_ref,
                 dec_s, a_s, b_s, k_s, r_s, S_s):
    CT, GN = r_ref.shape
    G, N, _ = s0_ref.shape
    tc = pl.program_id(2)

    # (re)load the per-head states into the lane-dense (N, G*N) scratch at chunk 0;
    # the scratch carries the state across the "arbitrary" time-chunk axis.
    @pl.when(tc == 0)
    def _():
        for g in range(G):
            S_s[:, g * N:(g + 1) * N] = s0_ref[g]

    # Hoisted preprocessing (incl. the decay exp) -- out of the time loop.
    # dst[t, i, g*N + j] = fn(src)[t, g*N + i]   (key index -> sublanes, bcast over j)
    def store_expanded(dst, src_ref, fn=None):
        for g in range(G):
            xg = src_ref[:, g * N:(g + 1) * N]            # (CT, N)  [t, key]
            if fn is not None:
                xg = fn(xg)
            dst[:, :, g * N:(g + 1) * N] = jnp.broadcast_to(xg[:, :, None], (CT, N, N))

    store_expanded(dec_s, w_ref, jnp.exp)
    store_expanded(a_s, a_ref)
    store_expanded(b_s, b_ref)
    store_expanded(k_s, k_ref)
    store_expanded(r_s, r_ref)

    def step(t, S):
        # RWKV7:  S_t = S_{t-1} * diag(e^{w_t}) + b_t (a_t^T S_{t-1}) + k_t v_t^T
        sa = jnp.sum(a_s[t] * S, axis=0, keepdims=True)            # (1, G*N)
        S = S * dec_s[t] + b_s[t] * sa + k_s[t] * v_ref[t, :][None, :]
        o_ref[t, :] = jnp.sum(r_s[t] * S, axis=0)                  # lane-dense row
        return S

    unroll = CT if CT <= 8 else 8
    S = lax.fori_loop(0, CT, step, S_s[...], unroll=unroll)
    S_s[...] = S

    @pl.when(tc == pl.num_programs(2) - 1)
    def _():
        for g in range(G):
            sT_ref[g, :, :] = S_s[:, g * N:(g + 1) * N]


def wkv7_pallas(r, w_log, k, v, a, b, s0):
    """r, w_log, k, v, a, b: (B, T, C) with head-major channels (C = H*N);
       s0: (B, H, N, N), state[key, value].  Returns o: (B, T, C), sT: (B, H, N, N)."""
    Bb, Tt, C = r.shape
    _, H, N, _ = s0.shape
    assert C == H * N
    G = _pick_heads_per_block(H, N)
    CT = _pick_time_chunk(Tt)
    GN = G * N

    seq_spec = pl.BlockSpec((pl.Squeezed(), CT, GN), lambda bb, hg, tc: (bb, tc, hg))
    st_spec = pl.BlockSpec((pl.Squeezed(), G, N, N), lambda bb, hg, tc: (bb, hg, 0, 0))

    args = [z.astype(jnp.float32) for z in (r, w_log, k, v, a, b)]
    o, sT = pl.pallas_call(
        _wkv7_kernel,
        out_shape=(jax.ShapeDtypeStruct((Bb, Tt, C), jnp.float32),
                   jax.ShapeDtypeStruct((Bb, H, N, N), jnp.float32)),
        grid_spec=pltpu.PrefetchScalarGridSpec(
            num_scalar_prefetch=0,
            grid=(Bb, H // G, Tt // CT),
            in_specs=[seq_spec] * 6 + [st_spec],
            out_specs=(seq_spec, st_spec),
            scratch_shapes=[pltpu.VMEM((CT, N, GN), jnp.float32)] * 5
                           + [pltpu.VMEM((N, GN), jnp.float32)]),
        compiler_params=pltpu.CompilerParams(
            dimension_semantics=("parallel", "parallel", "arbitrary")),
    )(*args, s0.astype(jnp.float32))
    return o, sT


def wkv7_reference(r, w_log, k, v, a, b, s0):
    """Pure-JAX sequential reference (same math) for self-checking the kernel."""
    Bb, Tt, C = r.shape
    _, H, N, _ = s0.shape

    def split(z):
        return jnp.moveaxis(z.reshape(Bb, Tt, H, N), 1, 0)        # (T, B, H, N)

    xs = tuple(split(z) for z in (r, w_log, k, v, a, b))

    def step(S, inp):
        r_t, w_t, k_t, v_t, a_t, b_t = inp
        sa = jnp.einsum('bhk,bhkv->bhv', a_t, S)
        S = (S * jnp.exp(w_t)[..., None]
             + b_t[..., None] * sa[..., None, :]
             + k_t[..., None] * v_t[..., None, :])
        o_t = jnp.einsum('bhk,bhkv->bhv', r_t, S)
        return S, o_t

    S_final, o = lax.scan(step, s0, xs)
    return jnp.moveaxis(o, 0, 1).reshape(Bb, Tt, C), S_final


# ----------------------------- small JAX glue ---------------------------------
def layer_norm(x, w, b, eps=1e-5):
    mu = jnp.mean(x, axis=-1, keepdims=True)
    var = jnp.mean(jnp.square(x - mu), axis=-1, keepdims=True)
    return (x - mu) * lax.rsqrt(var + eps) * w + b


def group_norm(x, w, b, num_groups, eps):
    m, c = x.shape
    xg = x.reshape(m, num_groups, c // num_groups)
    mu = jnp.mean(xg, axis=-1, keepdims=True)
    var = jnp.mean(jnp.square(xg - mu), axis=-1, keepdims=True)
    xg = (xg - mu) * lax.rsqrt(var + eps)
    return xg.reshape(m, c) * w + b


# ----------------------------- parameter init (deterministic) -----------------
def init_params(key):
    C, H, N = N_EMBD, N_HEAD, HEAD_SIZE
    L = 32  # all LoRA dims evaluate to 32 for C = 32
    r0 = LAYER_ID / (N_LAYER - 1)
    r1 = 1.0 - LAYER_ID / N_LAYER
    ddd = (jnp.arange(C, dtype=jnp.float32) / C)[None, None, :]
    n = jnp.arange(C, dtype=jnp.float32)
    decay_speed = -7.0 + 5.0 * (n / (C - 1)) ** (0.85 + 1.0 * r0 ** 0.5)

    ks = jax.random.split(key, 16)

    def rnd(k, shape, scale=0.1):
        return scale * jax.random.normal(k, shape, jnp.float32)

    return dict(
        ln1_w=jnp.ones(C), ln1_b=jnp.zeros(C),
        ln2_w=jnp.ones(C), ln2_b=jnp.zeros(C),
        x_r=1.0 - ddd ** (0.2 * r1),
        x_w=1.0 - ddd ** (0.9 * r1),
        x_k=1.0 - (ddd ** (0.9 * r1) + 0.4 * r0),
        x_v=1.0 - (ddd ** (0.4 * r1) + 0.6 * r0),
        x_a=1.0 - ddd ** (0.9 * r1),
        x_g=1.0 - ddd ** (0.2 * r1),
        w0=decay_speed[None, None, :] + 0.5,
        w1=rnd(ks[0], (C, L), 0.05), w2=rnd(ks[1], (L, C), 0.05),
        a0=rnd(ks[2], (1, 1, C), 0.05), a1=rnd(ks[3], (C, L), 0.05),
        a2=rnd(ks[4], (L, C), 0.05),
        v0=jnp.ones((1, 1, C)), v1=rnd(ks[5], (C, L), 0.05),
        v2=rnd(ks[6], (L, C), 0.05),
        g1=rnd(ks[7], (C, L), 0.05), g2=rnd(ks[8], (L, C), 0.05),
        k_k=jnp.full((1, 1, C), 0.85), k_a=jnp.ones((1, 1, C)),
        r_k=rnd(ks[9], (H, N), 0.05),
        Wr=rnd(ks[10], (C, C)), Wk=rnd(ks[11], (C, C)),
        Wv=rnd(ks[12], (C, C)), Wo=rnd(ks[13], (C, C)),
        ln_x_w=jnp.ones(C), ln_x_b=jnp.zeros(C),
        cm_x_k=1.0 - ddd ** (r1 ** 4),
        cm_Wkey=rnd(ks[14], (C, 4 * C)),
        cm_Wval=rnd(ks[15], (4 * C, C)),
    )


# ----------------------------- Block forward ----------------------------------
def block_forward(p, x, v_first, tm_shift, wkv_state, cm_shift):
    Bb, Tt, C = x.shape
    H, N = N_HEAD, HEAD_SIZE
    M = Bb * Tt

    # layer_id != 0 -> no ln0
    x1 = layer_norm(x, p['ln1_w'], p['ln1_b'])

    # ---------------- RWKV_Tmix_x070 ----------------
    xx = jnp.concatenate([tm_shift[:, None, :], x1[:, :-1]], axis=1) - x1
    new_tm_shift = x1[:, -1, :]

    x1f = x1.reshape(M, C)
    xxf = xx.reshape(M, C)
    zeros_bias = jnp.zeros((1, C), jnp.float32)

    # fused mix + projections / LoRA branches (intermediates stay in VMEM)
    r, k, v = rkv_projections(x1f, xxf, p['x_r'], p['x_k'], p['x_v'],
                              p['Wr'], p['Wk'], p['Wv'])
    w_log = lora_branch(x1f, xxf, p['x_w'], p['w0'], p['w1'], p['w2'],
                        mid_act='tanh', epilogue='w_decay')      # = -exp(w)
    a = lora_branch(x1f, xxf, p['x_a'], p['a0'], p['a1'], p['a2'],
                    mid_act='none', epilogue='sigmoid')
    v_gate = lora_branch(x1f, xxf, p['x_v'], p['v0'], p['v1'], p['v2'],
                         mid_act='none', epilogue='sigmoid')
    g = lora_branch(x1f, xxf, p['x_g'], zeros_bias, p['g1'], p['g2'],
                    mid_act='sigmoid', epilogue='none')

    r = r.reshape(Bb, Tt, C)
    k = k.reshape(Bb, Tt, C)
    v = v.reshape(Bb, Tt, C)
    a = a.reshape(Bb, Tt, C)
    g = g.reshape(Bb, Tt, C)
    w_log = w_log.reshape(Bb, Tt, C)

    # layer_id != 0 branch: blend with v_first
    v = v + (v_first - v) * v_gate.reshape(Bb, Tt, C)

    kk = k * p['k_k']
    kk4 = kk.reshape(Bb, Tt, H, N)
    norm = jnp.sqrt(jnp.sum(kk4 * kk4, axis=-1, keepdims=True))
    kk = (kk4 / jnp.maximum(norm, 1e-12)).reshape(Bb, Tt, C)     # F.normalize(eps=1e-12)
    k = k * (1.0 + (a - 1.0) * p['k_a'])

    # RUN_RWKV7_INFCTX equivalent: sequential RWKV7 recurrence (log-decay = -exp(w))
    xo, new_wkv = wkv7_pallas(r, w_log, k, v, -kk, kk * a, wkv_state)

    eps_gn = 1e-5 * HEAD_SIZE_DIVISOR ** 2
    xo = group_norm(xo.reshape(M, C), p['ln_x_w'], p['ln_x_b'], H, eps_gn)
    xo = xo.reshape(Bb, Tt, C)
    rk = jnp.sum(r.reshape(Bb, Tt, H, N) * k.reshape(Bb, Tt, H, N) * p['r_k'],
                 axis=-1, keepdims=True)
    xo = xo + (rk * v.reshape(Bb, Tt, H, N)).reshape(Bb, Tt, C)
    x_attn = linear(xo * g, p['Wo'])

    x = x + x_attn

    # ---------------- RWKV_CMix_x070 ----------------
    x2 = layer_norm(x, p['ln2_w'], p['ln2_b'])
    # matches the reference exactly: torch.concat((shift.unsqueeze(1), x[:, :0]), 1)
    # is (B,1,C), so the subtraction broadcasts the carried shift over all T.
    dx2 = cm_shift[:, None, :] - x2
    ffn_out = cmix_ffn(x2.reshape(M, C), dx2.reshape(M, C),
                       p['cm_x_k'], p['cm_Wkey'], p['cm_Wval']).reshape(Bb, Tt, C)
    new_cm_shift = x2[:, -1]

    x = x + ffn_out
    return x, v_first, (new_tm_shift, new_wkv), (new_cm_shift,)


# ----------------------------- main --------------------------------------------
if __name__ == "__main__":
    key = jax.random.PRNGKey(0)
    kp, kx, kvf, kts, kwk, kcs, kchk = jax.random.split(key, 7)

    params = init_params(kp)
    x = jax.random.normal(kx, (B, T, N_EMBD), jnp.float32)
    v_first = jax.random.normal(kvf, (B, T, N_EMBD), jnp.float32)
    tm_shift = jax.random.normal(kts, (B, N_EMBD), jnp.float32)
    wkv_state = 0.1 * jax.random.normal(kwk, (B, N_HEAD, HEAD_SIZE, HEAD_SIZE),
                                        jnp.float32)
    cm_shift = jax.random.normal(kcs, (B, N_EMBD), jnp.float32)

    # --- WKV kernel self-check against a pure-JAX sequential reference ---
    ks = jax.random.split(kchk, 7)
    shp = (B, T, N_EMBD)
    rr = 0.5 * jax.random.normal(ks[0], shp, jnp.float32)
    wl = -jnp.exp(0.5 * jax.random.normal(ks[1], shp, jnp.float32))
    kk_ = 0.5 * jax.random.normal(ks[2], shp, jnp.float32)
    vv = 0.5 * jax.random.normal(ks[3], shp, jnp.float32)
    aa = 0.5 * jax.random.normal(ks[4], shp, jnp.float32)
    bb = 0.5 * jax.random.normal(ks[5], shp, jnp.float32)
    ss = 0.1 * jax.random.normal(ks[6], (B, N_HEAD, HEAD_SIZE, HEAD_SIZE), jnp.float32)
    o_pl, sT_pl = jax.jit(wkv7_pallas)(rr, wl, kk_, vv, aa, bb, ss)
    o_rf, sT_rf = jax.jit(wkv7_reference)(rr, wl, kk_, vv, aa, bb, ss)
    jax.block_until_ready((o_pl, sT_pl))
    assert jnp.allclose(o_pl, o_rf, atol=1e-3, rtol=1e-3)
    assert jnp.allclose(sT_pl, sT_rf, atol=1e-3, rtol=1e-3)

    # --- full Block forward ---
    fwd = jax.jit(block_forward)
    out, v_first_out, tm_state, cm_state = fwd(params, x, v_first,
                                               tm_shift, wkv_state, cm_shift)
    jax.block_until_ready((out, v_first_out, tm_state, cm_state))

    assert out.shape == (B, T, N_EMBD)
    assert tm_state[0].shape == (B, N_EMBD)
    assert tm_state[1].shape == (B, N_HEAD, HEAD_SIZE, HEAD_SIZE)
    assert cm_state[0].shape == (B, N_EMBD)
    assert jnp.all(jnp.isfinite(out))
    # TODO(synk): args.dropout > 0 branch (nn.Dropout) is omitted (dropout = 0).
    print("KERNEL_OK")
</pallas_src>

<mosaic_0001>
module attributes {stable_mosaic.version = 11 : i64} {
  func.func @_wkv7_kernel(%arg0: i32, %arg1: i32, %arg2: i32, %arg3: memref<1x8x32xf32, #tpu.memory_space<vmem>>, %arg4: memref<1x8x32xf32, #tpu.memory_space<vmem>>, %arg5: memref<1x8x32xf32, #tpu.memory_space<vmem>>, %arg6: memref<1x8x32xf32, #tpu.memory_space<vmem>>, %arg7: memref<1x8x32xf32, #tpu.memory_space<vmem>>, %arg8: memref<1x8x32xf32, #tpu.memory_space<vmem>>, %arg9: memref<1x2x16x16xf32, #tpu.memory_space<vmem>>, %arg10: memref<1x8x32xf32, #tpu.memory_space<vmem>>, %arg11: memref<1x2x16x16xf32, #tpu.memory_space<vmem>>, %arg12: memref<8x16x32xf32, #tpu.memory_space<vmem>>, %arg13: memref<8x16x32xf32, #tpu.memory_space<vmem>>, %arg14: memref<8x16x32xf32, #tpu.memory_space<vmem>>, %arg15: memref<8x16x32xf32, #tpu.memory_space<vmem>>, %arg16: memref<8x16x32xf32, #tpu.memory_space<vmem>>, %arg17: memref<16x32xf32, #tpu.memory_space<vmem>>) attributes {dimension_semantics = [#tpu.dimension_semantics<parallel>, #tpu.dimension_semantics<parallel>, #tpu.dimension_semantics<arbitrary>], iteration_bounds = array<i64: 2, 1, 1>, scalar_prefetch = 0 : i64, scratch_operands = 6 : i64, tpu.core_type = #tpu.core_type<tc>, window_params = [{transform_indices = @transform_0, window_bounds = array<i64: 1, 8, 32>}, {transform_indices = @transform_1, window_bounds = array<i64: 1, 8, 32>}, {transform_indices = @transform_2, window_bounds = array<i64: 1, 8, 32>}, {transform_indices = @transform_3, window_bounds = array<i64: 1, 8, 32>}, {transform_indices = @transform_4, window_bounds = array<i64: 1, 8, 32>}, {transform_indices = @transform_5, window_bounds = array<i64: 1, 8, 32>}, {transform_indices = @transform_6, window_bounds = array<i64: 1, 2, 16, 16>}, {transform_indices = @transform_7, window_bounds = array<i64: 1, 8, 32>}, {transform_indices = @transform_8, window_bounds = array<i64: 1, 2, 16, 16>}]} {
    %c0_i32 = arith.constant 0 : i32
    %0 = arith.cmpi eq, %arg2, %c0_i32 : i32
    %1 = arith.extui %0 : i1 to i32
    %c0_i32_0 = arith.constant 0 : i32
    %2 = arith.cmpi ne, %1, %c0_i32_0 : i32
    scf.if %2 {
      %c0_193 = arith.constant 0 : index
      %c0_194 = arith.constant 0 : index
      %c0_195 = arith.constant 0 : index
      %c0_196 = arith.constant 0 : index
      %350 = vector.load %arg9[%c0_193, %c0_194, %c0_195, %c0_196] : memref<1x2x16x16xf32, #tpu.memory_space<vmem>>, vector<1x1x16x16xf32>
      %351 = vector.shape_cast %350 : vector<1x1x16x16xf32> to vector<16x16xf32>
      %c0_197 = arith.constant 0 : index
      %c0_198 = arith.constant 0 : index
      %352 = vector.load %arg17[%c0_197, %c0_198] : memref<16x32xf32, #tpu.memory_space<vmem>>, vector<16x16xf32>
      tpu.vector_store %arg17[%c0_197, %c0_198], %351 {strides = array<i32>} : memref<16x32xf32, #tpu.memory_space<vmem>>, vector<16x16xf32>,
      %c0_199 = arith.constant 0 : index
      %c1 = arith.constant 1 : index
      %c0_200 = arith.constant 0 : index
      %c0_201 = arith.constant 0 : index
      %353 = vector.load %arg9[%c0_199, %c1, %c0_200, %c0_201] : memref<1x2x16x16xf32, #tpu.memory_space<vmem>>, vector<1x1x16x16xf32>
      %354 = vector.shape_cast %353 : vector<1x1x16x16xf32> to vector<16x16xf32>
      %c0_202 = arith.constant 0 : index
      %c16_203 = arith.constant 16 : index
      %355 = vector.load %arg17[%c0_202, %c16_203] : memref<16x32xf32, #tpu.memory_space<vmem>>, vector<16x16xf32>
      tpu.vector_store %arg17[%c0_202, %c16_203], %354 {strides = array<i32>} : memref<16x32xf32, #tpu.memory_space<vmem>>, vector<16x16xf32>,
    } else {
    }
    %c0 = arith.constant 0 : index
    %c0_1 = arith.constant 0 : index
    %c0_2 = arith.constant 0 : index
    %3 = vector.load %arg4[%c0, %c0_1, %c0_2] : memref<1x8x32xf32, #tpu.memory_space<vmem>>, vector<1x8x16xf32>
    %4 = vector.shape_cast %3 : vector<1x8x16xf32> to vector<8x16xf32>
    %5 = math.exp %4 : vector<8x16xf32>
    %6 = vector.shape_cast %5 : vector<8x16xf32> to vector<8x16x1xf32>
    %7 = vector.shape_cast %6 : vector<8x16x1xf32> to vector<8x16x1xf32>
    %8 = vector.broadcast %7 : vector<8x16x1xf32> to vector<8x16x16xf32>
    %c0_3 = arith.constant 0 : index
    %c0_4 = arith.constant 0 : index
    %c0_5 = arith.constant 0 : index
    %9 = vector.load %arg12[%c0_3, %c0_4, %c0_5] : memref<8x16x32xf32, #tpu.memory_space<vmem>>, vector<8x16x16xf32>
    tpu.vector_store %arg12[%c0_3, %c0_4, %c0_5], %8 {strides = array<i32>} : memref<8x16x32xf32, #tpu.memory_space<vmem>>, vector<8x16x16xf32>,
    %c0_6 = arith.constant 0 : index
    %c0_7 = arith.constant 0 : index
    %c16 = arith.constant 16 : index
    %10 = vector.load %arg4[%c0_6, %c0_7, %c16] : memref<1x8x32xf32, #tpu.memory_space<vmem>>, vector<1x8x16xf32>
    %11 = vector.shape_cast %10 : vector<1x8x16xf32> to vector<8x16xf32>
    %12 = math.exp %11 : vector<8x16xf32>
    %13 = vector.shape_cast %12 : vector<8x16xf32> to vector<8x16x1xf32>
    %14 = vector.shape_cast %13 : vector<8x16x1xf32> to vector<8x16x1xf32>
    %15 = vector.broadcast %14 : vector<8x16x1xf32> to vector<8x16x16xf32>
    %c0_8 = arith.constant 0 : index
    %c0_9 = arith.constant 0 : index
    %c16_10 = arith.constant 16 : index
    %16 = vector.load %arg12[%c0_8, %c0_9, %c16_10] : memref<8x16x32xf32, #tpu.memory_space<vmem>>, vector<8x16x16xf32>
    tpu.vector_store %arg12[%c0_8, %c0_9, %c16_10], %15 {strides = array<i32>} : memref<8x16x32xf32, #tpu.memory_space<vmem>>, vector<8x16x16xf32>,
    %c0_11 = arith.constant 0 : index
    %c0_12 = arith.constant 0 : index
    %c0_13 = arith.constant 0 : index
    %17 = vector.load %arg7[%c0_11, %c0_12, %c0_13] : memref<1x8x32xf32, #tpu.memory_space<vmem>>, vector<1x8x16xf32>
    %18 = vector.shape_cast %17 : vector<1x8x16xf32> to vector<8x16xf32>
    %19 = vector.shape_cast %18 : vector<8x16xf32> to vector<8x16x1xf32>
    %20 = vector.shape_cast %19 : vector<8x16x1xf32> to vector<8x16x1xf32>
    %21 = vector.broadcast %20 : vector<8x16x1xf32> to vector<8x16x16xf32>
    %c0_14 = arith.constant 0 : index
    %c0_15 = arith.constant 0 : index
    %c0_16 = arith.constant 0 : index
    %22 = vector.load %arg13[%c0_14, %c0_15, %c0_16] : memref<8x16x32xf32, #tpu.memory_space<vmem>>, vector<8x16x16xf32>
    tpu.vector_store %arg13[%c0_14, %c0_15, %c0_16], %21 {strides = array<i32>} : memref<8x16x32xf32, #tpu.memory_space<vmem>>, vector<8x16x16xf32>,
    %c0_17 = arith.constant 0 : index
    %c0_18 = arith.constant 0 : index
    %c16_19 = arith.constant 16 : index
    %23 = vector.load %arg7[%c0_17, %c0_18, %c16_19] : memref<1x8x32xf32, #tpu.memory_space<vmem>>, vector<1x8x16xf32>
    %24 = vector.shape_cast %23 : vector<1x8x16xf32> to vector<8x16xf32>
    %25 = vector.shape_cast %24 : vector<8x16xf32> to vector<8x16x1xf32>
    %26 = vector.shape_cast %25 : vector<8x16x1xf32> to vector<8x16x1xf32>
    %27 = vector.broadcast %26 : vector<8x16x1xf32> to vector<8x16x16xf32>
    %c0_20 = arith.constant 0 : index
    %c0_21 = arith.constant 0 : index
    %c16_22 = arith.constant 16 : index
    %28 = vector.load %arg13[%c0_20, %c0_21, %c16_22] : memref<8x16x32xf32, #tpu.memory_space<vmem>>, vector<8x16x16xf32>
    tpu.vector_store %arg13[%c0_20, %c0_21, %c16_22], %27 {strides = array<i32>} : memref<8x16x32xf32, #tpu.memory_space<vmem>>, vector<8x16x16xf32>,
    %c0_23 = arith.constant 0 : index
    %c0_24 = arith.constant 0 : index
    %c0_25 = arith.constant 0 : index
    %29 = vector.load %arg8[%c0_23, %c0_24, %c0_25] : memref<1x8x32xf32, #tpu.memory_space<vmem>>, vector<1x8x16xf32>
    %30 = vector.shape_cast %29 : vector<1x8x16xf32> to vector<8x16xf32>
    %31 = vector.shape_cast %30 : vector<8x16xf32> to vector<8x16x1xf32>
    %32 = vector.shape_cast %31 : vector<8x16x1xf32> to vector<8x16x1xf32>
    %33 = vector.broadcast %32 : vector<8x16x1xf32> to vector<8x16x16xf32>
    %c0_26 = arith.constant 0 : index
    %c0_27 = arith.constant 0 : index
    %c0_28 = arith.constant 0 : index
    %34 = vector.load %arg14[%c0_26, %c0_27, %c0_28] : memref<8x16x32xf32, #tpu.memory_space<vmem>>, vector<8x16x16xf32>
    tpu.vector_store %arg14[%c0_26, %c0_27, %c0_28], %33 {strides = array<i32>} : memref<8x16x32xf32, #tpu.memory_space<vmem>>, vector<8x16x16xf32>,
    %c0_29 = arith.constant 0 : index
    %c0_30 = arith.constant 0 : index
    %c16_31 = arith.constant 16 : index
    %35 = vector.load %arg8[%c0_29, %c0_30, %c16_31] : memref<1x8x32xf32, #tpu.memory_space<vmem>>, vector<1x8x16xf32>
    %36 = vector.shape_cast %35 : vector<1x8x16xf32> to vector<8x16xf32>
    %37 = vector.shape_cast %36 : vector<8x16xf32> to vector<8x16x1xf32>
    %38 = vector.shape_cast %37 : vector<8x16x1xf32> to vector<8x16x1xf32>
    %39 = vector.broadcast %38 : vector<8x16x1xf32> to vector<8x16x16xf32>
    %c0_32 = arith.constant 0 : index
    %c0_33 = arith.constant 0 : index
    %c16_34 = arith.constant 16 : index
    %40 = vector.load %arg14[%c0_32, %c0_33, %c16_34] : memref<8x16x32xf32, #tpu.memory_space<vmem>>, vector<8x16x16xf32>
    tpu.vector_store %arg14[%c0_32, %c0_33, %c16_34], %39 {strides = array<i32>} : memref<8x16x32xf32, #tpu.memory_space<vmem>>, vector<8x16x16xf32>,
    %c0_35 = arith.constant 0 : index
    %c0_36 = arith.constant 0 : index
    %c0_37 = arith.constant 0 : index
    %41 = vector.load %arg5[%c0_35, %c0_36, %c0_37] : memref<1x8x32xf32, #tpu.memory_space<vmem>>, vector<1x8x16xf32>
    %42 = vector.shape_cast %41 : vector<1x8x16xf32> to vector<8x16xf32>
    %43 = vector.shape_cast %42 : vector<8x16xf32> to vector<8x16x1xf32>
    %44 = vector.shape_cast %43 : vector<8x16x1xf32> to vector<8x16x1xf32>
    %45 = vector.broadcast %44 : vector<8x16x1xf32> to vector<8x16x16xf32>
    %c0_38 = arith.constant 0 : index
    %c0_39 = arith.constant 0 : index
    %c0_40 = arith.constant 0 : index
    %46 = vector.load %arg15[%c0_38, %c0_39, %c0_40] : memref<8x16x32xf32, #tpu.memory_space<vmem>>, vector<8x16x16xf32>
    tpu.vector_store %arg15[%c0_38, %c0_39, %c0_40], %45 {strides = array<i32>} : memref<8x16x32xf32, #tpu.memory_space<vmem>>, vector<8x16x16xf32>,
    %c0_41 = arith.constant 0 : index
    %c0_42 = arith.constant 0 : index
    %c16_43 = arith.constant 16 : index
    %47 = vector.load %arg5[%c0_41, %c0_42, %c16_43] : memref<1x8x32xf32, #tpu.memory_space<vmem>>, vector<1x8x16xf32>
    %48 = vector.shape_cast %47 : vector<1x8x16xf32> to vector<8x16xf32>
    %49 = vector.shape_cast %48 : vector<8x16xf32> to vector<8x16x1xf32>
    %50 = vector.shape_cast %49 : vector<8x16x1xf32> to vector<8x16x1xf32>
    %51 = vector.broadcast %50 : vector<8x16x1xf32> to vector<8x16x16xf32>
    %c0_44 = arith.constant 0 : index
    %c0_45 = arith.constant 0 : index
    %c16_46 = arith.constant 16 : index
    %52 = vector.load %arg15[%c0_44, %c0_45, %c16_46] : memref<8x16x32xf32, #tpu.memory_space<vmem>>, vector<8x16x16xf32>
    tpu.vector_store %arg15[%c0_44, %c0_45, %c16_46], %51 {strides = array<i32>} : memref<8x16x32xf32, #tpu.memory_space<vmem>>, vector<8x16x16xf32>,
    %c0_47 = arith.constant 0 : index
    %c0_48 = arith.constant 0 : index
    %c0_49 = arith.constant 0 : index
    %53 = vector.load %arg3[%c0_47, %c0_48, %c0_49] : memref<1x8x32xf32, #tpu.memory_space<vmem>>, vector<1x8x16xf32>
    %54 = vector.shape_cast %53 : vector<1x8x16xf32> to vector<8x16xf32>
    %55 = vector.shape_cast %54 : vector<8x16xf32> to vector<8x16x1xf32>
    %56 = vector.shape_cast %55 : vector<8x16x1xf32> to vector<8x16x1xf32>
    %57 = vector.broadcast %56 : vector<8x16x1xf32> to vector<8x16x16xf32>
    %c0_50 = arith.constant 0 : index
    %c0_51 = arith.constant 0 : index
    %c0_52 = arith.constant 0 : index
    %58 = vector.load %arg16[%c0_50, %c0_51, %c0_52] : memref<8x16x32xf32, #tpu.memory_space<vmem>>, vector<8x16x16xf32>
    tpu.vector_store %arg16[%c0_50, %c0_51, %c0_52], %57 {strides = array<i32>} : memref<8x16x32xf32, #tpu.memory_space<vmem>>, vector<8x16x16xf32>,
    %c0_53 = arith.constant 0 : index
    %c0_54 = arith.constant 0 : index
    %c16_55 = arith.constant 16 : index
    %59 = vector.load %arg3[%c0_53, %c0_54, %c16_55] : memref<1x8x32xf32, #tpu.memory_space<vmem>>, vector<1x8x16xf32>
    %60 = vector.shape_cast %59 : vector<1x8x16xf32> to vector<8x16xf32>
    %61 = vector.shape_cast %60 : vector<8x16xf32> to vector<8x16x1xf32>
    %62 = vector.shape_cast %61 : vector<8x16x1xf32> to vector<8x16x1xf32>
    %63 = vector.broadcast %62 : vector<8x16x1xf32> to vector<8x16x16xf32>
    %c0_56 = arith.constant 0 : index
    %c0_57 = arith.constant 0 : index
    %c16_58 = arith.constant 16 : index
    %64 = vector.load %arg16[%c0_56, %c0_57, %c16_58] : memref<8x16x32xf32, #tpu.memory_space<vmem>>, vector<8x16x16xf32>
    tpu.vector_store %arg16[%c0_56, %c0_57, %c16_58], %63 {strides = array<i32>} : memref<8x16x32xf32, #tpu.memory_space<vmem>>, vector<8x16x16xf32>,
    %c0_59 = arith.constant 0 : index
    %c0_60 = arith.constant 0 : index
    %65 = vector.load %arg17[%c0_59, %c0_60] : memref<16x32xf32, #tpu.memory_space<vmem>>, vector<16x32xf32>
    %c0_i32_61 = arith.constant 0 : i32
    %66 = arith.index_cast %c0_i32_61 : i32 to index
    %c0_62 = arith.constant 0 : index
    %c0_63 = arith.constant 0 : index
    %67 = vector.load %arg13[%66, %c0_62, %c0_63] : memref<8x16x32xf32, #tpu.memory_space<vmem>>, vector<1x16x32xf32>
    %68 = vector.shape_cast %67 : vector<1x16x32xf32> to vector<16x32xf32>
    %69 = arith.mulf %68, %65 : vector<16x32xf32>
    %cst = arith.constant dense<0.000000e+00> : vector<32xf32>
    %70 = vector.multi_reduction <add>, %69, %cst [0] : vector<16x32xf32> to vector<32xf32>
    %71 = vector.shape_cast %70 : vector<32xf32> to vector<1x32xf32>
    %72 = arith.index_cast %c0_i32_61 : i32 to index
    %c0_64 = arith.constant 0 : index
    %c0_65 = arith.constant 0 : index
    %73 = vector.load %arg12[%72, %c0_64, %c0_65] : memref<8x16x32xf32, #tpu.memory_space<vmem>>, vector<1x16x32xf32>
    %74 = vector.shape_cast %73 : vector<1x16x32xf32> to vector<16x32xf32>
    %75 = arith.mulf %65, %74 : vector<16x32xf32>
    %76 = arith.index_cast %c0_i32_61 : i32 to index
    %c0_66 = arith.constant 0 : index
    %c0_67 = arith.constant 0 : index
    %77 = vector.load %arg14[%76, %c0_66, %c0_67] : memref<8x16x32xf32, #tpu.memory_space<vmem>>, vector<1x16x32xf32>
    %78 = vector.shape_cast %77 : vector<1x16x32xf32> to vector<16x32xf32>
    %79 = vector.broadcast %71 : vector<1x32xf32> to vector<16x32xf32>
    %80 = arith.mulf %78, %79 : vector<16x32xf32>
    %81 = arith.addf %75, %80 : vector<16x32xf32>
    %82 = arith.index_cast %c0_i32_61 : i32 to index
    %c0_68 = arith.constant 0 : index
    %c0_69 = arith.constant 0 : index
    %83 = vector.load %arg15[%82, %c0_68, %c0_69] : memref<8x16x32xf32, #tpu.memory_space<vmem>>, vector<1x16x32xf32>
    %84 = vector.shape_cast %83 : vector<1x16x32xf32> to vector<16x32xf32>
    %c0_70 = arith.constant 0 : index
    %85 = arith.index_cast %c0_i32_61 : i32 to index
    %c0_71 = arith.constant 0 : index
    %86 = vector.load %arg6[%c0_70, %85, %c0_71] : memref<1x8x32xf32, #tpu.memory_space<vmem>>, vector<1x1x32xf32>
    %87 = vector.shape_cast %86 : vector<1x1x32xf32> to vector<32xf32>
    %88 = vector.shape_cast %87 : vector<32xf32> to vector<1x32xf32>
    %89 = vector.broadcast %88 : vector<1x32xf32> to vector<16x32xf32>
    %90 = arith.mulf %84, %89 : vector<16x32xf32>
    %91 = arith.addf %81, %90 : vector<16x32xf32>
    %92 = arith.index_cast %c0_i32_61 : i32 to index
    %c0_72 = arith.constant 0 : index
    %c0_73 = arith.constant 0 : index
    %93 = vector.load %arg16[%92, %c0_72, %c0_73] : memref<8x16x32xf32, #tpu.memory_space<vmem>>, vector<1x16x32xf32>
    %94 = vector.shape_cast %93 : vector<1x16x32xf32> to vector<16x32xf32>
    %95 = arith.mulf %94, %91 : vector<16x32xf32>
    %cst_74 = arith.constant dense<0.000000e+00> : vector<32xf32>
    %96 = vector.multi_reduction <add>, %95, %cst_74 [0] : vector<16x32xf32> to vector<32xf32>
    %c0_75 = arith.constant 0 : index
    %97 = arith.index_cast %c0_i32_61 : i32 to index
    %c0_76 = arith.constant 0 : index
    %98 = vector.load %arg10[%c0_75, %97, %c0_76] : memref<1x8x32xf32, #tpu.memory_space<vmem>>, vector<1x1x32xf32>
    %99 = vector.shape_cast %98 : vector<1x1x32xf32> to vector<32xf32>
    %100 = vector.shape_cast %96 : vector<32xf32> to vector<1x1x32xf32>
    tpu.vector_store %arg10[%c0_75, %97, %c0_76], %100 {strides = array<i32>} : memref<1x8x32xf32, #tpu.memory_space<vmem>>, vector<1x1x32xf32>,
    %c1_i32 = arith.constant 1 : i32
    %101 = arith.index_cast %c1_i32 : i32 to index
    %c0_77 = arith.constant 0 : index
    %c0_78 = arith.constant 0 : index
    %102 = vector.load %arg13[%101, %c0_77, %c0_78] : memref<8x16x32xf32, #tpu.memory_space<vmem>>, vector<1x16x32xf32>
    %103 = vector.shape_cast %102 : vector<1x16x32xf32> to vector<16x32xf32>
    %104 = arith.mulf %103, %91 : vector<16x32xf32>
    %cst_79 = arith.constant dense<0.000000e+00> : vector<32xf32>
    %105 = vector.multi_reduction <add>, %104, %cst_79 [0] : vector<16x32xf32> to vector<32xf32>
    %106 = vector.shape_cast %105 : vector<32xf32> to vector<1x32xf32>
    %107 = arith.index_cast %c1_i32 : i32 to index
    %c0_80 = arith.constant 0 : index
    %c0_81 = arith.constant 0 : index
    %108 = vector.load %arg12[%107, %c0_80, %c0_81] : memref<8x16x32xf32, #tpu.memory_space<vmem>>, vector<1x16x32xf32>
    %109 = vector.shape_cast %108 : vector<1x16x32xf32> to vector<16x32xf32>
    %110 = arith.mulf %91, %109 : vector<16x32xf32>
    %111 = arith.index_cast %c1_i32 : i32 to index
    %c0_82 = arith.constant 0 : index
    %c0_83 = arith.constant 0 : index
    %112 = vector.load %arg14[%111, %c0_82, %c0_83] : memref<8x16x32xf32, #tpu.memory_space<vmem>>, vector<1x16x32xf32>
    %113 = vector.shape_cast %112 : vector<1x16x32xf32> to vector<16x32xf32>
    %114 = vector.broadcast %106 : vector<1x32xf32> to vector<16x32xf32>
    %115 = arith.mulf %113, %114 : vector<16x32xf32>
    %116 = arith.addf %110, %115 : vector<16x32xf32>
    %117 = arith.index_cast %c1_i32 : i32 to index
    %c0_84 = arith.constant 0 : index
    %c0_85 = arith.constant 0 : index
    %118 = vector.load %arg15[%117, %c0_84, %c0_85] : memref<8x16x32xf32, #tpu.memory_space<vmem>>, vector<1x16x32xf32>
    %119 = vector.shape_cast %118 : vector<1x16x32xf32> to vector<16x32xf32>
    %c0_86 = arith.constant 0 : index
    %120 = arith.index_cast %c1_i32 : i32 to index
    %c0_87 = arith.constant 0 : index
    %121 = vector.load %arg6[%c0_86, %120, %c0_87] : memref<1x8x32xf32, #tpu.memory_space<vmem>>, vector<1x1x32xf32>
    %122 = vector.shape_cast %121 : vector<1x1x32xf32> to vector<32xf32>
    %123 = vector.shape_cast %122 : vector<32xf32> to vector<1x32xf32>
    %124 = vector.broadcast %123 : vector<1x32xf32> to vector<16x32xf32>
    %125 = arith.mulf %119, %124 : vector<16x32xf32>
    %126 = arith.addf %116, %125 : vector<16x32xf32>
    %127 = arith.index_cast %c1_i32 : i32 to index
    %c0_88 = arith.constant 0 : index
    %c0_89 = arith.constant 0 : index
    %128 = vector.load %arg16[%127, %c0_88, %c0_89] : memref<8x16x32xf32, #tpu.memory_space<vmem>>, vector<1x16x32xf32>
    %129 = vector.shape_cast %128 : vector<1x16x32xf32> to vector<16x32xf32>
    %130 = arith.mulf %129, %126 : vector<16x32xf32>
    %cst_90 = arith.constant dense<0.000000e+00> : vector<32xf32>
    %131 = vector.multi_reduction <add>, %130, %cst_90 [0] : vector<16x32xf32> to vector<32xf32>
    %c0_91 = arith.constant 0 : index
    %132 = arith.index_cast %c1_i32 : i32 to index
    %c0_92 = arith.constant 0 : index
    %133 = vector.load %arg10[%c0_91, %132, %c0_92] : memref<1x8x32xf32, #tpu.memory_space<vmem>>, vector<1x1x32xf32>
    %134 = vector.shape_cast %133 : vector<1x1x32xf32> to vector<32xf32>
    %135 = vector.shape_cast %131 : vector<32xf32> to vector<1x1x32xf32>
    tpu.vector_store %arg10[%c0_91, %132, %c0_92], %135 {strides = array<i32>} : memref<1x8x32xf32, #tpu.memory_space<vmem>>, vector<1x1x32xf32>,
    %c2_i32 = arith.constant 2 : i32
    %136 = arith.index_cast %c2_i32 : i32 to index
    %c0_93 = arith.constant 0 : index
    %c0_94 = arith.constant 0 : index
    %137 = vector.load %arg13[%136, %c0_93, %c0_94] : memref<8x16x32xf32, #tpu.memory_space<vmem>>, vector<1x16x32xf32>
    %138 = vector.shape_cast %137 : vector<1x16x32xf32> to vector<16x32xf32>
    %139 = arith.mulf %138, %126 : vector<16x32xf32>
    %cst_95 = arith.constant dense<0.000000e+00> : vector<32xf32>
    %140 = vector.multi_reduction <add>, %139, %cst_95 [0] : vector<16x32xf32> to vector<32xf32>
    %141 = vector.shape_cast %140 : vector<32xf32> to vector<1x32xf32>
    %142 = arith.index_cast %c2_i32 : i32 to index
    %c0_96 = arith.constant 0 : index
    %c0_97 = arith.constant 0 : index
    %143 = vector.load %arg12[%142, %c0_96, %c0_97] : memref<8x16x32xf32, #tpu.memory_space<vmem>>, vector<1x16x32xf32>
    %144 = vector.shape_cast %143 : vector<1x16x32xf32> to vector<16x32xf32>
    %145 = arith.mulf %126, %144 : vector<16x32xf32>
    %146 = arith.index_cast %c2_i32 : i32 to index
    %c0_98 = arith.constant 0 : index
    %c0_99 = arith.constant 0 : index
    %147 = vector.load %arg14[%146, %c0_98, %c0_99] : memref<8x16x32xf32, #tpu.memory_space<vmem>>, vector<1x16x32xf32>
    %148 = vector.shape_cast %147 : vector<1x16x32xf32> to vector<16x32xf32>
    %149 = vector.broadcast %141 : vector<1x32xf32> to vector<16x32xf32>
    %150 = arith.mulf %148, %149 : vector<16x32xf32>
    %151 = arith.addf %145, %150 : vector<16x32xf32>
    %152 = arith.index_cast %c2_i32 : i32 to index
    %c0_100 = arith.constant 0 : index
    %c0_101 = arith.constant 0 : index
    %153 = vector.load %arg15[%152, %c0_100, %c0_101] : memref<8x16x32xf32, #tpu.memory_space<vmem>>, vector<1x16x32xf32>
    %154 = vector.shape_cast %153 : vector<1x16x32xf32> to vector<16x32xf32>
    %c0_102 = arith.constant 0 : index
    %155 = arith.index_cast %c2_i32 : i32 to index
    %c0_103 = arith.constant 0 : index
    %156 = vector.load %arg6[%c0_102, %155, %c0_103] : memref<1x8x32xf32, #tpu.memory_space<vmem>>, vector<1x1x32xf32>
    %157 = vector.shape_cast %156 : vector<1x1x32xf32> to vector<32xf32>
    %158 = vector.shape_cast %157 : vector<32xf32> to vector<1x32xf32>
    %159 = vector.broadcast %158 : vector<1x32xf32> to vector<16x32xf32>
    %160 = arith.mulf %154, %159 : vector<16x32xf32>
    %161 = arith.addf %151, %160 : vector<16x32xf32>
    %162 = arith.index_cast %c2_i32 : i32 to index
    %c0_104 = arith.constant 0 : index
    %c0_105 = arith.constant 0 : index
    %163 = vector.load %arg16[%162, %c0_104, %c0_105] : memref<8x16x32xf32, #tpu.memory_space<vmem>>, vector<1x16x32xf32>
    %164 = vector.shape_cast %163 : vector<1x16x32xf32> to vector<16x32xf32>
    %165 = arith.mulf %164, %161 : vector<16x32xf32>
    %cst_106 = arith.constant dense<0.000000e+00> : vector<32xf32>
    %166 = vector.multi_reduction <add>, %165, %cst_106 [0] : vector<16x32xf32> to vector<32xf32>
    %c0_107 = arith.constant 0 : index
    %167 = arith.index_cast %c2_i32 : i32 to index
    %c0_108 = arith.constant 0 : index
    %168 = vector.load %arg10[%c0_107, %167, %c0_108] : memref<1x8x32xf32, #tpu.memory_space<vmem>>, vector<1x1x32xf32>
    %169 = vector.shape_cast %168 : vector<1x1x32xf32> to vector<32xf32>
    %170 = vector.shape_cast %166 : vector<32xf32> to vector<1x1x32xf32>
    tpu.vector_store %arg10[%c0_107, %167, %c0_108], %170 {strides = array<i32>} : memref<1x8x32xf32, #tpu.memory_space<vmem>>, vector<1x1x32xf32>,
    %c3_i32 = arith.constant 3 : i32
    %171 = arith.index_cast %c3_i32 : i32 to index
    %c0_109 = arith.constant 0 : index
    %c0_110 = arith.constant 0 : index
    %172 = vector.load %arg13[%171, %c0_109, %c0_110] : memref<8x16x32xf32, #tpu.memory_space<vmem>>, vector<1x16x32xf32>
    %173 = vector.shape_cast %172 : vector<1x16x32xf32> to vector<16x32xf32>
    %174 = arith.mulf %173, %161 : vector<16x32xf32>
    %cst_111 = arith.constant dense<0.000000e+00> : vector<32xf32>
    %175 = vector.multi_reduction <add>, %174, %cst_111 [0] : vector<16x32xf32> to vector<32xf32>
    %176 = vector.shape_cast %175 : vector<32xf32> to vector<1x32xf32>
    %177 = arith.index_cast %c3_i32 : i32 to index
    %c0_112 = arith.constant 0 : index
    %c0_113 = arith.constant 0 : index
    %178 = vector.load %arg12[%177, %c0_112, %c0_113] : memref<8x16x32xf32, #tpu.memory_space<vmem>>, vector<1x16x32xf32>
    %179 = vector.shape_cast %178 : vector<1x16x32xf32> to vector<16x32xf32>
    %180 = arith.mulf %161, %179 : vector<16x32xf32>
    %181 = arith.index_cast %c3_i32 : i32 to index
    %c0_114 = arith.constant 0 : index
    %c0_115 = arith.constant 0 : index
    %182 = vector.load %arg14[%181, %c0_114, %c0_115] : memref<8x16x32xf32, #tpu.memory_space<vmem>>, vector<1x16x32xf32>
    %183 = vector.shape_cast %182 : vector<1x16x32xf32> to vector<16x32xf32>
    %184 = vector.broadcast %176 : vector<1x32xf32> to vector<16x32xf32>
    %185 = arith.mulf %183, %184 : vector<16x32xf32>
    %186 = arith.addf %180, %185 : vector<16x32xf32>
    %187 = arith.index_cast %c3_i32 : i32 to index
    %c0_116 = arith.constant 0 : index
    %c0_117 = arith.constant 0 : index
    %188 = vector.load %arg15[%187, %c0_116, %c0_117] : memref<8x16x32xf32, #tpu.memory_space<vmem>>, vector<1x16x32xf32>
    %189 = vector.shape_cast %188 : vector<1x16x32xf32> to vector<16x32xf32>
    %c0_118 = arith.constant 0 : index
    %190 = arith.index_cast %c3_i32 : i32 to index
    %c0_119 = arith.constant 0 : index
    %191 = vector.load %arg6[%c0_118, %190, %c0_119] : memref<1x8x32xf32, #tpu.memory_space<vmem>>, vector<1x1x32xf32>
    %192 = vector.shape_cast %191 : vector<1x1x32xf32> to vector<32xf32>
    %193 = vector.shape_cast %192 : vector<32xf32> to vector<1x32xf32>
    %194 = vector.broadcast %193 : vector<1x32xf32> to vector<16x32xf32>
    %195 = arith.mulf %189, %194 : vector<16x32xf32>
    %196 = arith.addf %186, %195 : vector<16x32xf32>
    %197 = arith.index_cast %c3_i32 : i32 to index
    %c0_120 = arith.constant 0 : index
    %c0_121 = arith.constant 0 : index
    %198 = vector.load %arg16[%197, %c0_120, %c0_121] : memref<8x16x32xf32, #tpu.memory_space<vmem>>, vector<1x16x32xf32>
    %199 = vector.shape_cast %198 : vector<1x16x32xf32> to vector<16x32xf32>
    %200 = arith.mulf %199, %196 : vector<16x32xf32>
    %cst_122 = arith.constant dense<0.000000e+00> : vector<32xf32>
    %201 = vector.multi_reduction <add>, %200, %cst_122 [0] : vector<16x32xf32> to vector<32xf32>
    %c0_123 = arith.constant 0 : index
    %202 = arith.index_cast %c3_i32 : i32 to index
    %c0_124 = arith.constant 0 : index
    %203 = vector.load %arg10[%c0_123, %202, %c0_124] : memref<1x8x32xf32, #tpu.memory_space<vmem>>, vector<1x1x32xf32>
    %204 = vector.shape_cast %203 : vector<1x1x32xf32> to vector<32xf32>
    %205 = vector.shape_cast %201 : vector<32xf32> to vector<1x1x32xf32>
    tpu.vector_store %arg10[%c0_123, %202, %c0_124], %205 {strides = array<i32>} : memref<1x8x32xf32, #tpu.memory_space<vmem>>, vector<1x1x32xf32>,
    %c4_i32 = arith.constant 4 : i32
    %206 = arith.index_cast %c4_i32 : i32 to index
    %c0_125 = arith.constant 0 : index
    %c0_126 = arith.constant 0 : index
    %207 = vector.load %arg13[%206, %c0_125, %c0_126] : memref<8x16x32xf32, #tpu.memory_space<vmem>>, vector<1x16x32xf32>
    %208 = vector.shape_cast %207 : vector<1x16x32xf32> to vector<16x32xf32>
    %209 = arith.mulf %208, %196 : vector<16x32xf32>
    %cst_127 = arith.constant dense<0.000000e+00> : vector<32xf32>
    %210 = vector.multi_reduction <add>, %209, %cst_127 [0] : vector<16x32xf32> to vector<32xf32>
    %211 = vector.shape_cast %210 : vector<32xf32> to vector<1x32xf32>
    %212 = arith.index_cast %c4_i32 : i32 to index
    %c0_128 = arith.constant 0 : index
    %c0_129 = arith.constant 0 : index
    %213 = vector.load %arg12[%212, %c0_128, %c0_129] : memref<8x16x32xf32, #tpu.memory_space<vmem>>, vector<1x16x32xf32>
    %214 = vector.shape_cast %213 : vector<1x16x32xf32> to vector<16x32xf32>
    %215 = arith.mulf %196, %214 : vector<16x32xf32>
    %216 = arith.index_cast %c4_i32 : i32 to index
    %c0_130 = arith.constant 0 : index
    %c0_131 = arith.constant 0 : index
    %217 = vector.load %arg14[%216, %c0_130, %c0_131] : memref<8x16x32xf32, #tpu.memory_space<vmem>>, vector<1x16x32xf32>
    %218 = vector.shape_cast %217 : vector<1x16x32xf32> to vector<16x32xf32>
    %219 = vector.broadcast %211 : vector<1x32xf32> to vector<16x32xf32>
    %220 = arith.mulf %218, %219 : vector<16x32xf32>
    %221 = arith.addf %215, %220 : vector<16x32xf32>
    %222 = arith.index_cast %c4_i32 : i32 to index
    %c0_132 = arith.constant 0 : index
    %c0_133 = arith.constant 0 : index
    %223 = vector.load %arg15[%222, %c0_132, %c0_133] : memref<8x16x32xf32, #tpu.memory_space<vmem>>, vector<1x16x32xf32>
    %224 = vector.shape_cast %223 : vector<1x16x32xf32> to vector<16x32xf32>
    %c0_134 = arith.constant 0 : index
    %225 = arith.index_cast %c4_i32 : i32 to index
    %c0_135 = arith.constant 0 : index
    %226 = vector.load %arg6[%c0_134, %225, %c0_135] : memref<1x8x32xf32, #tpu.memory_space<vmem>>, vector<1x1x32xf32>
    %227 = vector.shape_cast %226 : vector<1x1x32xf32> to vector<32xf32>
    %228 = vector.shape_cast %227 : vector<32xf32> to vector<1x32xf32>
    %229 = vector.broadcast %228 : vector<1x32xf32> to vector<16x32xf32>
    %230 = arith.mulf %224, %229 : vector<16x32xf32>
    %231 = arith.addf %221, %230 : vector<16x32xf32>
    %232 = arith.index_cast %c4_i32 : i32 to index
    %c0_136 = arith.constant 0 : index
    %c0_137 = arith.constant 0 : index
    %233 = vector.load %arg16[%232, %c0_136, %c0_137] : memref<8x16x32xf32, #tpu.memory_space<vmem>>, vector<1x16x32xf32>
    %234 = vector.shape_cast %233 : vector<1x16x32xf32> to vector<16x32xf32>
    %235 = arith.mulf %234, %231 : vector<16x32xf32>
    %cst_138 = arith.constant dense<0.000000e+00> : vector<32xf32>
    %236 = vector.multi_reduction <add>, %235, %cst_138 [0] : vector<16x32xf32> to vector<32xf32>
    %c0_139 = arith.constant 0 : index
    %237 = arith.index_cast %c4_i32 : i32 to index
    %c0_140 = arith.constant 0 : index
    %238 = vector.load %arg10[%c0_139, %237, %c0_140] : memref<1x8x32xf32, #tpu.memory_space<vmem>>, vector<1x1x32xf32>
    %239 = vector.shape_cast %238 : vector<1x1x32xf32> to vector<32xf32>
    %240 = vector.shape_cast %236 : vector<32xf32> to vector<1x1x32xf32>
    tpu.vector_store %arg10[%c0_139, %237, %c0_140], %240 {strides = array<i32>} : memref<1x8x32xf32, #tpu.memory_space<vmem>>, vector<1x1x32xf32>,
    %c5_i32 = arith.constant 5 : i32
    %241 = arith.index_cast %c5_i32 : i32 to index
    %c0_141 = arith.constant 0 : index
    %c0_142 = arith.constant 0 : index
    %242 = vector.load %arg13[%241, %c0_141, %c0_142] : memref<8x16x32xf32, #tpu.memory_space<vmem>>, vector<1x16x32xf32>
    %243 = vector.shape_cast %242 : vector<1x16x32xf32> to vector<16x32xf32>
    %244 = arith.mulf %243, %231 : vector<16x32xf32>
    %cst_143 = arith.constant dense<0.000000e+00> : vector<32xf32>
    %245 = vector.multi_reduction <add>, %244, %cst_143 [0] : vector<16x32xf32> to vector<32xf32>
    %246 = vector.shape_cast %245 : vector<32xf32> to vector<1x32xf32>
    %247 = arith.index_cast %c5_i32 : i32 to index
    %c0_144 = arith.constant 0 : index
    %c0_145 = arith.constant 0 : index
    %248 = vector.load %arg12[%247, %c0_144, %c0_145] : memref<8x16x32xf32, #tpu.memory_space<vmem>>, vector<1x16x32xf32>
    %249 = vector.shape_cast %248 : vector<1x16x32xf32> to vector<16x32xf32>
    %250 = arith.mulf %231, %249 : vector<16x32xf32>
    %251 = arith.index_cast %c5_i32 : i32 to index
    %c0_146 = arith.constant 0 : index
    %c0_147 = arith.constant 0 : index
    %252 = vector.load %arg14[%251, %c0_146, %c0_147] : memref<8x16x32xf32, #tpu.memory_space<vmem>>, vector<1x16x32xf32>
    %253 = vector.shape_cast %252 : vector<1x16x32xf32> to vector<16x32xf32>
    %254 = vector.broadcast %246 : vector<1x32xf32> to vector<16x32xf32>
    %255 = arith.mulf %253, %254 : vector<16x32xf32>
    %256 = arith.addf %250, %255 : vector<16x32xf32>
    %257 = arith.index_cast %c5_i32 : i32 to index
    %c0_148 = arith.constant 0 : index
    %c0_149 = arith.constant 0 : index
    %258 = vector.load %arg15[%257, %c0_148, %c0_149] : memref<8x16x32xf32, #tpu.memory_space<vmem>>, vector<1x16x32xf32>
    %259 = vector.shape_cast %258 : vector<1x16x32xf32> to vector<16x32xf32>
    %c0_150 = arith.constant 0 : index
    %260 = arith.index_cast %c5_i32 : i32 to index
    %c0_151 = arith.constant 0 : index
    %261 = vector.load %arg6[%c0_150, %260, %c0_151] : memref<1x8x32xf32, #tpu.memory_space<vmem>>, vector<1x1x32xf32>
    %262 = vector.shape_cast %261 : vector<1x1x32xf32> to vector<32xf32>
    %263 = vector.shape_cast %262 : vector<32xf32> to vector<1x32xf32>
    %264 = vector.broadcast %263 : vector<1x32xf32> to vector<16x32xf32>
    %265 = arith.mulf %259, %264 : vector<16x32xf32>
    %266 = arith.addf %256, %265 : vector<16x32xf32>
    %267 = arith.index_cast %c5_i32 : i32 to index
    %c0_152 = arith.constant 0 : index
    %c0_153 = arith.constant 0 : index
    %268 = vector.load %arg16[%267, %c0_152, %c0_153] : memref<8x16x32xf32, #tpu.memory_space<vmem>>, vector<1x16x32xf32>
    %269 = vector.shape_cast %268 : vector<1x16x32xf32> to vector<16x32xf32>
    %270 = arith.mulf %269, %266 : vector<16x32xf32>
    %cst_154 = arith.constant dense<0.000000e+00> : vector<32xf32>
    %271 = vector.multi_reduction <add>, %270, %cst_154 [0] : vector<16x32xf32> to vector<32xf32>
    %c0_155 = arith.constant 0 : index
    %272 = arith.index_cast %c5_i32 : i32 to index
    %c0_156 = arith.constant 0 : index
    %273 = vector.load %arg10[%c0_155, %272, %c0_156] : memref<1x8x32xf32, #tpu.memory_space<vmem>>, vector<1x1x32xf32>
    %274 = vector.shape_cast %273 : vector<1x1x32xf32> to vector<32xf32>
    %275 = vector.shape_cast %271 : vector<32xf32> to vector<1x1x32xf32>
    tpu.vector_store %arg10[%c0_155, %272, %c0_156], %275 {strides = array<i32>} : memref<1x8x32xf32, #tpu.memory_space<vmem>>, vector<1x1x32xf32>,
    %c6_i32 = arith.constant 6 : i32
    %276 = arith.index_cast %c6_i32 : i32 to index
    %c0_157 = arith.constant 0 : index
    %c0_158 = arith.constant 0 : index
    %277 = vector.load %arg13[%276, %c0_157, %c0_158] : memref<8x16x32xf32, #tpu.memory_space<vmem>>, vector<1x16x32xf32>
    %278 = vector.shape_cast %277 : vector<1x16x32xf32> to vector<16x32xf32>
    %279 = arith.mulf %278, %266 : vector<16x32xf32>
    %cst_159 = arith.constant dense<0.000000e+00> : vector<32xf32>
    %280 = vector.multi_reduction <add>, %279, %cst_159 [0] : vector<16x32xf32> to vector<32xf32>
    %281 = vector.shape_cast %280 : vector<32xf32> to vector<1x32xf32>
    %282 = arith.index_cast %c6_i32 : i32 to index
    %c0_160 = arith.constant 0 : index
    %c0_161 = arith.constant 0 : index
    %283 = vector.load %arg12[%282, %c0_160, %c0_161] : memref<8x16x32xf32, #tpu.memory_space<vmem>>, vector<1x16x32xf32>
    %284 = vector.shape_cast %283 : vector<1x16x32xf32> to vector<16x32xf32>
    %285 = arith.mulf %266, %284 : vector<16x32xf32>
    %286 = arith.index_cast %c6_i32 : i32 to index
    %c0_162 = arith.constant 0 : index
    %c0_163 = arith.constant 0 : index
    %287 = vector.load %arg14[%286, %c0_162, %c0_163] : memref<8x16x32xf32, #tpu.memory_space<vmem>>, vector<1x16x32xf32>
    %288 = vector.shape_cast %287 : vector<1x16x32xf32> to vector<16x32xf32>
    %289 = vector.broadcast %281 : vector<1x32xf32> to vector<16x32xf32>
    %290 = arith.mulf %288, %289 : vector<16x32xf32>
    %291 = arith.addf %285, %290 : vector<16x32xf32>
    %292 = arith.index_cast %c6_i32 : i32 to index
    %c0_164 = arith.constant 0 : index
    %c0_165 = arith.constant 0 : index
    %293 = vector.load %arg15[%292, %c0_164, %c0_165] : memref<8x16x32xf32, #tpu.memory_space<vmem>>, vector<1x16x32xf32>
    %294 = vector.shape_cast %293 : vector<1x16x32xf32> to vector<16x32xf32>
    %c0_166 = arith.constant 0 : index
    %295 = arith.index_cast %c6_i32 : i32 to index
    %c0_167 = arith.constant 0 : index
    %296 = vector.load %arg6[%c0_166, %295, %c0_167] : memref<1x8x32xf32, #tpu.memory_space<vmem>>, vector<1x1x32xf32>
    %297 = vector.shape_cast %296 : vector<1x1x32xf32> to vector<32xf32>
    %298 = vector.shape_cast %297 : vector<32xf32> to vector<1x32xf32>
    %299 = vector.broadcast %298 : vector<1x32xf32> to vector<16x32xf32>
    %300 = arith.mulf %294, %299 : vector<16x32xf32>
    %301 = arith.addf %291, %300 : vector<16x32xf32>
    %302 = arith.index_cast %c6_i32 : i32 to index
    %c0_168 = arith.constant 0 : index
    %c0_169 = arith.constant 0 : index
    %303 = vector.load %arg16[%302, %c0_168, %c0_169] : memref<8x16x32xf32, #tpu.memory_space<vmem>>, vector<1x16x32xf32>
    %304 = vector.shape_cast %303 : vector<1x16x32xf32> to vector<16x32xf32>
    %305 = arith.mulf %304, %301 : vector<16x32xf32>
    %cst_170 = arith.constant dense<0.000000e+00> : vector<32xf32>
    %306 = vector.multi_reduction <add>, %305, %cst_170 [0] : vector<16x32xf32> to vector<32xf32>
    %c0_171 = arith.constant 0 : index
    %307 = arith.index_cast %c6_i32 : i32 to index
    %c0_172 = arith.constant 0 : index
    %308 = vector.load %arg10[%c0_171, %307, %c0_172] : memref<1x8x32xf32, #tpu.memory_space<vmem>>, vector<1x1x32xf32>
    %309 = vector.shape_cast %308 : vector<1x1x32xf32> to vector<32xf32>
    %310 = vector.shape_cast %306 : vector<32xf32> to vector<1x1x32xf32>
    tpu.vector_store %arg10[%c0_171, %307, %c0_172], %310 {strides = array<i32>} : memref<1x8x32xf32, #tpu.memory_space<vmem>>, vector<1x1x32xf32>,
    %c7_i32 = arith.constant 7 : i32
    %311 = arith.index_cast %c7_i32 : i32 to index
    %c0_173 = arith.constant 0 : index
    %c0_174 = arith.constant 0 : index
    %312 = vector.load %arg13[%311, %c0_173, %c0_174] : memref<8x16x32xf32, #tpu.memory_space<vmem>>, vector<1x16x32xf32>
    %313 = vector.shape_cast %312 : vector<1x16x32xf32> to vector<16x32xf32>
    %314 = arith.mulf %313, %301 : vector<16x32xf32>
    %cst_175 = arith.constant dense<0.000000e+00> : vector<32xf32>
    %315 = vector.multi_reduction <add>, %314, %cst_175 [0] : vector<16x32xf32> to vector<32xf32>
    %316 = vector.shape_cast %315 : vector<32xf32> to vector<1x32xf32>
    %317 = arith.index_cast %c7_i32 : i32 to index
    %c0_176 = arith.constant 0 : index
    %c0_177 = arith.constant 0 : index
    %318 = vector.load %arg12[%317, %c0_176, %c0_177] : memref<8x16x32xf32, #tpu.memory_space<vmem>>, vector<1x16x32xf32>
    %319 = vector.shape_cast %318 : vector<1x16x32xf32> to vector<16x32xf32>
    %320 = arith.mulf %301, %319 : vector<16x32xf32>
    %321 = arith.index_cast %c7_i32 : i32 to index
    %c0_178 = arith.constant 0 : index
    %c0_179 = arith.constant 0 : index
    %322 = vector.load %arg14[%321, %c0_178, %c0_179] : memref<8x16x32xf32, #tpu.memory_space<vmem>>, vector<1x16x32xf32>
    %323 = vector.shape_cast %322 : vector<1x16x32xf32> to vector<16x32xf32>
    %324 = vector.broadcast %316 : vector<1x32xf32> to vector<16x32xf32>
    %325 = arith.mulf %323, %324 : vector<16x32xf32>
    %326 = arith.addf %320, %325 : vector<16x32xf32>
    %327 = arith.index_cast %c7_i32 : i32 to index
    %c0_180 = arith.constant 0 : index
    %c0_181 = arith.constant 0 : index
    %328 = vector.load %arg15[%327, %c0_180, %c0_181] : memref<8x16x32xf32, #tpu.memory_space<vmem>>, vector<1x16x32xf32>
    %329 = vector.shape_cast %328 : vector<1x16x32xf32> to vector<16x32xf32>
    %c0_182 = arith.constant 0 : index
    %330 = arith.index_cast %c7_i32 : i32 to index
    %c0_183 = arith.constant 0 : index
    %331 = vector.load %arg6[%c0_182, %330, %c0_183] : memref<1x8x32xf32, #tpu.memory_space<vmem>>, vector<1x1x32xf32>
    %332 = vector.shape_cast %331 : vector<1x1x32xf32> to vector<32xf32>
    %333 = vector.shape_cast %332 : vector<32xf32> to vector<1x32xf32>
    %334 = vector.broadcast %333 : vector<1x32xf32> to vector<16x32xf32>
    %335 = arith.mulf %329, %334 : vector<16x32xf32>
    %336 = arith.addf %326, %335 : vector<16x32xf32>
    %337 = arith.index_cast %c7_i32 : i32 to index
    %c0_184 = arith.constant 0 : index
    %c0_185 = arith.constant 0 : index
    %338 = vector.load %arg16[%337, %c0_184, %c0_185] : memref<8x16x32xf32, #tpu.memory_space<vmem>>, vector<1x16x32xf32>
    %339 = vector.shape_cast %338 : vector<1x16x32xf32> to vector<16x32xf32>
    %340 = arith.mulf %339, %336 : vector<16x32xf32>
    %cst_186 = arith.constant dense<0.000000e+00> : vector<32xf32>
    %341 = vector.multi_reduction <add>, %340, %cst_186 [0] : vector<16x32xf32> to vector<32xf32>
    %c0_187 = arith.constant 0 : index
    %342 = arith.index_cast %c7_i32 : i32 to index
    %c0_188 = arith.constant 0 : index
    %343 = vector.load %arg10[%c0_187, %342, %c0_188] : memref<1x8x32xf32, #tpu.memory_space<vmem>>, vector<1x1x32xf32>
    %344 = vector.shape_cast %343 : vector<1x1x32xf32> to vector<32xf32>
    %345 = vector.shape_cast %341 : vector<32xf32> to vector<1x1x32xf32>
    tpu.vector_store %arg10[%c0_187, %342, %c0_188], %345 {strides = array<i32>} : memref<1x8x32xf32, #tpu.memory_space<vmem>>, vector<1x1x32xf32>,
    %c8_i32 = arith.constant 8 : i32
    %c0_189 = arith.constant 0 : index
    %c0_190 = arith.constant 0 : index
    %346 = vector.load %arg17[%c0_189, %c0_190] : memref<16x32xf32, #tpu.memory_space<vmem>>, vector<16x32xf32>
    tpu.vector_store %arg17[%c0_189, %c0_190], %336 {strides = array<i32>} : memref<16x32xf32, #tpu.memory_space<vmem>>, vector<16x32xf32>,
    %c0_i32_191 = arith.constant 0 : i32
    %347 = arith.cmpi eq, %arg2, %c0_i32_191 : i32
    %348 = arith.extui %347 : i1 to i32
    %c0_i32_192 = arith.constant 0 : i32
    %349 = arith.cmpi ne, %348, %c0_i32_192 : i32
    scf.if %349 {
      %c0_193 = arith.constant 0 : index
      %c0_194 = arith.constant 0 : index
      %350 = vector.load %arg17[%c0_193, %c0_194] : memref<16x32xf32, #tpu.memory_space<vmem>>, vector<16x16xf32>
      %c0_195 = arith.constant 0 : index
      %c0_196 = arith.constant 0 : index
      %c0_197 = arith.constant 0 : index
      %c0_198 = arith.constant 0 : index
      %351 = vector.load %arg11[%c0_195, %c0_196, %c0_197, %c0_198] : memref<1x2x16x16xf32, #tpu.memory_space<vmem>>, vector<1x1x16x16xf32>
      %352 = vector.shape_cast %351 : vector<1x1x16x16xf32> to vector<16x16xf32>
      %353 = vector.shape_cast %350 : vector<16x16xf32> to vector<1x1x16x16xf32>
      tpu.vector_store %arg11[%c0_195, %c0_196, %c0_197, %c0_198], %353 {strides = array<i32>} : memref<1x2x16x16xf32, #tpu.memory_space<vmem>>, vector<1x1x16x16xf32>,
      %c0_199 = arith.constant 0 : index
      %c16_200 = arith.constant 16 : index
      %354 = vector.load %arg17[%c0_199, %c16_200] : memref<16x32xf32, #tpu.memory_space<vmem>>, vector<16x16xf32>
      %c0_201 = arith.constant 0 : index
      %c1 = arith.constant 1 : index
      %c0_202 = arith.constant 0 : index
      %c0_203 = arith.constant 0 : index
      %355 = vector.load %arg11[%c0_201, %c1, %c0_202, %c0_203] : memref<1x2x16x16xf32, #tpu.memory_space<vmem>>, vector<1x1x16x16xf32>
      %356 = vector.shape_cast %355 : vector<1x1x16x16xf32> to vector<16x16xf32>
      %357 = vector.shape_cast %354 : vector<16x16xf32> to vector<1x1x16x16xf32>
      tpu.vector_store %arg11[%c0_201, %c1, %c0_202, %c0_203], %357 {strides = array<i32>} : memref<1x2x16x16xf32, #tpu.memory_space<vmem>>, vector<1x1x16x16xf32>,
    } else {
    }
    return
  }
  func.func @transform_0(%arg0: i32, %arg1: i32, %arg2: i32) -> (i32, i32, i32) {
    %c0_i32 = arith.constant 0 : i32
    return %arg0, %arg2, %arg1 : i32, i32, i32
  }
  func.func @transform_1(%arg0: i32, %arg1: i32, %arg2: i32) -> (i32, i32, i32) {
    %c0_i32 = arith.constant 0 : i32
    return %arg0, %arg2, %arg1 : i32, i32, i32
  }
  func.func @transform_2(%arg0: i32, %arg1: i32, %arg2: i32) -> (i32, i32, i32) {
    %c0_i32 = arith.constant 0 : i32
    return %arg0, %arg2, %arg1 : i32, i32, i32
  }
  func.func @transform_3(%arg0: i32, %arg1: i32, %arg2: i32) -> (i32, i32, i32) {
    %c0_i32 = arith.constant 0 : i32
    return %arg0, %arg2, %arg1 : i32, i32, i32
  }
  func.func @transform_4(%arg0: i32, %arg1: i32, %arg2: i32) -> (i32, i32, i32) {
    %c0_i32 = arith.constant 0 : i32
    return %arg0, %arg2, %arg1 : i32, i32, i32
  }
  func.func @transform_5(%arg0: i32, %arg1: i32, %arg2: i32) -> (i32, i32, i32) {
    %c0_i32 = arith.constant 0 : i32
    return %arg0, %arg2, %arg1 : i32, i32, i32
  }
  func.func @transform_6(%arg0: i32, %arg1: i32, %arg2: i32) -> (i32, i32, i32, i32) {
    %c0_i32 = arith.constant 0 : i32
    %c0_i32_0 = arith.constant 0 : i32
    %c0_i32_1 = arith.constant 0 : i32
    return %arg0, %arg1, %c0_i32, %c0_i32_0 : i32, i32, i32, i32
  }
  func.func @transform_7(%arg0: i32, %arg1: i32, %arg2: i32) -> (i32, i32, i32) {
    %c0_i32 = arith.constant 0 : i32
    return %arg0, %arg2, %arg1 : i32, i32, i32
  }
  func.func @transform_8(%arg0: i32, %arg1: i32, %arg2: i32) -> (i32, i32, i32, i32) {
    %c0_i32 = arith.constant 0 : i32
    %c0_i32_0 = arith.constant 0 : i32
    %c0_i32_1 = arith.constant 0 : i32
    return %arg0, %arg1, %c0_i32, %c0_i32_0 : i32, i32, i32, i32
  }
}

</mosaic_0001>

<bundles_post_ra>
// kernel: wkv7_pallas.1
= control target key start
LH: loop header
LB: loop body
LE: loop exit
PB: predicated region body
PF: predicated region fallthrough
CT: control target
= control target key end

     0   :  { %s3890_s0 = inlined_call_operand.hbm [shape: f32[2,8,32], index: 0, kind: input, shape index: {}]   ;;  %s3891_s1 = inlined_call_operand.hbm [shape: f32[2,8,32], index: 1, kind: input, shape index: {}]   ;;  %s3892_s2 = inlined_call_operand.hbm [shape: f32[2,8,32], index: 2, kind: input, shape index: {}]   ;;  %s3893_s3 = inlined_call_operand.hbm [shape: f32[2,8,32], index: 3, kind: input, shape index: {}]   ;;  %s3894_s4 = inlined_call_operand.hbm [shape: f32[2,8,32], index: 4, kind: input, shape index: {}]   ;;  %s3895_s5 = inlined_call_operand.vmem [shape: f32[2,8,32], index: 5, kind: input, shape index: {}]   ;;  %s3896_s6 = inlined_call_operand.hbm [shape: f32[2,2,16,16], index: 6, kind: input, shape index: {}]   ;;  %s3897_s7 = inlined_call_operand.hbm [shape: f32[2,8,32], index: 7, kind: output, shape index: {0}]   ;;  %s3898_s8 = inlined_call_operand.hbm [shape: f32[2,2,16,16], index: 8, kind: output, shape index: {1}]  }
   0x1   :  { %3912 = sst [smem:[#allocation34_spill]] %s3891_s1 }
   0x2   :  { %3913 = sst [smem:[#allocation35_spill]] %s3893_s3 }
   0x3   :  { %3914 = sst [smem:[#allocation36_spill]] %s3897_s7 }
   0x4   :  { %3915 = sst [smem:[#allocation37_spill]] %s3898_s8 }
   0x5   :  { %14 = vsyncpa [#allocation9], 0 }
   0x6   :  { %16 = vsyncpa [#allocation9 + $0x1], 0 }
   0x7   :  { %17 = vsyncpa [#allocation12], 0 }
   0x8   :  { %19 = vsyncpa [#allocation12 + $0x1], 0 }
   0x9   :  { %20 = vsyncpa [#allocation15], 0 }
   0xa   :  { %22 = vsyncpa [#allocation15 + $0x1], 0 }
   0xb   :  { %23 = vsyncpa [#allocation18], 0 }
   0xc   :  { %25 = vsyncpa [#allocation18 + $0x1], 0 }
   0xd   :  { %26 = vsyncpa [#allocation10], 0 }
   0xe   :  { %28 = vsyncpa [#allocation10 + $0x1], 0 }
   0xf   :  { %29 = vsyncpa [#allocation21], 0 }
  0x10   :  { %31 = vsyncpa [#allocation21 + $0x1], 0  ;;  %s2992_s27 = smov 0   ;;  %s2994_s28 = smov 0  }
  0x11   :  { %s2996_s29 = smov 0   ;;  %s2998_s30 = smov 0  }
  0x12   :  { %s3000_s9 = smov 0   ;;  %s3002_s10 = smov 0  }
  0x13 LB: > { %3916 = sst [smem:[#allocation28_spill]] %s2911_s27  ;;  %s3023_s11 = sadd.s32 4294967295, %s2931_s10   ;;  %s2931_s10 = sphi %s3002_s10, %s37_s10   ;;  %s2927_s9 = sphi %s3000_s9, %s3955_s9   ;;  %s2923_s30 = sphi %s2998_s30, %s3954_s30   ;;  %s2919_s29 = sphi %s2996_s29, %s3950_s29   ;;  %s2915_s28 = sphi %s2994_s28, %s3953_s28   ;;  %s2911_s27 = sphi %s2992_s27, %s3952_s27  }
  0x14   : > { %3917 = sst [smem:[#allocation29_spill]] %s2919_s29  ;;  %s2478_s12 = sadd.s32 4294967294, %s2931_s10  }
  0x15   : > { %3918 = sst [smem:[#allocation30_spill]] %s2931_s10  ;;  %s56_s13 = sadd.s32 1, %s2927_s9 }
  0x16   : > { %s67_s14 = sadd.s32 1, %s2919_s29  ;;  %p58_p0 = scmp.ge.s32.totalorder %s56_s13, 2 }
  0x17   : > { %p74_p1 = scmp.ne.s32.totalorder %s2919_s29, %s2915_s28  ;;  %p75_p2 = scmp.eq.s32.totalorder %s2931_s10, 0 }
  0x18   : > { %p80_p3 = scmp.ne.s32.totalorder %s2915_s28, %s2911_s27  ;;  %s3957_s13 = smov (%p58_p0, %s56_s13), 0 }
  0x19   : > { %3919 = sst [smem:[#allocation31_spill]] %s3957_s13  ;;  %p3035_p4 = por %p75_p2, %p74_p1 }
  0x1a   : > { %p81_p5 = scmp.eq.s32.totalorder %s3023_s11, 0  ;;  %s60_s16 = ssub.s32 %s2927_s9, %s3957_s13 }
  0x1b   : > { %p286_p6 = scmp.eq.s32.totalorder %s3023_s11, 1  ;;  %p65_p7 = scmp.eq.s32.totalorder %s60_s16, 0 }
  0x1c   : > { %p3043_p8 = por %p81_p5, %p80_p3  ;;  %p292_p10 = scmp.eq.s32.totalorder %s2478_s12, 1 }
  0x1d   : > { %p3047_p9 = por %p286_p6, %p74_p1  ;;  %p2567_p13 = scmp.lt.s32.totalorder %s2931_s10, 2 }
  0x1e   : > { %s3921_s17 = scalar_select %p3043_p8, 1, 0 }
  0x1f   : > { %s3922_s18 = scalar_select %p3047_p9, 1, 0 }
  0x20   : > { %s3052_s19 = scalar_select %p65_p7, %s2919_s29, %s67_s14  }
  0x21   : > { %p3054_p11 = por %p292_p10, %p80_p3  ;;  %s3061_s21 = sand.u32 1, %s2919_s29  }
  0x22   : > { %3923 = sst [smem:[#allocation32_spill]] %s3052_s19  ;;  %s3064_s22 = sshll.u32 %s3061_s21, 3 }
  0x23   : > { %s3924_s20 = scalar_select %p3054_p11, 1, 0 }
  0x24   : > { %s3067_s23 = sshll.u32 %s2927_s9, 7  ;;  %p3071_p0 = pnand %p2567_p13, %p3035_p4 }
  0x25   : > { %3925 = sst [smem:[#allocation33_spill]] %s3924_s20  ;;  %s3903_s25 = sand.u32 1, %s2931_s10  }
  0x26   : > { %s3926_s24 = scalar_select %p3071_p0, 1, 0 }
  0x27   : > { %s3927_s1 = sld [smem:[#allocation34_spill]]  ;;  %s364_s16 = scalar_lea.vmem [#allocation11], %s3064_s22 }
  0x28   : > { %s373_s13 = sshll.u32 %s364_s16, 4  ;;  %s3089_s15 = scalar_lea.sflag [#allocation12], %s3903_s25  ;;  %s3084_s13 = int_to_ptr.vmem [resolvable:$true] %s373_s13 }
  0x29   : > { %p3095_p4 = pneg %p3071_p0 }
  0x2d   : > { %s3080_s14 = scalar_lea.hbm %s3927_s1, %s3067_s23  ;;  %s2630_s29 = scalar_lea.hbm %s3927_s1, 256 }
  0x2e   : > { %s2625_s19 = scalar_lea.hbm %s3080_s14, 128  ;;  %p2631_p7 = scmp.lt.u32.totalorder %s3080_s14, %s3927_s1 }
  0x2f   : > { %p2626_p3 = scmp.ne.s32.totalorder %s3080_s14, %s2625_s19  ;;  %p2632_p10 = scmp.lt.u32.totalorder %s2630_s29, %s2625_s19 }
  0x30   : > { %p2634_p12 = scmp.lt.u32.totalorder %s2625_s19, %s3080_s14 }
  0x31   : > { %p2628_p5 = pnand %p3095_p4, %p2626_p3  ;;  %p2633_p13 = por %p2632_p10, %p2631_p7 }
  0x33   : > { %p2629_p6 = pneg %p2628_p5  ;;  %p2635_p1 = por %p2634_p12, %p2633_p13 }
  0x35   : > { %p2636_p2 = pnand %p2635_p1, %p2629_p6 }
  0x37   : > { %2639 = shalt.err (!%p2636_p2)
}
  0x38   : > { %s2640_s25 = scalar_lea.vmem %s3084_s13, 128  ;;  %s2933_s12 = smov [#allocation11]  }
  0x39   : > { %p2641_p3 = scmp.ne.s32.totalorder %s3084_s13, %s2640_s25  ;;  %s2645_s16 = sshll.u32 %s2933_s12, 4  ;;  %s2646_s16 = int_to_ptr.vmem [resolvable:$false] %s2645_s16 }
  0x3a   : > { %s2647_s27 = scalar_lea.vmem %s2646_s16, 256  ;;  %p2648_p9 = scmp.lt.s32.totalorder %s3084_s13, %s2646_s16 }
  0x3b   : > { %p2643_p5 = pnand %p2641_p3, %p3095_p4  ;;  %p2649_p8 = scmp.lt.s32.totalorder %s2647_s27, %s2640_s25 }
  0x3d   : > { %p2644_p11 = pneg %p2643_p5  ;;  %p2650_p7 = por %p2649_p8, %p2648_p9 }
  0x3f   : > { %p2651_p10 = pnand %p2650_p7, %p2644_p11 }
  0x41   : > { %2654 = shalt.err (!%p2651_p10)
}
  0x42   : > { %2547 = dma.hbm_to_vmem [thread:$0]  (!%p3071_p0), %s3080_s14, 128, %s3084_s13, %s3089_s15  }
  0x43   : > { %p3929_p12 = scmp.lt.s32.totalorder %s2931_s10, 3  ;;  %p3930_p1 = scmp.ge.s32.totalorder %s2931_s10, 1 }
  0x44   : > { %s3932_s3 = sld [smem:[#allocation35_spill]]  ;;  %s404_s12 = scalar_lea.vmem [#allocation14], %s3064_s22 }
  0x45   : > { %p3123_p2 = pnand %p3930_p1, %p3929_p12  ;;  %s413_s16 = sshll.u32 %s404_s12, 4  ;;  %s414_s16 = int_to_ptr.vmem [resolvable:$true] %s413_s16 }
  0x46   : > { %s3933_s27 = sand.u32 1, %s2931_s10  }
  0x47   : > { %s3931_s29 = scalar_select %p3123_p2, 1, 0 }
  0x48   : > { %s3136_s13 = scalar_lea.sflag [#allocation15], %s3933_s27 }
  0x4a   : > { %s3131_s25 = scalar_lea.hbm %s3932_s3, %s3067_s23  ;;  %s2660_s19 = scalar_lea.hbm %s3932_s3, 256 }
  0x4b   : > { %s2655_s14 = scalar_lea.hbm %s3131_s25, 128  ;;  %p2661_p6 = scmp.lt.u32.totalorder %s3131_s25, %s3932_s3 }
  0x4c   : > { %p2656_p8 = scmp.ne.s32.totalorder %s3131_s25, %s2655_s14  ;;  %p2662_p13 = scmp.lt.u32.totalorder %s2660_s19, %s2655_s14 }
  0x4d   : > { %p2664_p5 = scmp.lt.u32.totalorder %s2655_s14, %s3131_s25 }
  0x4e   : > { %p2658_p9 = pnand %p2656_p8, %p3095_p4  ;;  %p2663_p3 = por %p2662_p13, %p2661_p6 }
  0x50   : > { %p2659_p11 = pneg %p2658_p9  ;;  %p2665_p7 = por %p2664_p5, %p2663_p3 }
  0x52   : > { %p2666_p10 = pnand %p2665_p7, %p2659_p11 }
  0x54   : > { %2669 = shalt.err (!%p2666_p10)
}
  0x55   : > { %s2670_s12 = scalar_lea.vmem %s414_s16, 128  ;;  %s2934_s27 = smov [#allocation14]  }
  0x56   : > { %p2671_p12 = scmp.ne.s32.totalorder %s414_s16, %s2670_s12  ;;  %s2675_s10 = sshll.u32 %s2934_s27, 4  ;;  %s2676_s10 = int_to_ptr.vmem [resolvable:$false] %s2675_s10 }
  0x57   : > { %s2677_s1 = scalar_lea.vmem %s2676_s10, 256  ;;  %p2678_p9 = scmp.lt.s32.totalorder %s414_s16, %s2676_s10 }
  0x58   : > { %p2673_p1 = pnand %p2671_p12, %p3095_p4  ;;  %p2679_p2 = scmp.lt.s32.totalorder %s2677_s1, %s2670_s12 }
  0x5a   : > { %p2674_p8 = pneg %p2673_p1  ;;  %p2680_p0 = por %p2679_p2, %p2678_p9 }
  0x5c   : > { %p2681_p6 = pnand %p2680_p0, %p2674_p8 }
  0x5e   : > { %2684 = shalt.err (!%p2681_p6)
}
  0x5f   : > { %p3934_p13 = scmp.ne.s32.totalorder %s3926_s24, 0  ;;  %s3160_s14 = scalar_lea.hbm %s3890_s0, %s3067_s23 }
  0x60   : > { %s344_s10 = scalar_lea.vmem [#allocation8], %s3064_s22  ;;  %s341_s20 = scalar_lea.sflag [#allocation9], %s3061_s21 }
  0x61   : > { %2553 = dma.hbm_to_vmem [thread:$0]  (!%p3934_p13), %s3131_s25, 128, %s414_s16, %s3136_s13  }
  0x62   : > { %s353_s19 = sshll.u32 %s344_s10, 4  ;;  %s2685_s12 = scalar_lea.hbm %s3160_s14, 128  ;;  %s354_s19 = int_to_ptr.vmem [resolvable:$true] %s353_s19 }
  0x63   : > { %p2686_p0 = scmp.ne.s32.totalorder %s3160_s14, %s2685_s12  ;;  %s2690_s16 = scalar_lea.hbm %s3890_s0, 256 }
  0x64   : > { %p2691_p3 = scmp.lt.u32.totalorder %s3160_s14, %s3890_s0  ;;  %p2692_p5 = scmp.lt.u32.totalorder %s2690_s16, %s2685_s12 }
  0x65   : > { %p2688_p2 = pnand %p2686_p0, %p3095_p4  ;;  %p2694_p10 = scmp.lt.u32.totalorder %s2685_s12, %s3160_s14 }
  0x66   : > { %p2693_p7 = por %p2692_p5, %p2691_p3 }
  0x67   : > { %p2689_p11 = pneg %p2688_p2 }
  0x68   : > { %p2695_p12 = por %p2694_p10, %p2693_p7 }
  0x6a   : > { %p2696_p1 = pnand %p2695_p12, %p2689_p11 }
  0x6c   : > { %2699 = shalt.err (!%p2696_p1)
}
  0x6d   : > { %s2700_s8 = scalar_lea.vmem %s354_s19, 128  ;;  %s2935_s10 = smov [#allocation8]  }
  0x6e   : > { %p2701_p8 = scmp.ne.s32.totalorder %s354_s19, %s2700_s8  ;;  %s2705_s3 = sshll.u32 %s2935_s10, 4  ;;  %s2706_s3 = int_to_ptr.vmem [resolvable:$false] %s2705_s3 }
  0x6f   : > { %s2707_s27 = scalar_lea.vmem %s2706_s3, 256  ;;  %p2708_p0 = scmp.lt.s32.totalorder %s354_s19, %s2706_s3 }
  0x70   : > { %p2703_p9 = pnand %p2701_p8, %p3095_p4  ;;  %p2709_p2 = scmp.lt.s32.totalorder %s2707_s27, %s2700_s8 }
  0x72   : > { %p2704_p6 = pneg %p2703_p9  ;;  %p2710_p13 = por %p2709_p2, %p2708_p0 }
  0x74   : > { %p2711_p3 = pnand %p2710_p13, %p2704_p6 }
  0x76   : > { %2714 = shalt.err (!%p2711_p3)
}
  0x77   : > { %p3935_p5 = scmp.ne.s32.totalorder %s3926_s24, 0  ;;  %s3185_s16 = scalar_lea.hbm %s3892_s2, %s3067_s23 }
  0x78   : > { %s384_s3 = scalar_lea.vmem [#allocation13], %s3064_s22  ;;  %s2715_s7 = scalar_lea.hbm %s3185_s16, 128 }
  0x79   : > { %2544 = dma.hbm_to_vmem [thread:$0]  (!%p3935_p5), %s3160_s14, 128, %s354_s19, %s341_s20  }
  0x7a   : > { %s393_s1 = sshll.u32 %s384_s3, 4  ;;  %p2716_p13 = scmp.ne.s32.totalorder %s3185_s16, %s2715_s7  ;;  %s394_s1 = int_to_ptr.vmem [resolvable:$true] %s393_s1 }
  0x7b   : > { %s2720_s14 = scalar_lea.hbm %s3892_s2, 256  ;;  %p2721_p10 = scmp.lt.u32.totalorder %s3185_s16, %s3892_s2 }
  0x7c   : > { %p2718_p11 = pnand %p2716_p13, %p3095_p4  ;;  %p2722_p12 = scmp.lt.u32.totalorder %s2720_s14, %s2715_s7 }
  0x7d   : > { %p2724_p8 = scmp.lt.u32.totalorder %s2715_s7, %s3185_s16 }
  0x7e   : > { %p2719_p7 = pneg %p2718_p11  ;;  %p2723_p1 = por %p2722_p12, %p2721_p10 }
  0x80   : > { %p2725_p9 = por %p2724_p8, %p2723_p1 }
  0x82   : > { %p2726_p6 = pnand %p2725_p9, %p2719_p7 }
  0x84   : > { %2729 = shalt.err (!%p2726_p6)
}
  0x85   : > { %s2730_s27 = scalar_lea.vmem %s394_s1, 128  ;;  %s2936_s12 = smov [#allocation13]  }
  0x86   : > { %p2731_p0 = scmp.ne.s32.totalorder %s394_s1, %s2730_s27  ;;  %s2735_s25 = sshll.u32 %s2936_s12, 4  ;;  %s2736_s25 = int_to_ptr.vmem [resolvable:$false] %s2735_s25 }
  0x87   : > { %s2737_s3 = scalar_lea.vmem %s2736_s25, 256  ;;  %p2738_p13 = scmp.lt.s32.totalorder %s394_s1, %s2736_s25 }
  0x88   : > { %p2733_p2 = pnand %p2731_p0, %p3095_p4  ;;  %p2739_p11 = scmp.lt.s32.totalorder %s2737_s3, %s2730_s27 }
  0x8a   : > { %p2734_p3 = pneg %p2733_p2  ;;  %p2740_p5 = por %p2739_p11, %p2738_p13 }
  0x8c   : > { %p2741_p10 = pnand %p2740_p5, %p2734_p3 }
  0x8e   : > { %2744 = shalt.err (!%p2741_p10)
}
  0x8f   : > { %p3936_p12 = scmp.ne.s32.totalorder %s3926_s24, 0  ;;  %s3210_s10 = scalar_lea.hbm %s3894_s4, %s3067_s23 }
  0x90   : > { %s424_s14 = scalar_lea.vmem [#allocation16], %s3064_s22  ;;  %s2745_s20 = scalar_lea.hbm %s3210_s10, 128 }
  0x91   : > { %2550 = dma.hbm_to_vmem [thread:$0]  (!%p3936_p12), %s3185_s16, 128, %s394_s1, %s3089_s15  }
  0x92   : > { %s433_s19 = sshll.u32 %s424_s14, 4  ;;  %p2746_p5 = scmp.ne.s32.totalorder %s3210_s10, %s2745_s20  ;;  %s434_s19 = int_to_ptr.vmem [resolvable:$true] %s433_s19 }
  0x93   : > { %s2750_s15 = scalar_lea.hbm %s3894_s4, 256  ;;  %p2751_p8 = scmp.lt.u32.totalorder %s3210_s10, %s3894_s4 }
  0x94   : > { %p2748_p7 = pnand %p2746_p5, %p3095_p4  ;;  %p2752_p9 = scmp.lt.u32.totalorder %s2750_s15, %s2745_s20 }
  0x95   : > { %p2754_p0 = scmp.lt.u32.totalorder %s2745_s20, %s3210_s10 }
  0x96   : > { %p2749_p1 = pneg %p2748_p7  ;;  %p2753_p6 = por %p2752_p9, %p2751_p8 }
  0x98   : > { %p2755_p2 = por %p2754_p0, %p2753_p6 }
  0x9a   : > { %p2756_p3 = pnand %p2755_p2, %p2749_p1 }
  0x9c   : > { %2759 = shalt.err (!%p2756_p3)
}
  0x9d   : > { %s2760_s22 = scalar_lea.vmem %s434_s19, 128  ;;  %s2937_s23 = smov [#allocation16]  }
  0x9e   : > { %p2761_p13 = scmp.ne.s32.totalorder %s434_s19, %s2760_s22  ;;  %s2765_s25 = sshll.u32 %s2937_s23, 4  ;;  %s2766_s25 = int_to_ptr.vmem [resolvable:$false] %s2765_s25 }
  0x9f   : > { %s2767_s3 = scalar_lea.vmem %s2766_s25, 256  ;;  %p2768_p5 = scmp.lt.s32.totalorder %s434_s19, %s2766_s25 }
  0xa0   : > { %p2763_p11 = pnand %p2761_p13, %p3095_p4  ;;  %p2769_p7 = scmp.lt.s32.totalorder %s2767_s3, %s2760_s22 }
  0xa2   : > { %p2764_p10 = pneg %p2763_p11  ;;  %p2770_p12 = por %p2769_p7, %p2768_p5 }
  0xa4   : > { %p2771_p8 = pnand %p2770_p12, %p2764_p10 }
  0xa6   : > { %2774 = shalt.err (!%p2771_p8)
}
  0xa7   : > { %p3937_p9 = scmp.ne.s32.totalorder %s3926_s24, 0  ;;  %s2491_s7 = sshll.u32 %s3061_s21, 5 }
  0xa8   : > { %s2523_s8 = sshll.u32 %s2927_s9, 9  ;;  %s457_s12 = scalar_lea.vmem [#allocation17], %s2491_s7 }
  0xa9   : > { %2556 = dma.hbm_to_vmem [thread:$0]  (!%p3937_p9), %s3210_s10, 128, %s434_s19, %s3136_s13  }
  0xaa   : > { %s3236_s27 = scalar_lea.hbm %s3896_s6, %s2523_s8  ;;  %s467_s15 = sshll.u32 %s457_s12, 4  ;;  %s3238_s15 = int_to_ptr.vmem [resolvable:$true] %s467_s15 }
  0xab   : > { %s454_s16 = scalar_lea.sflag [#allocation18], %s3061_s21  ;;  %s2775_s1 = scalar_lea.hbm %s3236_s27, 512 }
  0xac   : > { %p2776_p12 = scmp.ne.s32.totalorder %s3236_s27, %s2775_s1  ;;  %s2780_s19 = scalar_lea.hbm %s3896_s6, 1024 }
  0xad   : > { %p2781_p0 = scmp.lt.u32.totalorder %s3236_s27, %s3896_s6  ;;  %p2782_p2 = scmp.lt.u32.totalorder %s2780_s19, %s2775_s1 }
  0xae   : > { %p2778_p1 = pnand %p2776_p12, %p3095_p4  ;;  %p2784_p13 = scmp.lt.u32.totalorder %s2775_s1, %s3236_s27 }
  0xaf   : > { %p2783_p3 = por %p2782_p2, %p2781_p0 }
  0xb0   : > { %p2779_p6 = pneg %p2778_p1 }
  0xb1   : > { %p2785_p11 = por %p2784_p13, %p2783_p3 }
  0xb3   : > { %p2786_p10 = pnand %p2785_p11, %p2779_p6 }
  0xb5   : > { %2789 = shalt.err (!%p2786_p10)
}
  0xb6   : > { %s2790_s25 = scalar_lea.vmem %s3238_s15, 512  ;;  %s2938_s3 = smov [#allocation17]  }
  0xb7   : > { %p2791_p5 = scmp.ne.s32.totalorder %s3238_s15, %s2790_s25  ;;  %s2795_s7 = sshll.u32 %s2938_s3, 4  ;;  %s2796_s7 = int_to_ptr.vmem [resolvable:$false] %s2795_s7 }
  0xb8   : > { %s2797_s8 = scalar_lea.vmem %s2796_s7, 1024  ;;  %p2798_p12 = scmp.lt.s32.totalorder %s3238_s15, %s2796_s7 }
  0xb9   : > { %p2793_p7 = pnand %p2791_p5, %p3095_p4  ;;  %p2799_p1 = scmp.lt.s32.totalorder %s2797_s8, %s2790_s25 }
  0xbb   : > { %p2794_p8 = pneg %p2793_p7  ;;  %p2800_p0 = por %p2799_p1, %p2798_p12 }
  0xbd   : > { %p2801_p2 = pnand %p2800_p0, %p2794_p8 }
  0xbf   : > { %2804 = shalt.err (!%p2801_p2)
}
  0xc0   : > { %s2939_s14 = smov 128   ;;  %s2940_s20 = smov 8  }
  0xc1   : > { %2559 = dma.hbm_to_vmem [thread:$0]  (!%p3937_p9), %s3236_s27, 512, %s3238_s15, %s454_s16, %s2939_s14, %s2939_s14, %s2940_s20  }
  0xc2   : > { %p3938_p4 = scmp.ne.s32.totalorder %s3931_s29, 0 }
  0xc3   : > { %s3267_s26 = sand.u32 (!%p3938_p4), 1, %s2915_s28   ;;  %p3939_p6 = scmp.ne.s32.totalorder (!%p3938_p4), %s3921_s17, 0 }
  0xc4   : > { %479 = sbr.rel (%p3938_p4) target bundleno = 742 (0x2e6), region = 48  ;;  %s3270_s12 = sshll.u32 (!%p3938_p4), %s3267_s26, 3 }
  0xc5   : > { %s482_s1 = scalar_lea.sflag (!%p3938_p4), [#allocation9], %s3267_s26  ;;  %s485_s13 = scalar_lea.vmem (!%p3938_p4), [#allocation8], %s3270_s12 }
  0xcb   : > { %2886 = dma.done.wait (%p3939_p6), %s482_s1, 128  }
  0xcc   : > { %2888 = vsyncadd (%p3939_p6), %s482_s1, 4294967168  ;;  %s490_s21 = sand.u32 1, %s3023_s11   ;;  %s494_s29 = scalar_lea.vmem [#allocation11], %s3270_s12 }
  0xcd   : > { %s491_s24 = scalar_lea.sflag [#allocation12], %s490_s21 }
  0xce   : > { %2890 = dma.done.wait (%p3939_p6), %s491_s24, 256  }
  0xcf   : > { %2892 = vsyncadd (%p3939_p6), %s491_s24, 4294967040  ;;  %s503_s27 = scalar_lea.vmem [#allocation13], %s3270_s12  ;;  %s509_s15 = scalar_lea.sflag [#allocation15], %s490_s21 }
  0xd0   : > { %s3286_s16 = scalar_lea.vmem [#allocation14], %s3270_s12 }
  0xd1   : > { %2894 = dma.done.wait (%p3939_p6), %s509_s15, 256  }
  0xd2   : > { %2896 = vsyncadd (%p3939_p6), %s509_s15, 4294967040  ;;  %s2500_s11 = sshll.u32 %s3267_s26, 5  ;;  %s521_s10 = scalar_lea.vmem [#allocation16], %s3270_s12 }
  0xd3   : > { %s527_s19 = scalar_lea.sflag [#allocation18], %s3267_s26  ;;  %s530_s22 = scalar_lea.vmem [#allocation17], %s2500_s11 }
  0xd4   : > { %2898 = dma.done.wait (%p3939_p6), %s527_s19, 512  }
  0xd5   : > { %2900 = vsyncadd (%p3939_p6), %s527_s19, 4294966784  ;;  %v641_v0 = vlaneseq  ;;  %v2504_v3 = vld [vmem:[%s530_s22 + $0x10] sm:$0xff]  ;;  %vm621_vm0 = vcmask 130048   ;;  %s2941_s23 = smov 16   ;;  %v638_v6 = vld [vmem:[%s494_s29] sm:$0xff]  ;;  %p603_p9 = scmp.lt.s32.totalorder %s2923_s30, 1 }
  0xd6   : > { %v3306_v4 = vld [vmem:[%s521_s10] sm:$0xff]  ;;  %629 = vrot.lane.b32.xlu0 %v2504_v3, %s2941_s23  ;;  %v639_v8 = vmul.f32 1.442695, %v638_v6  ;;  %v619_v9 = vld [vmem:[%s530_s22] sm:$0xff]  ;;  %v620_v10 = vld [vmem:[%s530_s22 + $0x8] sm:$0xff]  ;;  %vm635_vm1 = vcmask 261248  }
  0xd7   : > { %v3301_v1 = vshrl.u32 %v641_v0, 7  ;;  %v2505_v7 = vld [vmem:[%s530_s22 + $0x18] sm:$0xff]  ;;  %622 = vst.msk [vmem:[#allocation7] sm:$0xff] %vm621_vm0, %v619_v9  ;;  %623 = vst.msk [vmem:[#allocation7 + $0x8] sm:$0xff] %vm621_vm0, %v620_v10  ;;  %s604_s17 = scalar_select %p603_p9, %s2923_s30, 1  ;;  %vm1740_vm2 = vcmask 261120  }
  0xd8   : > { %2623 = vpow2.f32 %v639_v8  ;;  %v3346_v21 = vld [vmem:[%s503_s27] sm:$0xff]  ;;  %s2942_s14 = smov 112   ;;  %s3718_s20 = scalar_lea.vmem [#allocation20], %s2500_s11  ;;  %vm1784_vm3 = vcmask 253952  }
  0xd9   : > { %v3304_v2 = vsub.s32 0, %v3301_v1  ;;  %v3314_v11 = vsub.s32 1, %v3301_v1  ;;  %v3318_v12 = vsub.s32 2, %v3301_v1  ;;  %s2503_s25 = sshll.u32 %s604_s17, 3  ;;  %v3329_v17 = vsub.s32 3, %v3301_v1  ;;  %s3766_s1 = scalar_lea.vmem [#allocation19], %s3270_s12 }
  0xda   : > { %631 = vrot.lane.b32.xlu0 %v2505_v7, %s2941_s23  ;;  %s612_s8 = scalar_lea.vmem %s3895_s5, %s2503_s25  ;;  %v3376_v37 = vsub.s32 4, %v3301_v1  ;;  %v3410_v7 = vsub.s32 5, %v3301_v1  ;;  %s2518_s12 = sshll.u32 %s2923_s30, 7 }
  0xdb   : > { %v866_v5 = vrot.slane %v3306_v4, %v3304_v2  ;;  %v3338_v19 = vld [vmem:[%s612_s8] sm:$0xff]  ;;  %v1302_v22 = vrot.slane %v3346_v21, %v3304_v2  ;;  %v877_v23 = vrot.slane %v3306_v4, %v3314_v11  ;;  %v1313_v25 = vrot.slane %v3346_v21, %v3314_v11  ;;  %s3940_s29 = sld [smem:[#allocation36_spill]]  ;;  %p3942_p13 = scmp.ne.s32.totalorder %s3922_s18, 0 }
  0xdc   : > { %v1084_v20 = vrot.slane %v3338_v19, %v3304_v2  ;;  %v1095_v24 = vrot.slane %v3338_v19, %v3314_v11  ;;  %v888_v26 = vrot.slane %v3306_v4, %v3318_v12  ;;  %v1106_v27 = vrot.slane %v3338_v19, %v3318_v12  ;;  %s2943_s10 = smov [#allocation19]  }
  0xdd   : > { %868 = vbcast.lane.b32.xlu1 %v866_v5, 256  ;;  %v1324_v28 = vrot.slane %v3346_v21, %v3318_v12  ;;  %v899_v29 = vrot.slane %v3306_v4, %v3329_v17  ;;  %v1117_v30 = vrot.slane %v3338_v19, %v3329_v17  ;;  %v1335_v35 = vrot.slane %v3346_v21, %v3329_v17  ;;  %s2809_s19 = sshll.u32 %s2943_s10, 4  ;;  %s2810_s19 = int_to_ptr.vmem [resolvable:$false] %s2809_s19 }
  0xde   : > { %872 = vbcast.lane.b32.xlu0 %v866_v5, 264  ;;  %v910_v39 = vrot.slane %v3306_v4, %v3376_v37  ;;  %v1128_v52 = vrot.slane %v3338_v19, %v3376_v37  ;;  %v1346_v0 = vrot.slane %v3346_v21, %v3376_v37  ;;  %s2811_s22 = scalar_lea.vmem %s2810_s19, 256 }
  0xe1   : > { %974 = vbcast.lane.b32.xlu1 %v866_v5, 272  ;;  %s3941_s15 = smov %s3940_s29  ;;  %s3802_s27 = scalar_lea.hbm %s3940_s29, %s2518_s12 }
  0xe2   : > { %978 = vbcast.lane.b32.xlu0 %v866_v5, 280  ;;  %v3320_v13 = vpop.eup %2623 }
  0xe3   : > { %v644_v14 = vrot.slane %v3320_v13, %v3304_v2  ;;  %v655_v15 = vrot.slane %v3320_v13, %v3314_v11  ;;  %v666_v16 = vrot.slane %v3320_v13, %v3318_v12  ;;  %v3336_v18 = vrot.slane %v3320_v13, %v3329_v17 }
  0xe4   : > { %v688_v44 = vrot.slane %v3320_v13, %v3376_v37 }
  0xe5   : > { %646 = vbcast.lane.b32.xlu1 %v644_v14, 256 }
  0xe6   : > { %657 = vbcast.lane.b32.xlu0 %v655_v15, 256 }
  0xe9   : > { %650 = vbcast.lane.b32.xlu1 %v644_v14, 264 }
  0xea   : > { %668 = vbcast.lane.b32.xlu0 %v666_v16, 256 }
  0xed   : > { %661 = vbcast.lane.b32.xlu1 %v655_v15, 264 }
  0xee   : > { %679 = vbcast.lane.b32.xlu0 %v3336_v18, 256 }
  0xf1   : > { %672 = vbcast.lane.b32.xlu1 %v666_v16, 264 }
  0xf2   : > { %1086 = vbcast.lane.b32.xlu0 %v1084_v20, 256 }
  0xf5   : > { %683 = vbcast.lane.b32.xlu1 %v3336_v18, 264 }
  0xf6   : > { %755 = vbcast.lane.b32.xlu0 %v644_v14, 272 }
  0xf9   : > { %1090 = vbcast.lane.b32.xlu1 %v1084_v20, 264 }
  0xfa   : > { %1192 = vbcast.lane.b32.xlu0 %v1084_v20, 272 }
  0xfd   : > { %759 = vbcast.lane.b32.xlu1 %v644_v14, 280  ;;  %v921_v14 = vrot.slane %v3306_v4, %v3410_v7 }
  0xfe   : > { %1304 = vbcast.lane.b32.xlu0 %v1302_v22, 256 }
 0x101   : > { %1196 = vbcast.lane.b32.xlu1 %v1084_v20, 280 }
 0x102   : > { %1410 = vbcast.lane.b32.xlu0 %v1302_v22, 272 }
 0x105   : > { %1308 = vbcast.lane.b32.xlu1 %v1302_v22, 264 }
 0x106   : > { %879 = vbcast.lane.b32.xlu0 %v877_v23, 256 }
 0x109   : > { %1414 = vbcast.lane.b32.xlu1 %v1302_v22, 280 }
 0x10a   : > { %986 = vbcast.lane.b32.xlu0 %v877_v23, 272 }
 0x10d   : > { %883 = vbcast.lane.b32.xlu1 %v877_v23, 264 }
 0x10e   : > { %1097 = vbcast.lane.b32.xlu0 %v1095_v24, 256 }
 0x111   : > { %990 = vbcast.lane.b32.xlu1 %v877_v23, 280 }
 0x112   : > { %767 = vbcast.lane.b32.xlu0 %v655_v15, 272 }
 0x115   : > { %1101 = vbcast.lane.b32.xlu1 %v1095_v24, 264 }
 0x116   : > { %1204 = vbcast.lane.b32.xlu0 %v1095_v24, 272 }
 0x119   : > { %771 = vbcast.lane.b32.xlu1 %v655_v15, 280 }
 0x11a   : > { %1315 = vbcast.lane.b32.xlu0 %v1313_v25, 256 }
 0x11d   : > { %1208 = vbcast.lane.b32.xlu1 %v1095_v24, 280  ;;  %v699_v24 = vrot.slane %v3320_v13, %v3410_v7 }
 0x11e   : > { %1422 = vbcast.lane.b32.xlu0 %v1313_v25, 272 }
 0x121   : > { %1319 = vbcast.lane.b32.xlu1 %v1313_v25, 264 }
 0x122   : > { %890 = vbcast.lane.b32.xlu0 %v888_v26, 256 }
 0x125   : > { %1426 = vbcast.lane.b32.xlu1 %v1313_v25, 280 }
 0x126   : > { %998 = vbcast.lane.b32.xlu0 %v888_v26, 272 }
 0x129   : > { %894 = vbcast.lane.b32.xlu1 %v888_v26, 264 }
 0x12a   : > { %1108 = vbcast.lane.b32.xlu0 %v1106_v27, 256 }
 0x12d   : > { %1002 = vbcast.lane.b32.xlu1 %v888_v26, 280 }
 0x12e   : > { %779 = vbcast.lane.b32.xlu0 %v666_v16, 272 }
 0x131   : > { %1112 = vbcast.lane.b32.xlu1 %v1106_v27, 264 }
 0x132   : > { %1216 = vbcast.lane.b32.xlu0 %v1106_v27, 272 }
 0x135   : > { %783 = vbcast.lane.b32.xlu1 %v666_v16, 280 }
 0x136   : > { %1326 = vbcast.lane.b32.xlu0 %v1324_v28, 256 }
 0x139   : > { %1220 = vbcast.lane.b32.xlu1 %v1106_v27, 280 }
 0x13a   : > { %1434 = vbcast.lane.b32.xlu0 %v1324_v28, 272 }
 0x13d   : > { %1330 = vbcast.lane.b32.xlu1 %v1324_v28, 264 }
 0x13e   : > { %901 = vbcast.lane.b32.xlu0 %v899_v29, 256 }
 0x141   : > { %1438 = vbcast.lane.b32.xlu1 %v1324_v28, 280 }
 0x142   : > { %1010 = vbcast.lane.b32.xlu0 %v899_v29, 272 }
 0x145   : > { %905 = vbcast.lane.b32.xlu1 %v899_v29, 264 }
 0x146   : > { %1119 = vbcast.lane.b32.xlu0 %v1117_v30, 256 }
 0x148   : > { %v630_v31 = vpop.permute.xlu0 %629 }
 0x149   : > { %636 = vst.msk [vmem:[#allocation7] sm:$0xff] %vm635_vm1, %v630_v31  ;;  %1014 = vbcast.lane.b32.xlu1 %v899_v29, 280  ;;  %v2506_v29 = vld [vmem:[%s3286_s16] ss:$0 sm:$0xff] }
 0x14a   : > { %791 = vbcast.lane.b32.xlu0 %v3336_v18, 272 }
 0x14c   : > { %v632_v33 = vpop.permute.xlu0 %631 }
 0x14d   : > { %637 = vst.msk [vmem:[#allocation7 + $0x8] sm:$0xff] %vm635_vm1, %v632_v33  ;;  %1123 = vbcast.lane.b32.xlu1 %v1117_v30, 264  ;;  %v1139_v33 = vrot.slane %v3338_v19, %v3410_v7 }
 0x14e   : > { %1228 = vbcast.lane.b32.xlu0 %v1117_v30, 272 }
 0x14f   : > { %v869_v32 = vpop.permute.xlu1 %868 }
 0x150   : > { %951 = vst.msk [vmem:[#allocation3] sm:$0xff] %vm621_vm0, %v869_v32  ;;  %v873_v36 = vpop.permute.xlu0 %872  ;;  %v3389_v49 = vld [vmem:[#allocation7] sm:$0xff] }
 0x151   : > { %952 = vst.msk [vmem:[#allocation3 + $0x8] sm:$0xff] %vm621_vm0, %v873_v36  ;;  %795 = vbcast.lane.b32.xlu1 %v3336_v18, 280 }
 0x152   : > { %1337 = vbcast.lane.b32.xlu0 %v1335_v35, 256 }
 0x153   : > { %v975_v34 = vpop.permute.xlu1 %974 }
 0x154   : > { %1064 = vst.msk [vmem:[#allocation3] sm:$0xff] %vm635_vm1, %v975_v34  ;;  %v979_v38 = vpop.permute.xlu0 %978  ;;  %v3387_v45 = vld [vmem:[#allocation7 + $0x8] sm:$0xff] }
 0x155   : > { %1065 = vst.msk [vmem:[#allocation3 + $0x8] sm:$0xff] %vm635_vm1, %v979_v38  ;;  %1232 = vbcast.lane.b32.xlu1 %v1117_v30, 280 }
 0x156   : > { %1446 = vbcast.lane.b32.xlu0 %v1335_v35, 272 }
 0x157   : > { %v647_v40 = vpop.permute.xlu1 %646 }
 0x158   : > { %v658_v41 = vpop.permute.xlu0 %657  ;;  %730 = vst.msk [vmem:[#allocation2] sm:$0xff] %vm621_vm0, %v647_v40 }
 0x159   : > { %732 = vst.msk [vmem:[#allocation2 + $0x10] sm:$0xff] %vm621_vm0, %v658_v41  ;;  %1341 = vbcast.lane.b32.xlu1 %v1335_v35, 264 }
 0x15a   : > { %912 = vbcast.lane.b32.xlu0 %v910_v39, 256 }
 0x15b   : > { %v651_v42 = vpop.permute.xlu1 %650  ;;  %v1736_v50 = vld [vmem:[#allocation3] sm:$0xff] }
 0x15c   : > { %v669_v43 = vpop.permute.xlu0 %668  ;;  %731 = vst.msk [vmem:[#allocation2 + $0x8] sm:$0xff] %vm621_vm0, %v651_v42  ;;  %v1737_v46 = vld [vmem:[#allocation3 + $0x8] sm:$0xff]  ;;  %v1738_v53 = vmul.f32 %v1736_v50, %v3389_v49 }
 0x15d   : > { %734 = vst.msk [vmem:[#allocation2 + $0x20] sm:$0xff] %vm621_vm0, %v669_v43  ;;  %1450 = vbcast.lane.b32.xlu1 %v1335_v35, 280  ;;  %v1739_v51 = vmul.f32 %v1737_v46, %v3387_v45 }
 0x15e   : > { %1022 = vbcast.lane.b32.xlu0 %v910_v39, 272  ;;  %v1741_v57 = vsel %vm1740_vm2, %v1738_v53, 0.0 }
 0x15f   : > { %v662_v47 = vpop.permute.xlu1 %661  ;;  %v1742_v56 = vsel %vm1740_vm2, %v1739_v51, 0.0 }
 0x160   : > { %v680_v48 = vpop.permute.xlu0 %679  ;;  %733 = vst.msk [vmem:[#allocation2 + $0x18] sm:$0xff] %vm621_vm0, %v662_v47  ;;  %v1743_v60 = vadd.f32 %v1742_v56, %v1741_v57  ;;  %v1357_v57 = vrot.slane %v3346_v21, %v3410_v7 }
 0x161   : > { %736 = vst.msk [vmem:[#allocation2 + $0x30] sm:$0xff] %vm621_vm0, %v680_v48  ;;  %916 = vbcast.lane.b32.xlu1 %v910_v39, 264 }
 0x162   : > { %690 = vbcast.lane.b32.xlu0 %v688_v44, 256  ;;  %v1744_v63 = vrot.slane %v1743_v60, 4 }
 0x163   : > { %v673_v54 = vpop.permute.xlu1 %672 }
 0x164   : > { %v1087_v55 = vpop.permute.xlu0 %1086  ;;  %735 = vst.msk [vmem:[#allocation2 + $0x28] sm:$0xff] %vm621_vm0, %v673_v54  ;;  %v1745_v6 = vadd.f32 %v1744_v63, %v1743_v60 }
 0x165   : > { %1169 = vst.msk [vmem:[#allocation4] sm:$0xff] %vm621_vm0, %v1087_v55  ;;  %1026 = vbcast.lane.b32.xlu1 %v910_v39, 280 }
 0x166   : > { %1130 = vbcast.lane.b32.xlu0 %v1128_v52, 256  ;;  %v1746_v10 = vrot.slane %v1745_v6, 2 }
 0x167   : > { %v684_v58 = vpop.permute.xlu1 %683 }
 0x168   : > { %v756_v59 = vpop.permute.xlu0 %755  ;;  %737 = vst.msk [vmem:[#allocation2 + $0x38] sm:$0xff] %vm621_vm0, %v684_v58  ;;  %v1747_v18 = vadd.f32 %v1746_v10, %v1745_v6 }
 0x169   : > { %846 = vst.msk [vmem:[#allocation2] sm:$0xff] %vm635_vm1, %v756_v59  ;;  %694 = vbcast.lane.b32.xlu1 %v688_v44, 264 }
 0x16a   : > { %803 = vbcast.lane.b32.xlu0 %v688_v44, 272  ;;  %v1748_v23 = vrot.slane %v1747_v18, 1 }
 0x16b   : > { %v1091_v61 = vpop.permute.xlu1 %1090 }
 0x16c   : > { %v1193_v62 = vpop.permute.xlu0 %1192  ;;  %1170 = vst.msk [vmem:[#allocation4 + $0x8] sm:$0xff] %vm621_vm0, %v1091_v61  ;;  %v1749_v28 = vadd.f32 %v1748_v23, %v1747_v18 }
 0x16d   : > { %1282 = vst.msk [vmem:[#allocation4] sm:$0xff] %vm635_vm1, %v1193_v62  ;;  %1134 = vbcast.lane.b32.xlu1 %v1128_v52, 264 }
 0x16e   : > { %1240 = vbcast.lane.b32.xlu0 %v1128_v52, 272 }
 0x16f   : > { %v760_v3 = vpop.permute.xlu1 %759 }
 0x170   : > { %v1305_v5 = vpop.permute.xlu0 %1304  ;;  %847 = vst.msk [vmem:[#allocation2 + $0x8] sm:$0xff] %vm635_vm1, %v760_v3  ;;  %v1750_v30 = vld [vmem:[#allocation2] sm:$0xff] }
 0x171   : > { %1387 = vst.msk [vmem:[#allocation5] sm:$0xff] %vm621_vm0, %v1305_v5  ;;  %807 = vbcast.lane.b32.xlu1 %v688_v44, 280  ;;  %v1752_v40 = vmul.f32 %v1750_v30, %v3389_v49 }
 0x172   : > { %1348 = vbcast.lane.b32.xlu0 %v1346_v0, 256 }
 0x173   : > { %v1197_v8 = vpop.permute.xlu1 %1196 }
 0x174   : > { %v1411_v9 = vpop.permute.xlu0 %1410  ;;  %1283 = vst.msk [vmem:[#allocation4 + $0x8] sm:$0xff] %vm635_vm1, %v1197_v8  ;;  %v1754_v25 = vld [vmem:[#allocation4] sm:$0xff] }
 0x175   : > { %1500 = vst.msk [vmem:[#allocation5] sm:$0xff] %vm635_vm1, %v1411_v9  ;;  %1244 = vbcast.lane.b32.xlu1 %v1128_v52, 280  ;;  %v1756_v34 = vmul.f32 %v1754_v25, %v1749_v28 }
 0x176   : > { %1458 = vbcast.lane.b32.xlu0 %v1346_v0, 272 }
 0x177   : > { %v1309_v15 = vpop.permute.xlu1 %1308  ;;  %v1751_v35 = vld [vmem:[#allocation2 + $0x8] sm:$0xff]  ;;  %v1758_v43 = vadd.f32 %v1756_v34, %v1752_v40 }
 0x178   : > { %v880_v16 = vpop.permute.xlu0 %879  ;;  %1388 = vst.msk [vmem:[#allocation5 + $0x8] sm:$0xff] %vm621_vm0, %v1309_v15  ;;  %v1753_v44 = vmul.f32 %v1751_v35, %v3387_v45 }
 0x179   : > { %953 = vst.msk [vmem:[#allocation3 + $0x10] sm:$0xff] %vm621_vm0, %v880_v16  ;;  %1352 = vbcast.lane.b32.xlu1 %v1346_v0, 264 }
 0x17a   : > { %923 = vbcast.lane.b32.xlu0 %v921_v14, 256 }
 0x17b   : > { %v1415_v20 = vpop.permute.xlu1 %1414  ;;  %v1755_v31 = vld [vmem:[#allocation4 + $0x8] sm:$0xff] }
 0x17c   : > { %v987_v22 = vpop.permute.xlu0 %986  ;;  %1501 = vst.msk [vmem:[#allocation5 + $0x8] sm:$0xff] %vm635_vm1, %v1415_v20  ;;  %v1760_v32 = vld [vmem:[#allocation5] sm:$0xff]  ;;  %v1757_v41 = vmul.f32 %v1755_v31, %v1749_v28 }
 0x17d   : > { %1066 = vst.msk [vmem:[#allocation3 + $0x10] sm:$0xff] %vm635_vm1, %v987_v22  ;;  %1462 = vbcast.lane.b32.xlu1 %v1346_v0, 280  ;;  %v1767_v42 = vmul.f32 %v2506_v29, %v1760_v32  ;;  %v3448_v0 = vsub.s32 6, %v3301_v1  ;;  %v2507_v22 = vld [vmem:[%s3286_s16 + $0x1] ss:$0 sm:$0xff] }
 0x17e   : > { %1034 = vbcast.lane.b32.xlu0 %v921_v14, 272  ;;  %v1759_v51 = vadd.f32 %v1757_v41, %v1753_v44 }
 0x17f   : > { %v884_v26 = vpop.permute.xlu1 %883  ;;  %v3431_v52 = vadd.f32 %v1767_v42, %v1758_v43  ;;  %v932_v9 = vrot.slane %v3306_v4, %v3448_v0  ;;  %v710_v31 = vrot.slane %v3320_v13, %v3448_v0  ;;  %v1150_v40 = vrot.slane %v3338_v19, %v3448_v0 }
 0x180   : > { %v1098_v27 = vpop.permute.xlu0 %1097  ;;  %954 = vst.msk [vmem:[#allocation3 + $0x18] sm:$0xff] %vm621_vm0, %v884_v26 }
 0x181   : > { %1171 = vst.msk [vmem:[#allocation4 + $0x10] sm:$0xff] %vm621_vm0, %v1098_v27  ;;  %927 = vbcast.lane.b32.xlu1 %v921_v14, 264 }
 0x182   : > { %701 = vbcast.lane.b32.xlu0 %v699_v24, 256 }
 0x183   : > { %v1761_v36 = vld [vmem:[#allocation5 + $0x8] sm:$0xff]  ;;  %v991_v38 = vpop.permute.xlu1 %990 }
 0x184   : > { %v768_v39 = vpop.permute.xlu0 %767  ;;  %1067 = vst.msk [vmem:[#allocation3 + $0x18] sm:$0xff] %vm635_vm1, %v991_v38  ;;  %v1768_v46 = vmul.f32 %v2506_v29, %v1761_v36  ;;  %v1787_v47 = vld [vmem:[#allocation3 + $0x10] sm:$0xff] }
 0x185   : > { %848 = vst.msk [vmem:[#allocation2 + $0x10] sm:$0xff] %vm635_vm1, %v768_v39  ;;  %1038 = vbcast.lane.b32.xlu1 %v921_v14, 280  ;;  %v1789_v53 = vmul.f32 %v1787_v47, %v3431_v52 }
 0x186   : > { %1141 = vbcast.lane.b32.xlu0 %v1139_v33, 256  ;;  %v3435_v49 = vadd.f32 %v1768_v46, %v1759_v51 }
 0x187   : > { %v1102_v48 = vpop.permute.xlu1 %1101  ;;  %v1791_v58 = vsel %vm1740_vm2, %v1789_v53, 0.0 }
 0x188   : > { %v1205_v50 = vpop.permute.xlu0 %1204  ;;  %1172 = vst.msk [vmem:[#allocation4 + $0x18] sm:$0xff] %vm621_vm0, %v1102_v48 }
 0x189   : > { %1284 = vst.msk [vmem:[#allocation4 + $0x10] sm:$0xff] %vm635_vm1, %v1205_v50  ;;  %705 = vbcast.lane.b32.xlu1 %v699_v24, 264 }
 0x18a   : > { %815 = vbcast.lane.b32.xlu0 %v699_v24, 272 }
 0x18b   : > { %v1788_v54 = vld [vmem:[#allocation3 + $0x18] sm:$0xff]  ;;  %v772_v55 = vpop.permute.xlu1 %771 }
 0x18c   : > { %v1316_v45 = vpop.permute.xlu0 %1315  ;;  %v1790_v56 = vmul.f32 %v1788_v54, %v3435_v49  ;;  %849 = vst.msk [vmem:[#allocation2 + $0x18] sm:$0xff] %vm635_vm1, %v772_v55  ;;  %v1801_v18 = vld [vmem:[#allocation2 + $0x10] sm:$0xff] }
 0x18d   : > { %1389 = vst.msk [vmem:[#allocation5 + $0x10] sm:$0xff] %vm621_vm0, %v1316_v45  ;;  %1145 = vbcast.lane.b32.xlu1 %v1139_v33, 264  ;;  %v1803_v27 = vmul.f32 %v1801_v18, %v3431_v52 }
 0x18e   : > { %1252 = vbcast.lane.b32.xlu0 %v1139_v33, 272  ;;  %v1792_v59 = vsel %vm1740_vm2, %v1790_v56, 0.0 }
 0x18f   : > { %v1793_v60 = vadd.f32 %v1792_v59, %v1791_v58  ;;  %v1209_v61 = vpop.permute.xlu1 %1208 }
 0x190   : > { %v1423_v62 = vpop.permute.xlu0 %1422  ;;  %1285 = vst.msk [vmem:[#allocation4 + $0x18] sm:$0xff] %vm635_vm1, %v1209_v61  ;;  %v1806_v26 = vld [vmem:[#allocation4 + $0x10] sm:$0xff]  ;;  %v1368_v61 = vrot.slane %v3346_v21, %v3448_v0 }
 0x191   : > { %1502 = vst.msk [vmem:[#allocation5 + $0x10] sm:$0xff] %vm635_vm1, %v1423_v62  ;;  %v1794_v63 = vrot.slane %v1793_v60, 4  ;;  %819 = vbcast.lane.b32.xlu1 %v699_v24, 280 }
 0x192   : > { %1359 = vbcast.lane.b32.xlu0 %v1357_v57, 256 }
 0x193   : > { %v1795_v3 = vadd.f32 %v1794_v63, %v1793_v60  ;;  %v1320_v5 = vpop.permute.xlu1 %1319  ;;  %v1802_v29 = vld [vmem:[#allocation2 + $0x18] sm:$0xff] }
 0x194   : > { %v891_v6 = vpop.permute.xlu0 %890  ;;  %1390 = vst.msk [vmem:[#allocation5 + $0x18] sm:$0xff] %vm621_vm0, %v1320_v5  ;;  %v1804_v39 = vmul.f32 %v1802_v29, %v3435_v49 }
 0x195   : > { %955 = vst.msk [vmem:[#allocation3 + $0x20] sm:$0xff] %vm621_vm0, %v891_v6  ;;  %v1796_v8 = vrot.slane %v1795_v3, 2  ;;  %1256 = vbcast.lane.b32.xlu1 %v1139_v33, 280  ;;  %v3486_v6 = vsub.s32 7, %v3301_v1 }
 0x196   : > { %1470 = vbcast.lane.b32.xlu0 %v1357_v57, 272 }
 0x197   : > { %v1797_v10 = vadd.f32 %v1796_v8, %v1795_v3  ;;  %v1427_v14 = vpop.permute.xlu1 %1426  ;;  %v1807_v30 = vld [vmem:[#allocation4 + $0x18] sm:$0xff] }
 0x198   : > { %v999_v15 = vpop.permute.xlu0 %998  ;;  %1503 = vst.msk [vmem:[#allocation5 + $0x18] sm:$0xff] %vm635_vm1, %v1427_v14  ;;  %v1813_v23 = vld [vmem:[#allocation5 + $0x10] sm:$0xff] }
 0x199   : > { %1068 = vst.msk [vmem:[#allocation3 + $0x20] sm:$0xff] %vm635_vm1, %v999_v15  ;;  %v1798_v16 = vrot.slane %v1797_v10, 1  ;;  %1363 = vbcast.lane.b32.xlu1 %v1357_v57, 264  ;;  %v1820_v33 = vmul.f32 %v2507_v22, %v1813_v23  ;;  %v943_v15 = vrot.slane %v3306_v4, %v3486_v6 }
 0x19a   : > { %934 = vbcast.lane.b32.xlu0 %v932_v9, 256 }
 0x19b   : > { %v1799_v20 = vadd.f32 %v1798_v16, %v1797_v10  ;;  %v895_v24 = vpop.permute.xlu1 %894 }
 0x19c   : > { %v1109_v25 = vpop.permute.xlu0 %1108  ;;  %956 = vst.msk [vmem:[#allocation3 + $0x28] sm:$0xff] %vm621_vm0, %v895_v24 }
 0x19d   : > { %1173 = vst.msk [vmem:[#allocation4 + $0x20] sm:$0xff] %vm621_vm0, %v1109_v25  ;;  %v1808_v28 = vmul.f32 %v1806_v26, %v1799_v20  ;;  %1474 = vbcast.lane.b32.xlu1 %v1357_v57, 280  ;;  %v1809_v32 = vmul.f32 %v1807_v30, %v1799_v20  ;;  %v2508_v20 = vld [vmem:[%s3286_s16 + $0x2] ss:$0 sm:$0xff] }
 0x19e   : > { %1046 = vbcast.lane.b32.xlu0 %v932_v9, 272 }
 0x19f   : > { %v1810_v34 = vadd.f32 %v1808_v28, %v1803_v27  ;;  %v1814_v35 = vld [vmem:[#allocation5 + $0x18] sm:$0xff]  ;;  %v1003_v36 = vpop.permute.xlu1 %1002  ;;  %v1811_v41 = vadd.f32 %v1809_v32, %v1804_v39 }
 0x1a0   : > { %v780_v38 = vpop.permute.xlu0 %779  ;;  %1069 = vst.msk [vmem:[#allocation3 + $0x28] sm:$0xff] %vm635_vm1, %v1003_v36  ;;  %v1821_v43 = vmul.f32 %v2507_v22, %v1814_v35  ;;  %v1840_v44 = vld [vmem:[#allocation3 + $0x20] sm:$0xff]  ;;  %v721_v35 = vrot.slane %v3320_v13, %v3486_v6 }
 0x1a1   : > { %850 = vst.msk [vmem:[#allocation2 + $0x20] sm:$0xff] %vm635_vm1, %v780_v38  ;;  %938 = vbcast.lane.b32.xlu1 %v932_v9, 264  ;;  %v3467_v42 = vadd.f32 %v1820_v33, %v1810_v34 }
 0x1a2   : > { %712 = vbcast.lane.b32.xlu0 %v710_v31, 256  ;;  %v3471_v48 = vadd.f32 %v1821_v43, %v1811_v41 }
 0x1a3   : > { %v1113_v46 = vpop.permute.xlu1 %1112  ;;  %v1842_v50 = vmul.f32 %v1840_v44, %v3467_v42  ;;  %v1161_v44 = vrot.slane %v3338_v19, %v3486_v6 }
 0x1a4   : > { %v1217_v47 = vpop.permute.xlu0 %1216  ;;  %1174 = vst.msk [vmem:[#allocation4 + $0x28] sm:$0xff] %vm621_vm0, %v1113_v46 }
 0x1a5   : > { %1286 = vst.msk [vmem:[#allocation4 + $0x20] sm:$0xff] %vm635_vm1, %v1217_v47  ;;  %1050 = vbcast.lane.b32.xlu1 %v932_v9, 280  ;;  %v1844_v45 = vsel %vm1740_vm2, %v1842_v50, 0.0 }
 0x1a6   : > { %1152 = vbcast.lane.b32.xlu0 %v1150_v40, 256 }
 0x1a7   : > { %v1841_v51 = vld [vmem:[#allocation3 + $0x28] sm:$0xff]  ;;  %v784_v53 = vpop.permute.xlu1 %783 }
 0x1a8   : > { %v1327_v54 = vpop.permute.xlu0 %1326  ;;  %v1843_v55 = vmul.f32 %v1841_v51, %v3471_v48  ;;  %851 = vst.msk [vmem:[#allocation2 + $0x28] sm:$0xff] %vm635_vm1, %v784_v53  ;;  %v1854_v16 = vld [vmem:[#allocation2 + $0x20] sm:$0xff] }
 0x1a9   : > { %1391 = vst.msk [vmem:[#allocation5 + $0x20] sm:$0xff] %vm621_vm0, %v1327_v54  ;;  %716 = vbcast.lane.b32.xlu1 %v710_v31, 264  ;;  %v1856_v25 = vmul.f32 %v1854_v16, %v3467_v42 }
 0x1aa   : > { %827 = vbcast.lane.b32.xlu0 %v710_v31, 272  ;;  %v1845_v56 = vsel %vm1740_vm2, %v1843_v55, 0.0 }
 0x1ab   : > { %v1846_v57 = vadd.f32 %v1845_v56, %v1844_v45  ;;  %v1221_v58 = vpop.permute.xlu1 %1220 }
 0x1ac   : > { %v1435_v59 = vpop.permute.xlu0 %1434  ;;  %1287 = vst.msk [vmem:[#allocation4 + $0x28] sm:$0xff] %vm635_vm1, %v1221_v58  ;;  %v1859_v24 = vld [vmem:[#allocation4 + $0x20] sm:$0xff] }
 0x1ad   : > { %1504 = vst.msk [vmem:[#allocation5 + $0x20] sm:$0xff] %vm635_vm1, %v1435_v59  ;;  %v1847_v60 = vrot.slane %v1846_v57, 4  ;;  %1156 = vbcast.lane.b32.xlu1 %v1150_v40, 264 }
 0x1ae   : > { %1264 = vbcast.lane.b32.xlu0 %v1150_v40, 272 }
 0x1af   : > { %v1848_v62 = vadd.f32 %v1847_v60, %v1846_v57  ;;  %v1331_v63 = vpop.permute.xlu1 %1330  ;;  %v1855_v27 = vld [vmem:[#allocation2 + $0x28] sm:$0xff] }
 0x1b0   : > { %v902_v3 = vpop.permute.xlu0 %901  ;;  %1392 = vst.msk [vmem:[#allocation5 + $0x28] sm:$0xff] %vm621_vm0, %v1331_v63  ;;  %v1857_v34 = vmul.f32 %v1855_v27, %v3471_v48 }
 0x1b1   : > { %957 = vst.msk [vmem:[#allocation3 + $0x30] sm:$0xff] %vm621_vm0, %v902_v3  ;;  %v1849_v5 = vrot.slane %v1848_v62, 2  ;;  %831 = vbcast.lane.b32.xlu1 %v710_v31, 280 }
 0x1b2   : > { %1370 = vbcast.lane.b32.xlu0 %v1368_v61, 256 }
 0x1b3   : > { %v1850_v8 = vadd.f32 %v1849_v5, %v1848_v62  ;;  %v1439_v9 = vpop.permute.xlu1 %1438  ;;  %v1860_v28 = vld [vmem:[#allocation4 + $0x28] sm:$0xff]  ;;  %v1379_v62 = vrot.slane %v3346_v21, %v3486_v6 }
 0x1b4   : > { %v1011_v10 = vpop.permute.xlu0 %1010  ;;  %1505 = vst.msk [vmem:[#allocation5 + $0x28] sm:$0xff] %vm635_vm1, %v1439_v9  ;;  %v1866_v22 = vld [vmem:[#allocation5 + $0x20] sm:$0xff] }
 0x1b5   : > { %1070 = vst.msk [vmem:[#allocation3 + $0x30] sm:$0xff] %vm635_vm1, %v1011_v10  ;;  %v1851_v14 = vrot.slane %v1850_v8, 1  ;;  %1268 = vbcast.lane.b32.xlu1 %v1150_v40, 280  ;;  %v1873_v4 = vmul.f32 %v2508_v20, %v1866_v22  ;;  %v3525_v10 = vld [vmem:[%s485_s13] sm:$0xff]  ;;  %s2200_s13 = sshll.u32 %s3766_s1, 4  ;;  %s3804_s13 = int_to_ptr.vmem [resolvable:$true] %s2200_s13 }
 0x1b6   : > { %1482 = vbcast.lane.b32.xlu0 %v1368_v61, 272  ;;  %s2805_s11 = scalar_lea.vmem %s3804_s13, 128  ;;  %p2812_p5 = scmp.lt.s32.totalorder %s3804_s13, %s2810_s19 }
 0x1b7   : > { %v1852_v18 = vadd.f32 %v1851_v14, %v1850_v8  ;;  %v906_v23 = vpop.permute.xlu1 %905  ;;  %p2806_p3 = scmp.ne.s32.totalorder %s3804_s13, %s2805_s11  ;;  %p2813_p7 = scmp.lt.s32.totalorder %s2811_s22, %s2805_s11 }
 0x1b8   : > { %v1120_v1 = vpop.permute.xlu0 %1119  ;;  %958 = vst.msk [vmem:[#allocation3 + $0x38] sm:$0xff] %vm621_vm0, %v906_v23 }
 0x1b9   : > { %1175 = vst.msk [vmem:[#allocation4 + $0x30] sm:$0xff] %vm621_vm0, %v1120_v1  ;;  %v1861_v26 = vmul.f32 %v1859_v24, %v1852_v18  ;;  %1374 = vbcast.lane.b32.xlu1 %v1368_v61, 264  ;;  %v1862_v29 = vmul.f32 %v1860_v28, %v1852_v18  ;;  %p2807_p11 = pnand %p2806_p3, %p3942_p13  ;;  %p2814_p8 = por %p2813_p7, %p2812_p5 }
 0x1ba   : > { %945 = vbcast.lane.b32.xlu0 %v943_v15, 256 }
 0x1bb   : > { %v1863_v30 = vadd.f32 %v1861_v26, %v1856_v25  ;;  %v1867_v31 = vld [vmem:[#allocation5 + $0x28] sm:$0xff]  ;;  %v1015_v32 = vpop.permute.xlu1 %1014  ;;  %v1864_v36 = vadd.f32 %v1862_v29, %v1857_v34  ;;  %v3533_v25 = vrot.slane %v3525_v10, %v3304_v2  ;;  %p2808_p10 = pneg %p2807_p11 }
 0x1bc   : > { %v792_v33 = vpop.permute.xlu0 %791  ;;  %1071 = vst.msk [vmem:[#allocation3 + $0x38] sm:$0xff] %vm635_vm1, %v1015_v32  ;;  %v1874_v39 = vmul.f32 %v2508_v20, %v1867_v31  ;;  %v1893_v40 = vld [vmem:[#allocation3 + $0x30] sm:$0xff]  ;;  %v3541_v32 = vrot.slane %v3525_v10, %v3314_v11 }
 0x1bd   : > { %852 = vst.msk [vmem:[#allocation2 + $0x30] sm:$0xff] %vm635_vm1, %v792_v33  ;;  %1486 = vbcast.lane.b32.xlu1 %v1368_v61, 280  ;;  %v3501_v38 = vadd.f32 %v1873_v4, %v1863_v30  ;;  %p2815_p12 = pnand %p2814_p8, %p2808_p10 }
 0x1be   : > { %1058 = vbcast.lane.b32.xlu0 %v943_v15, 272  ;;  %v3507_v46 = vadd.f32 %v1874_v39, %v1864_v36 }
 0x1bf   : > { %v1124_v41 = vpop.permute.xlu1 %1123  ;;  %v1895_v13 = vmul.f32 %v1893_v40, %v3501_v38  ;;  %v3550_v40 = vrot.slane %v3525_v10, %v3318_v12  ;;  %v3562_v12 = vrot.slane %v3525_v10, %v3329_v17  ;;  %v3572_v17 = vrot.slane %v3525_v10, %v3376_v37 }
 0x1c0   : > { %v1229_v43 = vpop.permute.xlu0 %1228  ;;  %1176 = vst.msk [vmem:[#allocation4 + $0x38] sm:$0xff] %vm621_vm0, %v1124_v41 }
 0x1c1   : > { %1288 = vst.msk [vmem:[#allocation4 + $0x30] sm:$0xff] %vm635_vm1, %v1229_v43  ;;  %949 = vbcast.lane.b32.xlu1 %v943_v15, 264  ;;  %v1897_v54 = vsel %vm1740_vm2, %v1895_v13, 0.0 }
 0x1c2   : > { %723 = vbcast.lane.b32.xlu0 %v721_v35, 256 }
 0x1c3   : > { %v1894_v47 = vld [vmem:[#allocation3 + $0x38] sm:$0xff]  ;;  %v796_v50 = vpop.permute.xlu1 %795 }
 0x1c4   : > { %v1338_v51 = vpop.permute.xlu0 %1337  ;;  %v1896_v53 = vmul.f32 %v1894_v47, %v3507_v46  ;;  %853 = vst.msk [vmem:[#allocation2 + $0x38] sm:$0xff] %vm635_vm1, %v796_v50  ;;  %v1907_v9 = vld [vmem:[#allocation2 + $0x30] sm:$0xff] }
 0x1c5   : > { %1393 = vst.msk [vmem:[#allocation5 + $0x30] sm:$0xff] %vm621_vm0, %v1338_v51  ;;  %1062 = vbcast.lane.b32.xlu1 %v943_v15, 280  ;;  %v2509_v15 = vld [vmem:[%s3286_s16 + $0x3] ss:$0 sm:$0xff]  ;;  %v1909_v22 = vmul.f32 %v1907_v9, %v3501_v38  ;;  %v3596_v9 = vrot.slane %v3525_v10, %v3486_v6 }
 0x1c6   : > { %1163 = vbcast.lane.b32.xlu0 %v1161_v44, 256  ;;  %v1898_v55 = vsel %vm1740_vm2, %v1896_v53, 0.0 }
 0x1c7   : > { %v1899_v19 = vadd.f32 %v1898_v55, %v1897_v54  ;;  %v1233_v45 = vpop.permute.xlu1 %1232 }
 0x1c8   : > { %v1447_v56 = vpop.permute.xlu0 %1446  ;;  %1289 = vst.msk [vmem:[#allocation4 + $0x38] sm:$0xff] %vm635_vm1, %v1233_v45  ;;  %v1912_v21 = vld [vmem:[#allocation4 + $0x30] sm:$0xff] }
 0x1c9   : > { %1506 = vst.msk [vmem:[#allocation5 + $0x30] sm:$0xff] %vm635_vm1, %v1447_v56  ;;  %v1900_v57 = vrot.slane %v1899_v19, 4  ;;  %727 = vbcast.lane.b32.xlu1 %v721_v35, 264 }
 0x1ca   : > { %839 = vbcast.lane.b32.xlu0 %v721_v35, 272 }
 0x1cb   : > { %v1901_v58 = vadd.f32 %v1900_v57, %v1899_v19  ;;  %v1342_v59 = vpop.permute.xlu1 %1341  ;;  %v1908_v1 = vld [vmem:[#allocation2 + $0x38] sm:$0xff] }
 0x1cc   : > { %v913_v60 = vpop.permute.xlu0 %912  ;;  %1394 = vst.msk [vmem:[#allocation5 + $0x38] sm:$0xff] %vm621_vm0, %v1342_v59  ;;  %v1910_v31 = vmul.f32 %v1908_v1, %v3507_v46  ;;  %v3580_v59 = vrot.slane %v3525_v10, %v3410_v7 }
 0x1cd   : > { %959 = vst.msk [vmem:[#allocation3 + $0x40] sm:$0xff] %vm621_vm0, %v913_v60  ;;  %v1902_v61 = vrot.slane %v1901_v58, 2  ;;  %1167 = vbcast.lane.b32.xlu1 %v1161_v44, 264 }
 0x1ce   : > { %1276 = vbcast.lane.b32.xlu0 %v1161_v44, 272 }
 0x1cf   : > { %v1903_v63 = vadd.f32 %v1902_v61, %v1901_v58  ;;  %v1451_v3 = vpop.permute.xlu1 %1450  ;;  %v1913_v24 = vld [vmem:[#allocation4 + $0x38] sm:$0xff] }
 0x1d0   : > { %v1023_v5 = vpop.permute.xlu0 %1022  ;;  %1507 = vst.msk [vmem:[#allocation5 + $0x38] sm:$0xff] %vm635_vm1, %v1451_v3  ;;  %v1919_v16 = vld [vmem:[#allocation5 + $0x30] sm:$0xff] }
 0x1d1   : > { %1072 = vst.msk [vmem:[#allocation3 + $0x40] sm:$0xff] %vm635_vm1, %v1023_v5  ;;  %v1904_v8 = vrot.slane %v1903_v63, 1  ;;  %843 = vbcast.lane.b32.xlu1 %v721_v35, 280  ;;  %v1926_v27 = vmul.f32 %v2509_v15, %v1919_v16 }
 0x1d2   : > { %1381 = vbcast.lane.b32.xlu0 %v1379_v62, 256 }
 0x1d3   : > { %v1905_v14 = vadd.f32 %v1904_v8, %v1903_v63  ;;  %v917_v18 = vpop.permute.xlu1 %916  ;;  %v3588_v63 = vrot.slane %v3525_v10, %v3448_v0 }
 0x1d4   : > { %v691_v20 = vpop.permute.xlu0 %690  ;;  %960 = vst.msk [vmem:[#allocation3 + $0x48] sm:$0xff] %vm621_vm0, %v917_v18 }
 0x1d5   : > { %738 = vst.msk [vmem:[#allocation2 + $0x40] sm:$0xff] %vm621_vm0, %v691_v20  ;;  %v1914_v23 = vmul.f32 %v1912_v21, %v1905_v14  ;;  %1280 = vbcast.lane.b32.xlu1 %v1161_v44, 280  ;;  %v1915_v26 = vmul.f32 %v1913_v24, %v1905_v14  ;;  %v2510_v20 = vld [vmem:[%s3286_s16 + $0x4] ss:$0 sm:$0xff] }
 0x1d6   : > { %1494 = vbcast.lane.b32.xlu0 %v1379_v62, 272 }
 0x1d7   : > { %v1916_v28 = vadd.f32 %v1914_v23, %v1909_v22  ;;  %v1920_v29 = vld [vmem:[#allocation5 + $0x38] sm:$0xff]  ;;  %v1027_v4 = vpop.permute.xlu1 %1026  ;;  %v1917_v2 = vadd.f32 %v1915_v26, %v1910_v31 }
 0x1d8   : > { %v1131_v30 = vpop.permute.xlu0 %1130  ;;  %1073 = vst.msk [vmem:[#allocation3 + $0x48] sm:$0xff] %vm635_vm1, %v1027_v4  ;;  %v1927_v34 = vmul.f32 %v2509_v15, %v1920_v29  ;;  %v1946_v35 = vld [vmem:[#allocation3 + $0x40] sm:$0xff] }
 0x1d9   : > { %1177 = vst.msk [vmem:[#allocation4 + $0x40] sm:$0xff] %vm621_vm0, %v1131_v30  ;;  %1385 = vbcast.lane.b32.xlu1 %v1379_v62, 264  ;;  %v3543_v33 = vadd.f32 %v1926_v27, %v1916_v28 }
 0x1da   : > { %1522 = vbcast.lane.b32.xlu0 %v3533_v25, 256  ;;  %v3552_v11 = vadd.f32 %v1927_v34, %v1917_v2 }
 0x1db   : > { %v695_v36 = vpop.permute.xlu1 %694  ;;  %v1948_v41 = vmul.f32 %v1946_v35, %v3543_v33 }
 0x1dc   : > { %v804_v39 = vpop.permute.xlu0 %803  ;;  %739 = vst.msk [vmem:[#allocation2 + $0x48] sm:$0xff] %vm621_vm0, %v695_v36 }
 0x1dd   : > { %854 = vst.msk [vmem:[#allocation2 + $0x40] sm:$0xff] %vm635_vm1, %v804_v39  ;;  %1498 = vbcast.lane.b32.xlu1 %v1379_v62, 280  ;;  %v1950_v50 = vsel %vm1740_vm2, %v1948_v41, 0.0 }
 0x1de   : > { %1533 = vbcast.lane.b32.xlu0 %v3541_v32, 256 }
 0x1df   : > { %v1947_v43 = vld [vmem:[#allocation3 + $0x48] sm:$0xff]  ;;  %v1135_v44 = vpop.permute.xlu1 %1134 }
 0x1e0   : > { %v1241_v13 = vpop.permute.xlu0 %1240  ;;  %v1949_v47 = vmul.f32 %v1947_v43, %v3552_v11  ;;  %1178 = vst.msk [vmem:[#allocation4 + $0x48] sm:$0xff] %vm621_vm0, %v1135_v44 }
 0x1e1   : > { %1290 = vst.msk [vmem:[#allocation4 + $0x40] sm:$0xff] %vm635_vm1, %v1241_v13  ;;  %1526 = vbcast.lane.b32.xlu1 %v3533_v25, 264 }
 0x1e2   : > { %1544 = vbcast.lane.b32.xlu0 %v3550_v40, 256  ;;  %v1951_v51 = vsel %vm1740_vm2, %v1949_v47, 0.0 }
 0x1e3   : > { %v1952_v53 = vadd.f32 %v1951_v51, %v1950_v50  ;;  %v808_v54 = vpop.permute.xlu1 %807 }
 0x1e4   : > { %v1349_v55 = vpop.permute.xlu0 %1348  ;;  %855 = vst.msk [vmem:[#allocation2 + $0x48] sm:$0xff] %vm635_vm1, %v808_v54  ;;  %v1960_v14 = vld [vmem:[#allocation2 + $0x40] sm:$0xff] }
 0x1e5   : > { %1395 = vst.msk [vmem:[#allocation5 + $0x40] sm:$0xff] %vm621_vm0, %v1349_v55  ;;  %v1953_v19 = vrot.slane %v1952_v53, 4  ;;  %1537 = vbcast.lane.b32.xlu1 %v3541_v32, 264  ;;  %v1962_v22 = vmul.f32 %v1960_v14, %v3543_v33 }
 0x1e6   : > { %1555 = vbcast.lane.b32.xlu0 %v3562_v12, 256 }
 0x1e7   : > { %v1954_v45 = vadd.f32 %v1953_v19, %v1952_v53  ;;  %v1245_v56 = vpop.permute.xlu1 %1244 }
 0x1e8   : > { %v1459_v57 = vpop.permute.xlu0 %1458  ;;  %1291 = vst.msk [vmem:[#allocation4 + $0x48] sm:$0xff] %vm635_vm1, %v1245_v56  ;;  %v1965_v8 = vld [vmem:[#allocation4 + $0x40] sm:$0xff] }
 0x1e9   : > { %1508 = vst.msk [vmem:[#allocation5 + $0x40] sm:$0xff] %vm635_vm1, %v1459_v57  ;;  %v1955_v58 = vrot.slane %v1954_v45, 2  ;;  %1548 = vbcast.lane.b32.xlu1 %v3550_v40, 264 }
 0x1ea   : > { %1566 = vbcast.lane.b32.xlu0 %v3572_v17, 256 }
 0x1eb   : > { %v1956_v60 = vadd.f32 %v1955_v58, %v1954_v45  ;;  %v1353_v61 = vpop.permute.xlu1 %1352  ;;  %v1961_v23 = vld [vmem:[#allocation2 + $0x48] sm:$0xff] }
 0x1ec   : > { %v924_v37 = vpop.permute.xlu0 %923  ;;  %1396 = vst.msk [vmem:[#allocation5 + $0x48] sm:$0xff] %vm621_vm0, %v1353_v61  ;;  %v1963_v28 = vmul.f32 %v1961_v23, %v3552_v11 }
 0x1ed   : > { %961 = vst.msk [vmem:[#allocation3 + $0x50] sm:$0xff] %vm621_vm0, %v924_v37  ;;  %v1957_v62 = vrot.slane %v1956_v60, 1  ;;  %1559 = vbcast.lane.b32.xlu1 %v3562_v12, 264 }
 0x1ee   : > { %1577 = vbcast.lane.b32.xlu0 %v3580_v59, 256 }
 0x1ef   : > { %v1463_v3 = vpop.permute.xlu1 %1462  ;;  %v1958_v5 = vadd.f32 %v1957_v62, %v1956_v60  ;;  %v1966_v18 = vld [vmem:[#allocation4 + $0x48] sm:$0xff] }
 0x1f0   : > { %v1035_v7 = vpop.permute.xlu0 %1034  ;;  %1509 = vst.msk [vmem:[#allocation5 + $0x48] sm:$0xff] %vm635_vm1, %v1463_v3  ;;  %v1972_v21 = vld [vmem:[#allocation5 + $0x40] sm:$0xff] }
 0x1f1   : > { %1074 = vst.msk [vmem:[#allocation3 + $0x50] sm:$0xff] %vm635_vm1, %v1035_v7  ;;  %1570 = vbcast.lane.b32.xlu1 %v3572_v17, 264  ;;  %v1967_v16 = vmul.f32 %v1965_v8, %v1958_v5  ;;  %v1968_v26 = vmul.f32 %v1966_v18, %v1958_v5  ;;  %v1979_v27 = vmul.f32 %v2510_v20, %v1972_v21  ;;  %v2511_v8 = vld [vmem:[%s3286_s16 + $0x5] ss:$0 sm:$0xff] }
 0x1f2   : > { %1588 = vbcast.lane.b32.xlu0 %v3588_v63, 256 }
 0x1f3   : > { %v928_v0 = vpop.permute.xlu1 %927  ;;  %v1969_v24 = vadd.f32 %v1967_v16, %v1962_v22  ;;  %v1970_v2 = vadd.f32 %v1968_v26, %v1963_v28 }
 0x1f4   : > { %v702_v15 = vpop.permute.xlu0 %701  ;;  %962 = vst.msk [vmem:[#allocation3 + $0x58] sm:$0xff] %vm621_vm0, %v928_v0 }
 0x1f5   : > { %740 = vst.msk [vmem:[#allocation2 + $0x50] sm:$0xff] %vm621_vm0, %v702_v15  ;;  %1581 = vbcast.lane.b32.xlu1 %v3580_v59, 264  ;;  %v3609_v34 = vadd.f32 %v1979_v27, %v1969_v24 }
 0x1f6   : > { %1599 = vbcast.lane.b32.xlu0 %v3596_v9, 256 }
 0x1f7   : > { %v1973_v6 = vld [vmem:[#allocation5 + $0x48] sm:$0xff]  ;;  %v1039_v10 = vpop.permute.xlu1 %1038 }
 0x1f8   : > { %v1142_v1 = vpop.permute.xlu0 %1141  ;;  %1075 = vst.msk [vmem:[#allocation3 + $0x58] sm:$0xff] %vm635_vm1, %v1039_v10  ;;  %v1980_v29 = vmul.f32 %v2510_v20, %v1973_v6  ;;  %v1999_v4 = vld [vmem:[#allocation3 + $0x50] sm:$0xff] }
 0x1f9   : > { %1179 = vst.msk [vmem:[#allocation4 + $0x50] sm:$0xff] %vm621_vm0, %v1142_v1  ;;  %1592 = vbcast.lane.b32.xlu1 %v3588_v63, 264  ;;  %v2001_v36 = vmul.f32 %v1999_v4, %v3609_v34 }
 0x1fa   : > { %1628 = vbcast.lane.b32.xlu0 %v3533_v25, 272  ;;  %v3615_v35 = vadd.f32 %v1980_v29, %v1970_v2 }
 0x1fb   : > { %v706_v30 = vpop.permute.xlu1 %705  ;;  %v2003_v13 = vsel %vm1740_vm2, %v2001_v36, 0.0 }
 0x1fc   : > { %v816_v31 = vpop.permute.xlu0 %815  ;;  %741 = vst.msk [vmem:[#allocation2 + $0x58] sm:$0xff] %vm621_vm0, %v706_v30 }
 0x1fd   : > { %856 = vst.msk [vmem:[#allocation2 + $0x50] sm:$0xff] %vm635_vm1, %v816_v31  ;;  %1603 = vbcast.lane.b32.xlu1 %v3596_v9, 264 }
 0x1fe   : > { %1640 = vbcast.lane.b32.xlu0 %v3541_v32, 272 }
 0x1ff   : > { %v2000_v39 = vld [vmem:[#allocation3 + $0x58] sm:$0xff]  ;;  %v1146_v41 = vpop.permute.xlu1 %1145 }
 0x200   : > { %v1253_v43 = vpop.permute.xlu0 %1252  ;;  %v2002_v44 = vmul.f32 %v2000_v39, %v3615_v35  ;;  %1180 = vst.msk [vmem:[#allocation4 + $0x58] sm:$0xff] %vm621_vm0, %v1146_v41 }
 0x201   : > { %1292 = vst.msk [vmem:[#allocation4 + $0x50] sm:$0xff] %vm635_vm1, %v1253_v43  ;;  %1632 = vbcast.lane.b32.xlu1 %v3533_v25, 280 }
 0x202   : > { %1652 = vbcast.lane.b32.xlu0 %v3550_v40, 272  ;;  %v2004_v47 = vsel %vm1740_vm2, %v2002_v44, 0.0 }
 0x203   : > { %v2005_v50 = vadd.f32 %v2004_v47, %v2003_v13  ;;  %v820_v51 = vpop.permute.xlu1 %819 }
 0x204   : > { %v1360_v53 = vpop.permute.xlu0 %1359  ;;  %857 = vst.msk [vmem:[#allocation2 + $0x58] sm:$0xff] %vm635_vm1, %v820_v51  ;;  %v2013_v62 = vld [vmem:[#allocation2 + $0x50] sm:$0xff] }
 0x205   : > { %1397 = vst.msk [vmem:[#allocation5 + $0x50] sm:$0xff] %vm621_vm0, %v1360_v53  ;;  %v2006_v54 = vrot.slane %v2005_v50, 4  ;;  %1644 = vbcast.lane.b32.xlu1 %v3541_v32, 280  ;;  %v2015_v0 = vmul.f32 %v2013_v62, %v3609_v34 }
 0x206   : > { %1664 = vbcast.lane.b32.xlu0 %v3562_v12, 272 }
 0x207   : > { %v2007_v55 = vadd.f32 %v2006_v54, %v2005_v50  ;;  %v1257_v25 = vpop.permute.xlu1 %1256 }
 0x208   : > { %v1471_v19 = vpop.permute.xlu0 %1470  ;;  %1293 = vst.msk [vmem:[#allocation4 + $0x58] sm:$0xff] %vm635_vm1, %v1257_v25 }
 0x209   : > { %1510 = vst.msk [vmem:[#allocation5 + $0x50] sm:$0xff] %vm635_vm1, %v1471_v19  ;;  %v2008_v45 = vrot.slane %v2007_v55, 2  ;;  %1656 = vbcast.lane.b32.xlu1 %v3550_v40, 280  ;;  %v2018_v40 = vld [vmem:[#allocation4 + $0x50] sm:$0xff] }
 0x20a   : > { %1676 = vbcast.lane.b32.xlu0 %v3572_v17, 272 }
 0x20b   : > { %v2009_v56 = vadd.f32 %v2008_v45, %v2007_v55  ;;  %v1364_v57 = vpop.permute.xlu1 %1363 }
 0x20c   : > { %v935_v58 = vpop.permute.xlu0 %934  ;;  %1398 = vst.msk [vmem:[#allocation5 + $0x58] sm:$0xff] %vm621_vm0, %v1364_v57 }
 0x20d   : > { %963 = vst.msk [vmem:[#allocation3 + $0x60] sm:$0xff] %vm621_vm0, %v935_v58  ;;  %v2010_v32 = vrot.slane %v2009_v56, 1  ;;  %1668 = vbcast.lane.b32.xlu1 %v3562_v12, 280 }
 0x20e   : > { %1688 = vbcast.lane.b32.xlu0 %v3580_v59, 272 }
 0x20f   : > { %v1475_v60 = vpop.permute.xlu1 %1474  ;;  %v2011_v37 = vadd.f32 %v2010_v32, %v2009_v56  ;;  %v2019_v12 = vld [vmem:[#allocation4 + $0x58] sm:$0xff] }
 0x210   : > { %v1047_v61 = vpop.permute.xlu0 %1046  ;;  %1511 = vst.msk [vmem:[#allocation5 + $0x58] sm:$0xff] %vm635_vm1, %v1475_v60  ;;  %v2025_v14 = vld [vmem:[#allocation5 + $0x50] sm:$0xff] }
 0x211   : > { %1076 = vst.msk [vmem:[#allocation3 + $0x60] sm:$0xff] %vm635_vm1, %v1047_v61  ;;  %1680 = vbcast.lane.b32.xlu1 %v3572_v17, 280  ;;  %v2020_v5 = vmul.f32 %v2018_v40, %v2011_v37  ;;  %v2014_v17 = vld [vmem:[#allocation2 + $0x58] sm:$0xff]  ;;  %v2021_v21 = vmul.f32 %v2019_v12, %v2011_v37  ;;  %v2032_v22 = vmul.f32 %v2511_v8, %v2025_v14  ;;  %v2512_v61 = vld [vmem:[%s3286_s16 + $0x6] ss:$0 sm:$0xff] }
 0x212   : > { %1700 = vbcast.lane.b32.xlu0 %v3588_v63, 272  ;;  %v2016_v23 = vmul.f32 %v2014_v17, %v3615_v35 }
 0x213   : > { %v939_v3 = vpop.permute.xlu1 %938  ;;  %v2022_v20 = vadd.f32 %v2020_v5, %v2015_v0 }
 0x214   : > { %v713_v7 = vpop.permute.xlu0 %712  ;;  %964 = vst.msk [vmem:[#allocation3 + $0x68] sm:$0xff] %vm621_vm0, %v939_v3  ;;  %v2023_v24 = vadd.f32 %v2021_v21, %v2016_v23 }
 0x215   : > { %742 = vst.msk [vmem:[#allocation2 + $0x60] sm:$0xff] %vm621_vm0, %v713_v7  ;;  %1692 = vbcast.lane.b32.xlu1 %v3580_v59, 280  ;;  %v3651_v26 = vadd.f32 %v2032_v22, %v2022_v20 }
 0x216   : > { %1712 = vbcast.lane.b32.xlu0 %v3596_v9, 272 }
 0x217   : > { %v2026_v15 = vld [vmem:[#allocation5 + $0x58] sm:$0xff]  ;;  %v1051_v16 = vpop.permute.xlu1 %1050 }
 0x218   : > { %v1153_v18 = vpop.permute.xlu0 %1152  ;;  %1077 = vst.msk [vmem:[#allocation3 + $0x68] sm:$0xff] %vm635_vm1, %v1051_v16  ;;  %v2033_v59 = vmul.f32 %v2511_v8, %v2026_v15  ;;  %v2052_v6 = vld [vmem:[#allocation3 + $0x60] sm:$0xff] }
 0x219   : > { %1181 = vst.msk [vmem:[#allocation4 + $0x60] sm:$0xff] %vm621_vm0, %v1153_v18  ;;  %1704 = vbcast.lane.b32.xlu1 %v3588_v63, 280  ;;  %v2054_v28 = vmul.f32 %v2052_v6, %v3651_v26 }
 0x21a   : > { %v3656_v27 = vadd.f32 %v2033_v59, %v2023_v24 }
 0x21b   : > { %v717_v10 = vpop.permute.xlu1 %716  ;;  %v2056_v31 = vsel %vm1740_vm2, %v2054_v28, 0.0 }
 0x21c   : > { %v828_v1 = vpop.permute.xlu0 %827  ;;  %743 = vst.msk [vmem:[#allocation2 + $0x68] sm:$0xff] %vm621_vm0, %v717_v10 }
 0x21d   : > { %858 = vst.msk [vmem:[#allocation2 + $0x60] sm:$0xff] %vm635_vm1, %v828_v1  ;;  %1716 = vbcast.lane.b32.xlu1 %v3596_v9, 280 }
 0x21f   : > { %v2053_v63 = vld [vmem:[#allocation3 + $0x68] sm:$0xff]  ;;  %v1157_v29 = vpop.permute.xlu1 %1156 }
 0x220   : > { %v1265_v4 = vpop.permute.xlu0 %1264  ;;  %v2055_v30 = vmul.f32 %v2053_v63, %v3656_v27  ;;  %1182 = vst.msk [vmem:[#allocation4 + $0x68] sm:$0xff] %vm621_vm0, %v1157_v29 }
 0x221   : > { %1294 = vst.msk [vmem:[#allocation4 + $0x60] sm:$0xff] %vm635_vm1, %v1265_v4 }
 0x222   : > { %v2057_v2 = vsel %vm1740_vm2, %v2055_v30, 0.0 }
 0x223   : > { %v2058_v36 = vadd.f32 %v2057_v2, %v2056_v31  ;;  %v832_v39 = vpop.permute.xlu1 %831 }
 0x224   : > { %v1371_v9 = vpop.permute.xlu0 %1370  ;;  %859 = vst.msk [vmem:[#allocation2 + $0x68] sm:$0xff] %vm635_vm1, %v832_v39  ;;  %v2066_v56 = vld [vmem:[#allocation2 + $0x60] sm:$0xff] }
 0x225   : > { %1399 = vst.msk [vmem:[#allocation5 + $0x60] sm:$0xff] %vm621_vm0, %v1371_v9  ;;  %v2059_v41 = vrot.slane %v2058_v36, 4  ;;  %v2068_v40 = vmul.f32 %v2066_v56, %v3651_v26 }
 0x227   : > { %v2060_v43 = vadd.f32 %v2059_v41, %v2058_v36  ;;  %v1269_v44 = vpop.permute.xlu1 %1268 }
 0x228   : > { %v1483_v13 = vpop.permute.xlu0 %1482  ;;  %1295 = vst.msk [vmem:[#allocation4 + $0x68] sm:$0xff] %vm635_vm1, %v1269_v44  ;;  %v2071_v45 = vld [vmem:[#allocation4 + $0x60] sm:$0xff] }
 0x229   : > { %1512 = vst.msk [vmem:[#allocation5 + $0x60] sm:$0xff] %vm635_vm1, %v1483_v13  ;;  %v2061_v47 = vrot.slane %v2060_v43, 2 }
 0x22b   : > { %v2062_v50 = vadd.f32 %v2061_v47, %v2060_v43  ;;  %v1375_v51 = vpop.permute.xlu1 %1374  ;;  %v2067_v62 = vld [vmem:[#allocation2 + $0x68] sm:$0xff] }
 0x22c   : > { %v946_v53 = vpop.permute.xlu0 %945  ;;  %1400 = vst.msk [vmem:[#allocation5 + $0x68] sm:$0xff] %vm621_vm0, %v1375_v51  ;;  %v2069_v0 = vmul.f32 %v2067_v62, %v3656_v27 }
 0x22d   : > { %965 = vst.msk [vmem:[#allocation3 + $0x70] sm:$0xff] %vm621_vm0, %v946_v53  ;;  %v2063_v54 = vrot.slane %v2062_v50, 1 }
 0x22f   : > { %v1487_v55 = vpop.permute.xlu1 %1486  ;;  %v2064_v19 = vadd.f32 %v2063_v54, %v2062_v50  ;;  %v2072_v60 = vld [vmem:[#allocation4 + $0x68] sm:$0xff] }
 0x230   : > { %v1059_v25 = vpop.permute.xlu0 %1058  ;;  %1513 = vst.msk [vmem:[#allocation5 + $0x68] sm:$0xff] %vm635_vm1, %v1487_v55  ;;  %v2078_v37 = vld [vmem:[#allocation5 + $0x60] sm:$0xff] }
 0x231   : > { %1078 = vst.msk [vmem:[#allocation3 + $0x70] sm:$0xff] %vm635_vm1, %v1059_v25  ;;  %v2073_v32 = vmul.f32 %v2071_v45, %v2064_v19  ;;  %v2074_v8 = vmul.f32 %v2072_v60, %v2064_v19  ;;  %v2085_v14 = vmul.f32 %v2512_v61, %v2078_v37  ;;  %v2513_v50 = vld [vmem:[%s3286_s16 + $0x7] ss:$0 sm:$0xff]  ;;  %s2180_s16 = scalar_lea.sflag [#allocation10], %s3267_s26 }
 0x233   : > { %v950_v57 = vpop.permute.xlu1 %949  ;;  %v2075_v12 = vadd.f32 %v2073_v32, %v2068_v40  ;;  %v2076_v20 = vadd.f32 %v2074_v8, %v2069_v0 }
 0x234   : > { %v724_v58 = vpop.permute.xlu0 %723  ;;  %966 = vst.msk [vmem:[#allocation3 + $0x78] sm:$0xff] %vm621_vm0, %v950_v57 }
 0x235   : > { %744 = vst.msk [vmem:[#allocation2 + $0x70] sm:$0xff] %vm621_vm0, %v724_v58  ;;  %v3679_v21 = vadd.f32 %v2085_v14, %v2075_v12 }
 0x237   : > { %v2079_v3 = vld [vmem:[#allocation5 + $0x68] sm:$0xff]  ;;  %v1063_v7 = vpop.permute.xlu1 %1062 }
 0x238   : > { %v1164_v5 = vpop.permute.xlu0 %1163  ;;  %1079 = vst.msk [vmem:[#allocation3 + $0x78] sm:$0xff] %vm635_vm1, %v1063_v7  ;;  %v2086_v17 = vmul.f32 %v2512_v61, %v2079_v3  ;;  %v2105_v15 = vld [vmem:[#allocation3 + $0x70] sm:$0xff] }
 0x239   : > { %1183 = vst.msk [vmem:[#allocation4 + $0x70] sm:$0xff] %vm621_vm0, %v1164_v5  ;;  %v2107_v23 = vmul.f32 %v2105_v15, %v3679_v21 }
 0x23a   : > { %v3683_v22 = vadd.f32 %v2086_v17, %v2076_v20 }
 0x23b   : > { %v728_v16 = vpop.permute.xlu1 %727  ;;  %v2109_v24 = vsel %vm1740_vm2, %v2107_v23, 0.0 }
 0x23c   : > { %v840_v18 = vpop.permute.xlu0 %839  ;;  %745 = vst.msk [vmem:[#allocation2 + $0x78] sm:$0xff] %vm621_vm0, %v728_v16 }
 0x23d   : > { %860 = vst.msk [vmem:[#allocation2 + $0x70] sm:$0xff] %vm635_vm1, %v840_v18 }
 0x23f   : > { %v2106_v59 = vld [vmem:[#allocation3 + $0x78] sm:$0xff]  ;;  %v1168_v6 = vpop.permute.xlu1 %1167 }
 0x240   : > { %v1277_v10 = vpop.permute.xlu0 %1276  ;;  %v2108_v1 = vmul.f32 %v2106_v59, %v3683_v22  ;;  %1184 = vst.msk [vmem:[#allocation4 + $0x78] sm:$0xff] %vm621_vm0, %v1168_v6 }
 0x241   : > { %1296 = vst.msk [vmem:[#allocation4 + $0x70] sm:$0xff] %vm635_vm1, %v1277_v10 }
 0x242   : > { %v2110_v28 = vsel %vm1740_vm2, %v2108_v1, 0.0 }
 0x243   : > { %v2111_v63 = vadd.f32 %v2110_v28, %v2109_v24  ;;  %v844_v29 = vpop.permute.xlu1 %843 }
 0x244   : > { %v1382_v4 = vpop.permute.xlu0 %1381  ;;  %861 = vst.msk [vmem:[#allocation2 + $0x78] sm:$0xff] %vm635_vm1, %v844_v29  ;;  %v2119_v13 = vld [vmem:[#allocation2 + $0x70] sm:$0xff] }
 0x245   : > { %1401 = vst.msk [vmem:[#allocation5 + $0x70] sm:$0xff] %vm621_vm0, %v1382_v4  ;;  %v2112_v30 = vrot.slane %v2111_v63, 4  ;;  %v2121_v25 = vmul.f32 %v2119_v13, %v3679_v21 }
 0x247   : > { %v2113_v31 = vadd.f32 %v2112_v30, %v2111_v63  ;;  %v1281_v2 = vpop.permute.xlu1 %1280 }
 0x248   : > { %v1495_v36 = vpop.permute.xlu0 %1494  ;;  %1297 = vst.msk [vmem:[#allocation4 + $0x78] sm:$0xff] %vm635_vm1, %v1281_v2  ;;  %v2124_v47 = vld [vmem:[#allocation4 + $0x70] sm:$0xff] }
 0x249   : > { %1514 = vst.msk [vmem:[#allocation5 + $0x70] sm:$0xff] %vm635_vm1, %v1495_v36  ;;  %v2114_v39 = vrot.slane %v2113_v31, 2 }
 0x24b   : > { %v2115_v9 = vadd.f32 %v2114_v39, %v2113_v31  ;;  %v1386_v41 = vpop.permute.xlu1 %1385  ;;  %v2120_v58 = vld [vmem:[#allocation2 + $0x78] sm:$0xff] }
 0x24c   : > { %v1523_v43 = vpop.permute.xlu0 %1522  ;;  %1402 = vst.msk [vmem:[#allocation5 + $0x78] sm:$0xff] %vm621_vm0, %v1386_v41  ;;  %v2122_v40 = vmul.f32 %v2120_v58, %v3683_v22 }
 0x24d   : > { %1605 = vst.msk [vmem:[#allocation6] sm:$0xff] %vm621_vm0, %v1523_v43  ;;  %v2116_v44 = vrot.slane %v2115_v9, 1 }
 0x24f   : > { %v2117_v51 = vadd.f32 %v2116_v44, %v2115_v9  ;;  %v1499_v54 = vpop.permute.xlu1 %1498  ;;  %v2125_v45 = vld [vmem:[#allocation4 + $0x78] sm:$0xff] }
 0x250   : > { %v2131_v53 = vld [vmem:[#allocation5 + $0x70] sm:$0xff]  ;;  %v1534_v55 = vpop.permute.xlu0 %1533  ;;  %1515 = vst.msk [vmem:[#allocation5 + $0x78] sm:$0xff] %vm635_vm1, %v1499_v54 }
 0x251   : > { %1607 = vst.msk [vmem:[#allocation6 + $0x10] sm:$0xff] %vm621_vm0, %v1534_v55  ;;  %v2126_v19 = vmul.f32 %v2124_v47, %v2117_v51  ;;  %v2138_v56 = vmul.f32 %v2513_v50, %v2131_v53  ;;  %v2127_v61 = vmul.f32 %v2125_v45, %v2117_v51 }
 0x253   : > { %v2128_v57 = vadd.f32 %v2126_v19, %v2121_v25  ;;  %v1527_v32 = vpop.permute.xlu1 %1526  ;;  %v2129_v5 = vadd.f32 %v2127_v61, %v2122_v40 }
 0x254   : > { %v1545_v60 = vpop.permute.xlu0 %1544  ;;  %1606 = vst.msk [vmem:[#allocation6 + $0x8] sm:$0xff] %vm621_vm0, %v1527_v32 }
 0x255   : > { %1609 = vst.msk [vmem:[#allocation6 + $0x20] sm:$0xff] %vm621_vm0, %v1545_v60  ;;  %v3703_v37 = vadd.f32 %v2138_v56, %v2128_v57 }
 0x257   : > { %2157 = vst.msk [vmem:[#allocation7] sm:$0xff] %vm1740_vm2, %v3703_v37  ;;  %v2132_v62 = vld [vmem:[#allocation5 + $0x78] sm:$0xff]  ;;  %v1538_v3 = vpop.permute.xlu1 %1537 }
 0x258   : > { %v1556_v7 = vpop.permute.xlu0 %1555  ;;  %v2139_v12 = vmul.f32 %v2513_v50, %v2132_v62  ;;  %1608 = vst.msk [vmem:[#allocation6 + $0x18] sm:$0xff] %vm621_vm0, %v1538_v3 }
 0x259   : > { %1611 = vst.msk [vmem:[#allocation6 + $0x30] sm:$0xff] %vm621_vm0, %v1556_v7 }
 0x25a   : > { %v3710_v8 = vadd.f32 %v2139_v12, %v2129_v5 }
 0x25b   : > { %v1549_v14 = vpop.permute.xlu1 %1548 }
 0x25c   : > { %v1567_v0 = vpop.permute.xlu0 %1566  ;;  %2158 = vst.msk [vmem:[#allocation7 + $0x8] sm:$0xff] %vm1740_vm2, %v3710_v8 }
 0x25d   : > { %1610 = vst.msk [vmem:[#allocation6 + $0x28] sm:$0xff] %vm621_vm0, %v1549_v14  ;;  %1613 = vst.msk [vmem:[#allocation6 + $0x40] sm:$0xff] %vm621_vm0, %v1567_v0 }
 0x25e   : > { %v2166_v17 = vld [vmem:[#allocation7] sm:$0xff] }
 0x25f   : > { %v1560_v15 = vpop.permute.xlu1 %1559  ;;  %2170 = vrot.lane.b32.xlu0 %v2166_v17, %s2942_s14  ;;  %2164 = vst.msk [vmem:[%s3718_s20] sm:$0xff] %vm621_vm0, %v2166_v17 }
 0x260   : > { %v1578_v16 = vpop.permute.xlu0 %1577  ;;  %1612 = vst.msk [vmem:[#allocation6 + $0x38] sm:$0xff] %vm621_vm0, %v1560_v15 }
 0x261   : > { %1615 = vst.msk [vmem:[#allocation6 + $0x50] sm:$0xff] %vm621_vm0, %v1578_v16 }
 0x263   : > { %v1571_v18 = vpop.permute.xlu1 %1570  ;;  %v2167_v23 = vld [vmem:[#allocation7 + $0x8] sm:$0xff] }
 0x264   : > { %v1589_v20 = vpop.permute.xlu0 %1588  ;;  %1614 = vst.msk [vmem:[#allocation6 + $0x48] sm:$0xff] %vm621_vm0, %v1571_v18  ;;  %2172 = vrot.lane.b32.xlu1 %v2167_v23, %s2942_s14  ;;  %2165 = vst.msk [vmem:[%s3718_s20 + $0x8] sm:$0xff] %vm621_vm0, %v2167_v23 }
 0x265   : > { %1617 = vst.msk [vmem:[#allocation6 + $0x60] sm:$0xff] %vm621_vm0, %v1589_v20 }
 0x267   : > { %v1582_v59 = vpop.permute.xlu1 %1581 }
 0x268   : > { %v1600_v6 = vpop.permute.xlu0 %1599  ;;  %1616 = vst.msk [vmem:[#allocation6 + $0x58] sm:$0xff] %vm621_vm0, %v1582_v59 }
 0x269   : > { %1619 = vst.msk [vmem:[#allocation6 + $0x70] sm:$0xff] %vm621_vm0, %v1600_v6 }
 0x26b   : > { %v1593_v10 = vpop.permute.xlu1 %1592 }
 0x26c   : > { %v1629_v1 = vpop.permute.xlu0 %1628  ;;  %1618 = vst.msk [vmem:[#allocation6 + $0x68] sm:$0xff] %vm621_vm0, %v1593_v10 }
 0x26d   : > { %1718 = vst.msk [vmem:[#allocation6] sm:$0xff] %vm635_vm1, %v1629_v1 }
 0x26f   : > { %v1604_v24 = vpop.permute.xlu1 %1603 }
 0x270   : > { %v1641_v28 = vpop.permute.xlu0 %1640  ;;  %1620 = vst.msk [vmem:[#allocation6 + $0x78] sm:$0xff] %vm621_vm0, %v1604_v24 }
 0x271   : > { %1720 = vst.msk [vmem:[#allocation6 + $0x10] sm:$0xff] %vm635_vm1, %v1641_v28 }
 0x273   : > { %v1633_v63 = vpop.permute.xlu1 %1632 }
 0x274   : > { %v1653_v29 = vpop.permute.xlu0 %1652  ;;  %1719 = vst.msk [vmem:[#allocation6 + $0x8] sm:$0xff] %vm635_vm1, %v1633_v63  ;;  %v1771_v4 = vld [vmem:[#allocation6] sm:$0xff] }
 0x275   : > { %1722 = vst.msk [vmem:[#allocation6 + $0x20] sm:$0xff] %vm635_vm1, %v1653_v29  ;;  %v1773_v2 = vmul.f32 %v1771_v4, %v3431_v52 }
 0x277   : > { %v1645_v30 = vpop.permute.xlu1 %1644  ;;  %v1775_v44 = vsel %vm1740_vm2, %v1773_v2, 0.0 }
 0x278   : > { %v1665_v31 = vpop.permute.xlu0 %1664  ;;  %1721 = vst.msk [vmem:[#allocation6 + $0x18] sm:$0xff] %vm635_vm1, %v1645_v30  ;;  %v1825_v36 = vld [vmem:[#allocation6 + $0x10] sm:$0xff] }
 0x279   : > { %1724 = vst.msk [vmem:[#allocation6 + $0x30] sm:$0xff] %vm635_vm1, %v1665_v31  ;;  %v1827_v13 = vmul.f32 %v1825_v36, %v3467_v42 }
 0x27b   : > { %v1772_v39 = vld [vmem:[#allocation6 + $0x8] sm:$0xff]  ;;  %v1657_v9 = vpop.permute.xlu1 %1656  ;;  %v1829_v25 = vsel %vm1740_vm2, %v1827_v13, 0.0 }
 0x27c   : > { %v1677_v41 = vpop.permute.xlu0 %1676  ;;  %v1774_v43 = vmul.f32 %v1772_v39, %v3435_v49  ;;  %1723 = vst.msk [vmem:[#allocation6 + $0x28] sm:$0xff] %vm635_vm1, %v1657_v9  ;;  %v1878_v51 = vld [vmem:[#allocation6 + $0x20] sm:$0xff] }
 0x27d   : > { %1726 = vst.msk [vmem:[#allocation6 + $0x40] sm:$0xff] %vm635_vm1, %v1677_v41  ;;  %v1880_v19 = vmul.f32 %v1878_v51, %v3501_v38 }
 0x27e   : > { %v1776_v47 = vsel %vm1740_vm2, %v1774_v43, 0.0 }
 0x27f   : > { %v1777_v50 = vadd.f32 %v1776_v47, %v1775_v44  ;;  %v1826_v53 = vld [vmem:[#allocation6 + $0x18] sm:$0xff]  ;;  %v1669_v52 = vpop.permute.xlu1 %1668  ;;  %v1882_v62 = vsel %vm1740_vm2, %v1880_v19, 0.0 }
 0x280   : > { %v1689_v54 = vpop.permute.xlu0 %1688  ;;  %v1828_v55 = vmul.f32 %v1826_v53, %v3471_v48  ;;  %1725 = vst.msk [vmem:[#allocation6 + $0x38] sm:$0xff] %vm635_vm1, %v1669_v52  ;;  %v1931_v57 = vld [vmem:[#allocation6 + $0x30] sm:$0xff] }
 0x281   : > { %1728 = vst.msk [vmem:[#allocation6 + $0x50] sm:$0xff] %vm635_vm1, %v1689_v54  ;;  %v1778_v49 = vrot.slane %v1777_v50, 4  ;;  %v1933_v38 = vmul.f32 %v1931_v57, %v3543_v33 }
 0x282   : > { %v1830_v42 = vsel %vm1740_vm2, %v1828_v55, 0.0 }
 0x283   : > { %v1779_v45 = vadd.f32 %v1778_v49, %v1777_v50  ;;  %v1831_v56 = vadd.f32 %v1830_v42, %v1829_v25  ;;  %v1879_v58 = vld [vmem:[#allocation6 + $0x28] sm:$0xff]  ;;  %v1681_v32 = vpop.permute.xlu1 %1680  ;;  %v1935_v33 = vsel %vm1740_vm2, %v1933_v38, 0.0 }
 0x284   : > { %v1701_v60 = vpop.permute.xlu0 %1700  ;;  %v1881_v61 = vmul.f32 %v1879_v58, %v3507_v46  ;;  %1727 = vst.msk [vmem:[#allocation6 + $0x48] sm:$0xff] %vm635_vm1, %v1681_v32  ;;  %v1984_v14 = vld [vmem:[#allocation6 + $0x40] sm:$0xff] }
 0x285   : > { %1730 = vst.msk [vmem:[#allocation6 + $0x60] sm:$0xff] %vm635_vm1, %v1701_v60  ;;  %v1780_v48 = vrot.slane %v1779_v45, 2  ;;  %v1832_v40 = vrot.slane %v1831_v56, 4  ;;  %v1986_v23 = vmul.f32 %v1984_v14, %v3609_v34 }
 0x286   : > { %v1883_v3 = vsel %vm1740_vm2, %v1881_v61, 0.0 }
 0x287   : > { %v1781_v7 = vadd.f32 %v1780_v48, %v1779_v45  ;;  %v1833_v5 = vadd.f32 %v1832_v40, %v1831_v56  ;;  %v1884_v12 = vadd.f32 %v1883_v3, %v1882_v62  ;;  %v1932_v0 = vld [vmem:[#allocation6 + $0x38] sm:$0xff]  ;;  %v1693_v17 = vpop.permute.xlu1 %1692  ;;  %v1988_v31 = vsel %vm1740_vm2, %v1986_v23, 0.0 }
 0x288   : > { %v1713_v15 = vpop.permute.xlu0 %1712  ;;  %v1934_v46 = vmul.f32 %v1932_v0, %v3552_v11  ;;  %1729 = vst.msk [vmem:[#allocation6 + $0x58] sm:$0xff] %vm635_vm1, %v1693_v17  ;;  %v2037_v24 = vld [vmem:[#allocation6 + $0x50] sm:$0xff] }
 0x289   : > { %1732 = vst.msk [vmem:[#allocation6 + $0x70] sm:$0xff] %vm635_vm1, %v1713_v15  ;;  %v1834_v16 = vrot.slane %v1833_v5, 2  ;;  %v1885_v18 = vrot.slane %v1884_v12, 4  ;;  %v1782_v20 = vrot.slane %v1781_v7, 1  ;;  %v2039_v2 = vmul.f32 %v2037_v24, %v3651_v26 }
 0x28a   : > { %v1936_v59 = vsel %vm1740_vm2, %v1934_v46, 0.0 }
 0x28b   : > { %v1835_v6 = vadd.f32 %v1834_v16, %v1833_v5  ;;  %v1886_v10 = vadd.f32 %v1885_v18, %v1884_v12  ;;  %v1937_v1 = vadd.f32 %v1936_v59, %v1935_v33  ;;  %v1985_v11 = vld [vmem:[#allocation6 + $0x48] sm:$0xff]  ;;  %v1705_v28 = vpop.permute.xlu1 %1704  ;;  %v1783_v63 = vadd.f32 %v1782_v20, %v1781_v7 }
 0x28c   : > { %v1987_v29 = vmul.f32 %v1985_v11, %v3615_v35  ;;  %1731 = vst.msk [vmem:[#allocation6 + $0x68] sm:$0xff] %vm635_vm1, %v1705_v28  ;;  %v2090_v41 = vld [vmem:[#allocation6 + $0x60] sm:$0xff]  ;;  %v2041_v26 = vsel %vm1740_vm2, %v2039_v2, 0.0 }
 0x28d   : > { %v1887_v4 = vrot.slane %v1886_v10, 2  ;;  %v1938_v30 = vrot.slane %v1937_v1, 4  ;;  %1785 = vst.msk [vmem:[%s3766_s1] sm:$0x1] %vm1784_vm3, %v1783_v63  ;;  %v1836_v34 = vrot.slane %v1835_v6, 1  ;;  %v2092_v52 = vmul.f32 %v2090_v41, %v3679_v21 }
 0x28e   : > { %v1989_v36 = vsel %vm1740_vm2, %v1987_v29, 0.0 }
 0x28f   : > { %v1888_v39 = vadd.f32 %v1887_v4, %v1886_v10  ;;  %v1939_v9 = vadd.f32 %v1938_v30, %v1937_v1  ;;  %v1990_v35 = vadd.f32 %v1989_v36, %v1988_v31  ;;  %v2038_v43 = vld [vmem:[#allocation6 + $0x58] sm:$0xff]  ;;  %v1717_v44 = vpop.permute.xlu1 %1716  ;;  %v1837_v13 = vadd.f32 %v1836_v34, %v1835_v6 }
 0x290   : > { %v2040_v47 = vmul.f32 %v2038_v43, %v3656_v27  ;;  %1733 = vst.msk [vmem:[#allocation6 + $0x78] sm:$0xff] %vm635_vm1, %v1717_v44  ;;  %v2143_v19 = vld [vmem:[#allocation6 + $0x70] sm:$0xff]  ;;  %v2094_v32 = vsel %vm1740_vm2, %v2092_v52, 0.0 }
 0x291   : > { %v1940_v50 = vrot.slane %v1939_v9, 2  ;;  %v1991_v51 = vrot.slane %v1990_v35, 4  ;;  %1838 = vst.msk [vmem:[%s3766_s1 + $0x1] sm:$0x1] %vm1784_vm3, %v1837_v13  ;;  %v1889_v53 = vrot.slane %v1888_v39, 1  ;;  %v2145_v21 = vmul.f32 %v2143_v19, %v3703_v37 }
 0x292   : > { %v2042_v54 = vsel %vm1740_vm2, %v2040_v47, 0.0 }
 0x293   : > { %v1941_v55 = vadd.f32 %v1940_v50, %v1939_v9  ;;  %v1992_v49 = vadd.f32 %v1991_v51, %v1990_v35  ;;  %v2043_v25 = vadd.f32 %v2042_v54, %v2041_v26  ;;  %v2091_v42 = vld [vmem:[#allocation6 + $0x68] sm:$0xff]  ;;  %v1890_v27 = vadd.f32 %v1889_v53, %v1888_v39 }
 0x294   : > { %v2093_v45 = vmul.f32 %v2091_v42, %v3683_v22  ;;  %v2147_v12 = vsel %vm1740_vm2, %v2145_v21, 0.0 }
 0x295   : > { %v1993_v56 = vrot.slane %v1992_v49, 2  ;;  %v2044_v57 = vrot.slane %v2043_v25, 4  ;;  %1891 = vst.msk [vmem:[%s3766_s1 + $0x2] sm:$0x1] %vm1784_vm3, %v1890_v27  ;;  %v1942_v58 = vrot.slane %v1941_v55, 1 }
 0x296   : > { %v2095_v60 = vsel %vm1740_vm2, %v2093_v45, 0.0 }
 0x297   : > { %v1994_v61 = vadd.f32 %v1993_v56, %v1992_v49  ;;  %v2045_v48 = vadd.f32 %v2044_v57, %v2043_v25  ;;  %v2096_v40 = vadd.f32 %v2095_v60, %v2094_v32  ;;  %v2144_v62 = vld [vmem:[#allocation6 + $0x78] sm:$0xff]  ;;  %v1943_v38 = vadd.f32 %v1942_v58, %v1941_v55 }
 0x298   : > { %v2146_v22 = vmul.f32 %v2144_v62, %v3710_v8 }
 0x299   : > { %v2046_v3 = vrot.slane %v2045_v48, 2  ;;  %v2097_v7 = vrot.slane %v2096_v40, 4  ;;  %1944 = vst.msk [vmem:[%s3766_s1 + $0x3] sm:$0x1] %vm1784_vm3, %v1943_v38  ;;  %v1995_v5 = vrot.slane %v1994_v61, 1 }
 0x29a   : > { %v2148_v37 = vsel %vm1740_vm2, %v2146_v22, 0.0 }
 0x29b   : > { %v2047_v14 = vadd.f32 %v2046_v3, %v2045_v48  ;;  %v2098_v0 = vadd.f32 %v2097_v7, %v2096_v40  ;;  %v2149_v17 = vadd.f32 %v2148_v37, %v2147_v12  ;;  %v1996_v15 = vadd.f32 %v1995_v5, %v1994_v61 }
 0x29d   : > { %v2099_v46 = vrot.slane %v2098_v0, 2  ;;  %v2150_v16 = vrot.slane %v2149_v17, 4  ;;  %1997 = vst.msk [vmem:[%s3766_s1 + $0x4] sm:$0x1] %vm1784_vm3, %v1996_v15  ;;  %v2048_v8 = vrot.slane %v2047_v14, 1 }
 0x29f   : > { %v2100_v18 = vadd.f32 %v2099_v46, %v2098_v0  ;;  %v2151_v20 = vadd.f32 %v2150_v16, %v2149_v17  ;;  %v2049_v33 = vadd.f32 %v2048_v8, %v2047_v14 }
 0x2a1   : > { %v2152_v23 = vrot.slane %v2151_v20, 2  ;;  %2050 = vst.msk [vmem:[%s3766_s1 + $0x5] sm:$0x1] %vm1784_vm3, %v2049_v33  ;;  %v2101_v59 = vrot.slane %v2100_v18, 1 }
 0x2a3   : > { %v2153_v6 = vadd.f32 %v2152_v23, %v2151_v20  ;;  %v2102_v10 = vadd.f32 %v2101_v59, %v2100_v18 }
 0x2a5   : > { %2103 = vst.msk [vmem:[%s3766_s1 + $0x6] sm:$0x1] %vm1784_vm3, %v2102_v10  ;;  %v2154_v1 = vrot.slane %v2153_v6, 1 }
 0x2a7   : > { %v2155_v24 = vadd.f32 %v2154_v1, %v2153_v6 }
 0x2a9   : > { %2156 = vst.msk [vmem:[%s3766_s1 + $0x7] sm:$0x1] %vm1784_vm3, %v2155_v24 }
 0x2aa   : > { %2818 = shalt.err (!%p2815_p12)
}
 0x2ab   : > { %s2819_s23 = scalar_lea.hbm %s3802_s27, 128  ;;  %s2823_s3 = scalar_lea.hbm %s3941_s15, 256 }
 0x2ac   : > { %p2820_p1 = scmp.ne.s32.totalorder %s3802_s27, %s2819_s23  ;;  %p2824_p4 = scmp.lt.u32.totalorder %s3802_s27, %s3941_s15 }
 0x2ad   : > { %p2825_p6 = scmp.lt.u32.totalorder %s2823_s3, %s2819_s23  ;;  %p2827_p3 = scmp.lt.u32.totalorder %s2819_s23, %s3802_s27 }
 0x2ae   : > { %p2821_p0 = pnand %p2820_p1, %p3942_p13 }
 0x2af   : > { %p2826_p9 = por %p2825_p6, %p2824_p4 }
 0x2b0   : > { %p2822_p2 = pneg %p2821_p0 }
 0x2b1   : > { %p2828_p11 = por %p2827_p3, %p2826_p9 }
 0x2b3   : > { %p2829_p10 = pnand %p2828_p11, %p2822_p2 }
 0x2b5   : > { %2832 = shalt.err (!%p2829_p10)
}
 0x2b6   : > { %2537 = dma.vmem_to_hbm [thread:$0]  (%p3942_p13), %s3804_s13, 128, %s3802_s27, %s2180_s16  }
 0x2b7   : > { %s2216_s14 = sshll.u32 %s3718_s20, 4  ;;  %s2524_s1 = sshll.u32 %s2923_s30, 9  ;;  %s3834_s14 = int_to_ptr.vmem [resolvable:$true] %s2216_s14 }
 0x2b8   : > { %s3943_s24 = sld [smem:[#allocation37_spill]]  ;;  %s2185_s11 = scalar_lea.sflag [#allocation21], %s3267_s26 }
 0x2b9   : > { %s2833_s13 = scalar_lea.vmem %s3834_s14, 512  ;;  %s2944_s30 = smov [#allocation20]  }
 0x2ba   : > { %p2834_p5 = scmp.ne.s32.totalorder %s3834_s14, %s2833_s13  ;;  %s2837_s27 = sshll.u32 %s2944_s30, 4  ;;  %s2838_s27 = int_to_ptr.vmem [resolvable:$false] %s2837_s27 }
 0x2bb   : > { %s2839_s16 = scalar_lea.vmem %s2838_s27, 1024  ;;  %p2840_p12 = scmp.lt.s32.totalorder %s3834_s14, %s2838_s27 }
 0x2bc   : > { %p2835_p7 = pnand %p2834_p5, %p3942_p13  ;;  %p2841_p1 = scmp.lt.s32.totalorder %s2839_s16, %s2833_s13 }
 0x2be   : > { %s3839_s29 = scalar_lea.hbm %s3943_s24, %s2524_s1  ;;  %p2836_p8 = pneg %p2835_p7 }
 0x2bf   : > { %p2842_p0 = por %p2841_p1, %p2840_p12 }
 0x2c1   : > { %p2843_p2 = pnand %p2842_p0, %p2836_p8 }
 0x2d1   : > { %v2171_v11 = vpop.permute.xlu0 %2170 }
 0x2d2   : > { %2514 = vst.msk [vmem:[%s3718_s20 + $0x10] sm:$0xff] %vm621_vm0, %v2171_v11 }
 0x2d6   : > { %v2173_v28 = vpop.permute.xlu1 %2172 }
 0x2d7   : > { %2515 = vst.msk [vmem:[%s3718_s20 + $0x18] sm:$0xff] %vm621_vm0, %v2173_v28 }
 0x2d8   : > { %2846 = shalt.err (!%p2843_p2)
}
 0x2d9   : > { %s2847_s20 = scalar_lea.hbm %s3839_s29, 512  ;;  %s2851_s22 = scalar_lea.hbm %s3943_s24, 1024 }
 0x2da   : > { %p2848_p4 = scmp.ne.s32.totalorder %s3839_s29, %s2847_s20  ;;  %p2852_p3 = scmp.lt.u32.totalorder %s3839_s29, %s3943_s24 }
 0x2db   : > { %p2853_p11 = scmp.lt.u32.totalorder %s2851_s22, %s2847_s20  ;;  %p2855_p5 = scmp.lt.u32.totalorder %s2847_s20, %s3839_s29 }
 0x2dc   : > { %p2849_p6 = pnand %p2848_p4, %p3942_p13 }
 0x2dd   : > { %p2854_p10 = por %p2853_p11, %p2852_p3 }
 0x2de   : > { %p2850_p9 = pneg %p2849_p6 }
 0x2df   : > { %p2856_p7 = por %p2855_p5, %p2854_p10 }
 0x2e1   : > { %p2857_p8 = pnand %p2856_p7, %p2850_p9 }
 0x2e3   : > { %2860 = shalt.err (!%p2857_p8)
}
 0x2e4   : > { %s2945_s25 = smov 128   ;;  %s2946_s3 = smov 8  }
 0x2e5   : > { %2538 = dma.vmem_to_hbm [thread:$0]  (%p3942_p13), %s3834_s14, 512, %s3839_s29, %s2185_s11, %s2945_s25, %s2945_s25, %s2946_s3  }
 0x2e6 PF: > { %s3944_s7 = sld [smem:[#allocation28_spill]]  ;;  %s3945_s8 = sld [smem:[#allocation33_spill]] }
 0x2e7   : > { %s3946_s1 = sld [smem:[#allocation30_spill]] }
 0x2ec   : > { %s2231_s12 = sand.u32 1, %s3944_s7   ;;  %p3947_p12 = scmp.ne.s32.totalorder %s3945_s8, 0 }
 0x2ed   : > { %p3948_p1 = scmp.ge.s32.totalorder %s3946_s1, 2  ;;  %s2232_s21 = scalar_lea.sflag [#allocation10], %s2231_s12 }
 0x2ef   : > { %p2561_p0 = pnand %p3948_p1, %p3947_p12 }
 0x2f1   : > { %2902 = dma.done.wait (!%p2561_p0), %s2232_s21, 128  }
 0x2f2   : > { %2904 = vsyncadd (!%p2561_p0), %s2232_s21, 4294967168  ;;  %s2241_s13 = scalar_lea.sflag [#allocation21], %s2231_s12 }
 0x2f3   : > { %2906 = dma.done.wait (!%p2561_p0), %s2241_s13, 512  }
 0x2f4   : > { %2908 = vsyncadd (!%p2561_p0), %s2241_s13, 4294966784  ;;  %s37_s10 = sadd.s32 1, %s3946_s1   ;;  %s3949_s18 = sld [smem:[#allocation29_spill]] }
 0x2f5   : > { %p34_p2 = scmp.ge.s32.totalorder %s37_s10, 4   ;;  %s3950_s29 = sld [smem:[#allocation32_spill]] }
 0x2f6   : > { %s3951_s26 = sld [smem:[#allocation31_spill]]  ;;  %s3952_s27 = smov %s2915_s28 }
 0x2f7   : > { %s3954_s30 = smov %s2927_s9  ;;  %36 = sbr.rel (!%p34_p2) target bundleno = 19 (0x13), region = 219 }
 0x2fa   : > { %s3953_s28 = smov %s3949_s18 }
 0x2fc   : > { %s3955_s9 = smov %s3951_s26 }
 0x2fe   :  { %2246 = vsyncpa [#allocation9], 1 }
 0x2ff   :  { %2248 = vsyncpa [#allocation9 + $0x1], 1 }
 0x300   :  { %2249 = vsyncpa [#allocation12], 1 }
 0x301   :  { %2251 = vsyncpa [#allocation12 + $0x1], 1 }
 0x302   :  { %2252 = vsyncpa [#allocation15], 1 }
 0x303   :  { %2254 = vsyncpa [#allocation15 + $0x1], 1 }
 0x304   :  { %2255 = vsyncpa [#allocation18], 1 }
 0x305   :  { %2257 = vsyncpa [#allocation18 + $0x1], 1 }
 0x306   :  { %2258 = vsyncpa [#allocation10], 1 }
 0x307   :  { %2260 = vsyncpa [#allocation10 + $0x1], 1 }
 0x308   :  { %2261 = vsyncpa [#allocation21], 1 }
 0x309   :  { %2263 = vsyncpa [#allocation21 + $0x1], 1 }

</bundles_post_ra>
